<compile_context>
chip_gen: v7x
topology: tpu7x:2x2x1
jax: 0.10.0
libtpu: 0.0.40
codegen_flags: <defaults>
</compile_context>

<pallas_src>
import jax
import jax.numpy as jnp
from jax.experimental import pallas as pl
from jax.experimental.pallas import tpu as pltpu


# ----------------------------------------------------------------------------
# Kernel 1: fused pooled encoder
# ----------------------------------------------------------------------------
def _pooled_encoder_kernel(ids_ref, mask_ref, table_ref, w_ref, b_ref, out_ref):
    ids = ids_ref[...]                       # (Bt, S) int32
    mask = mask_ref[...]                     # (Bt, S) f32
    bt, s_len = ids.shape
    v = table_ref.shape[0]

    # Fused embedding lookup: table[ids] == onehot(ids) @ table (exact).
    # counts[b, v] = sum_s mask[b, s] * (ids[b, s] == v), built with S
    # lane-dense 2-D compare/selects (no (Bt,S,V) 3-D tensor, no cross-sublane
    # reduce).  S is a compile-time constant, so the loop fully unrolls.
    # TODO(synk): for a real BERT vocab (30k+) this one-hot path must become a
    # DMA gather / scalar-prefetch indexed lookup instead.
    vocab_iota = jax.lax.broadcasted_iota(jnp.int32, (bt, v), 1)     # (Bt, V)
    counts = jnp.zeros((bt, v), jnp.float32)
    for si in range(s_len):
        counts = counts + jnp.where(vocab_iota == ids[:, si][:, None],
                                    mask[:, si][:, None], 0.0)

    # counts are small integers (<= S); exact in bf16 while S <= 256.
    summed = jnp.dot(counts.astype(jnp.bfloat16), table_ref[...],
                     preferred_element_type=jnp.float32)             # (Bt, H) f32

    # Masked mean.  denom clamp keeps padded (all-masked) rows finite; real
    # all-masked rows therefore give a 0-vector instead of NaN (documented).
    denom = jnp.maximum(jnp.sum(mask, axis=1, keepdims=True), 1.0)   # (Bt, 1)
    pooled = summed * (1.0 / denom)                                  # (Bt, H) f32

    # dense pooler projection + tanh (stand-in for the DPR pooler head)
    reps = jnp.tanh(
        jnp.dot(pooled.astype(jnp.bfloat16), w_ref[...],
                preferred_element_type=jnp.float32) + b_ref[...])    # f32
    out_ref[...] = reps.astype(out_ref.dtype)


def pooled_encode(input_ids, attention_mask, table, w, b, *, block_b=128):
    """Masked-mean-pooled synthetic encoder. Returns (B, H) bf16 reps."""
    B, S = input_ids.shape
    V, H = table.shape
    # Batch block: 128 rows fills the MXU M dimension (v6e/v7x 256x256 MXU at
    # >=50%, v5e 128 fully); small batches get a single padded block.
    if B >= block_b:
        Bp = pl.cdiv(B, block_b) * block_b
    else:
        block_b = max(16, ((B + 15) // 16) * 16)   # bf16 sublane tile = 16
        Bp = block_b
    if Bp != B:
        pad = Bp - B
        input_ids = jnp.pad(input_ids, ((0, pad), (0, 0)))
        attention_mask = jnp.pad(attention_mask, ((0, pad), (0, 0)))
    mask_f = attention_mask.astype(jnp.float32)

    resident = pl.Buffered(1)   # constant index_map -> single buffer (halves
                                # the table's VMEM footprint at real vocab)
    reps = pl.pallas_call(
        _pooled_encoder_kernel,
        out_shape=jax.ShapeDtypeStruct((Bp, H), jnp.bfloat16),
        grid_spec=pltpu.PrefetchScalarGridSpec(
            num_scalar_prefetch=0,
            grid=(Bp // block_b,),
            in_specs=[
                pl.BlockSpec((block_b, S), lambda i: (i, 0)),   # ids   (streamed)
                pl.BlockSpec((block_b, S), lambda i: (i, 0)),   # mask  (streamed)
                pl.BlockSpec((V, H), lambda i: (0, 0),
                             pipeline_mode=resident),           # table (resident)
                pl.BlockSpec((H, H), lambda i: (0, 0),
                             pipeline_mode=resident),           # W     (resident)
                pl.BlockSpec((1, H), lambda i: (0, 0),
                             pipeline_mode=resident),           # b     (resident)
            ],
            out_specs=pl.BlockSpec((block_b, H), lambda i: (i, 0)),
        ),
        compiler_params=pltpu.CompilerParams(
            dimension_semantics=("parallel",),                  # megacore on v7x
            vmem_limit_bytes=64 * 1024 * 1024),
    )(input_ids, mask_f, table, w, b)
    return reps[:B]


# ----------------------------------------------------------------------------
# Kernel 2: BiEncoder scoring head, streamed over the context axis
#   scores = qry @ ctx^T ; log_softmax over ctx ; labels = arange(Q)
#   loss = nll_loss(log_probs, labels) (mean) ; predictions = argmax
# ----------------------------------------------------------------------------
def _make_head_kernel(c_actual, c_padded, q_n):
    mask_pad = c_padded != c_actual

    def kernel(q_ref, ct_ref, loss_ref, pred_ref, label_ref,
               m_sc, l_sc, lbl_sc, bs_sc, bi_sc):
        k = pl.program_id(0)
        nk = pl.num_programs(0)
        blk_c = ct_ref.shape[1]          # ct_ref is (H, ct)

        @pl.when(k == 0)
        def _init():
            m_sc[...] = jnp.full_like(m_sc, -jnp.inf)
            l_sc[...] = jnp.zeros_like(l_sc)
            lbl_sc[...] = jnp.zeros_like(lbl_sc)
            bs_sc[...] = jnp.full_like(bs_sc, -jnp.inf)
            bi_sc[...] = jnp.zeros_like(bi_sc)

        # (Q, ct) score block: plain MXU matmul, contexts pre-transposed in
        # the wrapper -> no per-step relayout, ct on the lane axis.
        s = jnp.dot(q_ref[...], ct_ref[...],
                    preferred_element_type=jnp.float32)            # (Q, ct) f32

        ctx_idx = jax.lax.broadcasted_iota(jnp.int32, (q_n, blk_c), 1) + k * blk_c
        qry_idx = jax.lax.broadcasted_iota(jnp.int32, (q_n, blk_c), 0)  # == label

        if mask_pad:  # padded context columns must not win LSE / argmax
            s = jnp.where(ctx_idx < c_actual, s, -jnp.inf)

        # --- online log-sum-exp over the context (lane) axis ---
        bm = jnp.max(s, axis=1, keepdims=True)                     # (Q, 1)
        m_new = jnp.maximum(m_sc[...], bm)
        l_sc[...] = (l_sc[...] * jnp.exp(m_sc[...] - m_new)
                     + jnp.sum(jnp.exp(s - m_new), axis=1, keepdims=True))
        m_sc[...] = m_new

        # --- raw score at the label column (labels = arange(Q) <= C); each
        #     query's label falls in exactly one context block ---
        lbl_sc[...] += jnp.sum(jnp.where(ctx_idx == qry_idx, s, 0.0),
                               axis=1, keepdims=True)

        # --- online argmax with torch.max first-index tie-breaking ---
        blk_first = jnp.min(jnp.where(s >= bm, ctx_idx, c_padded),
                            axis=1, keepdims=True)                 # (Q, 1)
        better = bm > bs_sc[...]
        bs_sc[...] = jnp.where(better, bm, bs_sc[...])
        bi_sc[...] = jnp.where(better, blk_first, bi_sc[...])

        @pl.when(k == nk - 1)
        def _finalize():
            lse = m_sc[...] + jnp.log(l_sc[...])                   # (Q, 1)
            logp_at_label = lbl_sc[...] - lse                      # (Q, 1)
            loss_ref[0, 0] = -jnp.sum(logp_at_label) / float(q_n)  # mean NLL -> SMEM
            pred_ref[...] = bi_sc[...]
            label_ref[...] = qry_idx[:, :1]                        # arange(Q)

    return kernel


def biencoder_head(qry_reps, ctx_reps):
    Q, H = qry_reps.shape
    C, H2 = ctx_reps.shape
    assert H2 == H
    assert Q <= C, "labels = arange(Q) require Q <= number of contexts"

    # Context block size on the lane axis; pad C to a block multiple for
    # streaming (padded columns are masked to -inf in-kernel).
    if C <= 128:
        ct, Cp = C, C
    else:
        ct = 512 if C >= 1024 else (256 if C >= 512 else 128)
        Cp = pl.cdiv(C, ct) * ct

    ctx_t = jnp.transpose(ctx_reps)                     # (H, C), one-time
    if Cp != C:
        ctx_t = jnp.pad(ctx_t, ((0, 0), (0, Cp - C)))

    kernel = _make_head_kernel(C, Cp, Q)
    loss, preds, labels = pl.pallas_call(
        kernel,
        out_shape=(
            jax.ShapeDtypeStruct((1, 1), jnp.float32),
            jax.ShapeDtypeStruct((Q, 1), jnp.int32),
            jax.ShapeDtypeStruct((Q, 1), jnp.int32),
        ),
        grid_spec=pltpu.PrefetchScalarGridSpec(
            num_scalar_prefetch=0,
            grid=(Cp // ct,),
            in_specs=[
                pl.BlockSpec((Q, H), lambda k: (0, 0),
                             pipeline_mode=pl.Buffered(1)),   # queries resident
                pl.BlockSpec((H, ct), lambda k: (0, k)),      # ctx^T streamed
            ],
            out_specs=(
                pl.BlockSpec(memory_space=pltpu.MemorySpace.SMEM),  # scalar loss
                pl.BlockSpec((Q, 1), lambda k: (0, 0)),
                pl.BlockSpec((Q, 1), lambda k: (0, 0)),
            ),
            scratch_shapes=[
                pltpu.VMEM((Q, 1), jnp.float32),   # running max
                pltpu.VMEM((Q, 1), jnp.float32),   # running sum-exp
                pltpu.VMEM((Q, 1), jnp.float32),   # score at label column
                pltpu.VMEM((Q, 1), jnp.float32),   # best score (argmax)
                pltpu.VMEM((Q, 1), jnp.int32),     # best index (argmax)
            ],
        ),
        compiler_params=pltpu.CompilerParams(
            dimension_semantics=("arbitrary",),    # C axis carries accumulators
            vmem_limit_bytes=64 * 1024 * 1024),
    )(qry_reps, ctx_t)
    # TODO(synk): for large Q on v7x, add a leading "parallel" grid axis over
    # Q blocks so both TensorCores share the scoring work.
    return loss[0, 0], preds[:, 0], labels[:, 0]


# ----------------------------------------------------------------------------
# BiEncoder forward (glue: concat / pad / slice / transpose; compute: kernels)
# ----------------------------------------------------------------------------
def biencoder_forward(params,
                      query_input_ids, query_attention_mask,
                      positive_input_ids, positive_attention_mask,
                      negative_input_ids, negative_attention_mask):
    qry_reps = pooled_encode(query_input_ids, query_attention_mask,
                             params["qry_embed"], params["qry_w"], params["qry_b"])
    input_ids_c = jnp.concatenate([positive_input_ids, negative_input_ids], axis=0)
    attention_mask_c = jnp.concatenate(
        [positive_attention_mask, negative_attention_mask], axis=0)
    ctx_reps = pooled_encode(input_ids_c, attention_mask_c,
                             params["ctx_embed"], params["ctx_w"], params["ctx_b"])
    return biencoder_head(qry_reps, ctx_reps)


def init_params(key, vocab=128, hidden=128):
    k1, k2, k3, k4 = jax.random.split(key, 4)
    return {
        "qry_embed": (jax.random.normal(k1, (vocab, hidden), jnp.float32) * 0.1
                      ).astype(jnp.bfloat16),
        "ctx_embed": (jax.random.normal(k2, (vocab, hidden), jnp.float32) * 0.1
                      ).astype(jnp.bfloat16),
        "qry_w": (jax.random.normal(k3, (hidden, hidden), jnp.float32) * 0.1
                  ).astype(jnp.bfloat16),
        "qry_b": jnp.zeros((1, hidden), jnp.float32),
        "ctx_w": (jax.random.normal(k4, (hidden, hidden), jnp.float32) * 0.1
                  ).astype(jnp.bfloat16),
        "ctx_b": jnp.zeros((1, hidden), jnp.float32),
    }
    # TODO(synk): the full pretrained DPR 12-layer BERT encoders are not
    # reproduced; the pooled encoder above is a deterministic synthetic stand-in.


if __name__ == "__main__":
    key = jax.random.PRNGKey(0)
    kp, kq, kpc, knc, kmq, kmp, kmn = jax.random.split(key, 7)

    # small but lane-dense shapes: hidden/vocab padded to 128 (lane axis)
    VOCAB, HIDDEN, SEQ = 128, 128, 8
    Q, NPOS, NNEG = 32, 128, 128            # contexts C = 256 -> exercises streaming

    params = init_params(kp, vocab=VOCAB, hidden=HIDDEN)

    def make_mask(k, shape):
        m = (jax.random.uniform(k, shape) < 0.85).astype(jnp.int32)
        return m.at[:, 0].set(1)            # guarantee at least one real token

    query_input_ids = jax.random.randint(kq, (Q, SEQ), 0, VOCAB, jnp.int32)
    query_attention_mask = make_mask(kmq, (Q, SEQ))
    positive_input_ids = jax.random.randint(kpc, (NPOS, SEQ), 0, VOCAB, jnp.int32)
    positive_attention_mask = make_mask(kmp, (NPOS, SEQ))
    negative_input_ids = jax.random.randint(knc, (NNEG, SEQ), 0, VOCAB, jnp.int32)
    negative_attention_mask = make_mask(kmn, (NNEG, SEQ))

    fwd = jax.jit(biencoder_forward)
    loss, predictions, labels = fwd(
        params,
        query_input_ids, query_attention_mask,
        positive_input_ids, positive_attention_mask,
        negative_input_ids, negative_attention_mask,
    )
    jax.block_until_ready((loss, predictions, labels))

    C = NPOS + NNEG
    assert loss.shape == () and loss.dtype == jnp.float32
    assert predictions.shape == (Q,) and predictions.dtype == jnp.int32
    assert labels.shape == (Q,)
    assert bool(jnp.isfinite(loss))
    assert bool(jnp.all((predictions >= 0) & (predictions < C)))
    assert bool(jnp.array_equal(labels, jnp.arange(Q, dtype=jnp.int32)))

    # Loose numerical check of the scoring head against pure JAX, using the
    # same kernel-produced bf16 reps.
    qry_reps = pooled_encode(query_input_ids, query_attention_mask,
                             params["qry_embed"], params["qry_w"], params["qry_b"])
    ctx_reps = pooled_encode(
        jnp.concatenate([positive_input_ids, negative_input_ids], axis=0),
        jnp.concatenate([positive_attention_mask, negative_attention_mask], axis=0),
        params["ctx_embed"], params["ctx_w"], params["ctx_b"])
    scores = jnp.dot(qry_reps.astype(jnp.float32), ctx_reps.astype(jnp.float32).T)
    logp = jax.nn.log_softmax(scores, axis=1)
    ref_loss = -jnp.mean(logp[jnp.arange(Q), jnp.arange(Q)])
    assert abs(float(loss) - float(ref_loss)) < 1e-3, (float(loss), float(ref_loss))

    print("KERNEL_OK")
</pallas_src>

<mosaic_0001>
module attributes {stable_mosaic.version = 11 : i64} {
  func.func @_pooled_encoder_kernel(%arg0: i32, %arg1: memref<128x8xi32, #tpu.memory_space<vmem>>, %arg2: memref<128x8xf32, #tpu.memory_space<vmem>>, %arg3: memref<128x128xbf16, #tpu.memory_space<vmem>>, %arg4: memref<128x128xbf16, #tpu.memory_space<vmem>>, %arg5: memref<1x128xf32, #tpu.memory_space<vmem>>, %arg6: memref<128x128xbf16, #tpu.memory_space<vmem>>) attributes {dimension_semantics = [#tpu.dimension_semantics<parallel>], iteration_bounds = array<i64: 2>, scalar_prefetch = 0 : i64, scratch_operands = 0 : i64, tpu.core_type = #tpu.core_type<tc>, window_params = [{transform_indices = @transform_0, window_bounds = array<i64: 128, 8>}, {transform_indices = @transform_1, window_bounds = array<i64: 128, 8>}, {pipeline_mode = #tpu.pipeline_mode<synchronous>, transform_indices = @transform_2, window_bounds = array<i64: 128, 128>}, {pipeline_mode = #tpu.pipeline_mode<synchronous>, transform_indices = @transform_3, window_bounds = array<i64: 128, 128>}, {pipeline_mode = #tpu.pipeline_mode<synchronous>, transform_indices = @transform_4, window_bounds = array<i64: 1, 128>}, {transform_indices = @transform_5, window_bounds = array<i64: 128, 128>}]} {
    %c0 = arith.constant 0 : index
    %c0_0 = arith.constant 0 : index
    %0 = vector.load %arg1[%c0, %c0_0] : memref<128x8xi32, #tpu.memory_space<vmem>>, vector<128x8xi32>
    %c0_1 = arith.constant 0 : index
    %c0_2 = arith.constant 0 : index
    %1 = vector.load %arg2[%c0_1, %c0_2] : memref<128x8xf32, #tpu.memory_space<vmem>>, vector<128x8xf32>
    %2 = tpu.iota {dimensions = array<i32: 1>} : vector<128x128xi32>
    %cst = arith.constant 0.000000e+00 : f32
    %3 = vector.broadcast %cst : f32 to vector<128x128xf32>
    %4 = vector.extract_strided_slice %0 {offsets = [0, 0], sizes = [128, 1], strides = [1, 1]} : vector<128x8xi32> to vector<128x1xi32>
    %5 = vector.shape_cast %4 : vector<128x1xi32> to vector<128xi32>
    %6 = vector.shape_cast %5 : vector<128xi32> to vector<128x1xi32>
    %7 = vector.broadcast %6 : vector<128x1xi32> to vector<128x128xi32>
    %8 = arith.cmpi eq, %2, %7 : vector<128x128xi32>
    %9 = vector.extract_strided_slice %1 {offsets = [0, 0], sizes = [128, 1], strides = [1, 1]} : vector<128x8xf32> to vector<128x1xf32>
    %10 = vector.shape_cast %9 : vector<128x1xf32> to vector<128xf32>
    %11 = vector.shape_cast %10 : vector<128xf32> to vector<128x1xf32>
    %cst_3 = arith.constant 0.000000e+00 : f32
    %12 = vector.shape_cast %11 : vector<128x1xf32> to vector<128x1xf32>
    %13 = vector.broadcast %12 : vector<128x1xf32> to vector<128x128xf32>
    %14 = vector.broadcast %cst_3 : f32 to vector<128x128xf32>
    %15 = arith.select %8, %13, %14 : vector<128x128xi1>, vector<128x128xf32>
    %16 = arith.addf %3, %15 : vector<128x128xf32>
    %17 = vector.extract_strided_slice %0 {offsets = [0, 1], sizes = [128, 1], strides = [1, 1]} : vector<128x8xi32> to vector<128x1xi32>
    %18 = vector.shape_cast %17 : vector<128x1xi32> to vector<128xi32>
    %19 = vector.shape_cast %18 : vector<128xi32> to vector<128x1xi32>
    %20 = vector.broadcast %19 : vector<128x1xi32> to vector<128x128xi32>
    %21 = arith.cmpi eq, %2, %20 : vector<128x128xi32>
    %22 = vector.extract_strided_slice %1 {offsets = [0, 1], sizes = [128, 1], strides = [1, 1]} : vector<128x8xf32> to vector<128x1xf32>
    %23 = vector.shape_cast %22 : vector<128x1xf32> to vector<128xf32>
    %24 = vector.shape_cast %23 : vector<128xf32> to vector<128x1xf32>
    %cst_4 = arith.constant 0.000000e+00 : f32
    %25 = vector.shape_cast %24 : vector<128x1xf32> to vector<128x1xf32>
    %26 = vector.broadcast %25 : vector<128x1xf32> to vector<128x128xf32>
    %27 = vector.broadcast %cst_4 : f32 to vector<128x128xf32>
    %28 = arith.select %21, %26, %27 : vector<128x128xi1>, vector<128x128xf32>
    %29 = arith.addf %16, %28 : vector<128x128xf32>
    %30 = vector.extract_strided_slice %0 {offsets = [0, 2], sizes = [128, 1], strides = [1, 1]} : vector<128x8xi32> to vector<128x1xi32>
    %31 = vector.shape_cast %30 : vector<128x1xi32> to vector<128xi32>
    %32 = vector.shape_cast %31 : vector<128xi32> to vector<128x1xi32>
    %33 = vector.broadcast %32 : vector<128x1xi32> to vector<128x128xi32>
    %34 = arith.cmpi eq, %2, %33 : vector<128x128xi32>
    %35 = vector.extract_strided_slice %1 {offsets = [0, 2], sizes = [128, 1], strides = [1, 1]} : vector<128x8xf32> to vector<128x1xf32>
    %36 = vector.shape_cast %35 : vector<128x1xf32> to vector<128xf32>
    %37 = vector.shape_cast %36 : vector<128xf32> to vector<128x1xf32>
    %cst_5 = arith.constant 0.000000e+00 : f32
    %38 = vector.shape_cast %37 : vector<128x1xf32> to vector<128x1xf32>
    %39 = vector.broadcast %38 : vector<128x1xf32> to vector<128x128xf32>
    %40 = vector.broadcast %cst_5 : f32 to vector<128x128xf32>
    %41 = arith.select %34, %39, %40 : vector<128x128xi1>, vector<128x128xf32>
    %42 = arith.addf %29, %41 : vector<128x128xf32>
    %43 = vector.extract_strided_slice %0 {offsets = [0, 3], sizes = [128, 1], strides = [1, 1]} : vector<128x8xi32> to vector<128x1xi32>
    %44 = vector.shape_cast %43 : vector<128x1xi32> to vector<128xi32>
    %45 = vector.shape_cast %44 : vector<128xi32> to vector<128x1xi32>
    %46 = vector.broadcast %45 : vector<128x1xi32> to vector<128x128xi32>
    %47 = arith.cmpi eq, %2, %46 : vector<128x128xi32>
    %48 = vector.extract_strided_slice %1 {offsets = [0, 3], sizes = [128, 1], strides = [1, 1]} : vector<128x8xf32> to vector<128x1xf32>
    %49 = vector.shape_cast %48 : vector<128x1xf32> to vector<128xf32>
    %50 = vector.shape_cast %49 : vector<128xf32> to vector<128x1xf32>
    %cst_6 = arith.constant 0.000000e+00 : f32
    %51 = vector.shape_cast %50 : vector<128x1xf32> to vector<128x1xf32>
    %52 = vector.broadcast %51 : vector<128x1xf32> to vector<128x128xf32>
    %53 = vector.broadcast %cst_6 : f32 to vector<128x128xf32>
    %54 = arith.select %47, %52, %53 : vector<128x128xi1>, vector<128x128xf32>
    %55 = arith.addf %42, %54 : vector<128x128xf32>
    %56 = vector.extract_strided_slice %0 {offsets = [0, 4], sizes = [128, 1], strides = [1, 1]} : vector<128x8xi32> to vector<128x1xi32>
    %57 = vector.shape_cast %56 : vector<128x1xi32> to vector<128xi32>
    %58 = vector.shape_cast %57 : vector<128xi32> to vector<128x1xi32>
    %59 = vector.broadcast %58 : vector<128x1xi32> to vector<128x128xi32>
    %60 = arith.cmpi eq, %2, %59 : vector<128x128xi32>
    %61 = vector.extract_strided_slice %1 {offsets = [0, 4], sizes = [128, 1], strides = [1, 1]} : vector<128x8xf32> to vector<128x1xf32>
    %62 = vector.shape_cast %61 : vector<128x1xf32> to vector<128xf32>
    %63 = vector.shape_cast %62 : vector<128xf32> to vector<128x1xf32>
    %cst_7 = arith.constant 0.000000e+00 : f32
    %64 = vector.shape_cast %63 : vector<128x1xf32> to vector<128x1xf32>
    %65 = vector.broadcast %64 : vector<128x1xf32> to vector<128x128xf32>
    %66 = vector.broadcast %cst_7 : f32 to vector<128x128xf32>
    %67 = arith.select %60, %65, %66 : vector<128x128xi1>, vector<128x128xf32>
    %68 = arith.addf %55, %67 : vector<128x128xf32>
    %69 = vector.extract_strided_slice %0 {offsets = [0, 5], sizes = [128, 1], strides = [1, 1]} : vector<128x8xi32> to vector<128x1xi32>
    %70 = vector.shape_cast %69 : vector<128x1xi32> to vector<128xi32>
    %71 = vector.shape_cast %70 : vector<128xi32> to vector<128x1xi32>
    %72 = vector.broadcast %71 : vector<128x1xi32> to vector<128x128xi32>
    %73 = arith.cmpi eq, %2, %72 : vector<128x128xi32>
    %74 = vector.extract_strided_slice %1 {offsets = [0, 5], sizes = [128, 1], strides = [1, 1]} : vector<128x8xf32> to vector<128x1xf32>
    %75 = vector.shape_cast %74 : vector<128x1xf32> to vector<128xf32>
    %76 = vector.shape_cast %75 : vector<128xf32> to vector<128x1xf32>
    %cst_8 = arith.constant 0.000000e+00 : f32
    %77 = vector.shape_cast %76 : vector<128x1xf32> to vector<128x1xf32>
    %78 = vector.broadcast %77 : vector<128x1xf32> to vector<128x128xf32>
    %79 = vector.broadcast %cst_8 : f32 to vector<128x128xf32>
    %80 = arith.select %73, %78, %79 : vector<128x128xi1>, vector<128x128xf32>
    %81 = arith.addf %68, %80 : vector<128x128xf32>
    %82 = vector.extract_strided_slice %0 {offsets = [0, 6], sizes = [128, 1], strides = [1, 1]} : vector<128x8xi32> to vector<128x1xi32>
    %83 = vector.shape_cast %82 : vector<128x1xi32> to vector<128xi32>
    %84 = vector.shape_cast %83 : vector<128xi32> to vector<128x1xi32>
    %85 = vector.broadcast %84 : vector<128x1xi32> to vector<128x128xi32>
    %86 = arith.cmpi eq, %2, %85 : vector<128x128xi32>
    %87 = vector.extract_strided_slice %1 {offsets = [0, 6], sizes = [128, 1], strides = [1, 1]} : vector<128x8xf32> to vector<128x1xf32>
    %88 = vector.shape_cast %87 : vector<128x1xf32> to vector<128xf32>
    %89 = vector.shape_cast %88 : vector<128xf32> to vector<128x1xf32>
    %cst_9 = arith.constant 0.000000e+00 : f32
    %90 = vector.shape_cast %89 : vector<128x1xf32> to vector<128x1xf32>
    %91 = vector.broadcast %90 : vector<128x1xf32> to vector<128x128xf32>
    %92 = vector.broadcast %cst_9 : f32 to vector<128x128xf32>
    %93 = arith.select %86, %91, %92 : vector<128x128xi1>, vector<128x128xf32>
    %94 = arith.addf %81, %93 : vector<128x128xf32>
    %95 = vector.extract_strided_slice %0 {offsets = [0, 7], sizes = [128, 1], strides = [1, 1]} : vector<128x8xi32> to vector<128x1xi32>
    %96 = vector.shape_cast %95 : vector<128x1xi32> to vector<128xi32>
    %97 = vector.shape_cast %96 : vector<128xi32> to vector<128x1xi32>
    %98 = vector.broadcast %97 : vector<128x1xi32> to vector<128x128xi32>
    %99 = arith.cmpi eq, %2, %98 : vector<128x128xi32>
    %100 = vector.extract_strided_slice %1 {offsets = [0, 7], sizes = [128, 1], strides = [1, 1]} : vector<128x8xf32> to vector<128x1xf32>
    %101 = vector.shape_cast %100 : vector<128x1xf32> to vector<128xf32>
    %102 = vector.shape_cast %101 : vector<128xf32> to vector<128x1xf32>
    %cst_10 = arith.constant 0.000000e+00 : f32
    %103 = vector.shape_cast %102 : vector<128x1xf32> to vector<128x1xf32>
    %104 = vector.broadcast %103 : vector<128x1xf32> to vector<128x128xf32>
    %105 = vector.broadcast %cst_10 : f32 to vector<128x128xf32>
    %106 = arith.select %99, %104, %105 : vector<128x128xi1>, vector<128x128xf32>
    %107 = arith.addf %94, %106 : vector<128x128xf32>
    %108 = arith.truncf %107 : vector<128x128xf32> to vector<128x128xbf16>
    %c0_11 = arith.constant 0 : index
    %c0_12 = arith.constant 0 : index
    %109 = vector.load %arg3[%c0_11, %c0_12] : memref<128x128xbf16, #tpu.memory_space<vmem>>, vector<128x128xbf16>
    %cst_13 = arith.constant dense<0.000000e+00> : vector<128x128xf32>
    %110 = tpu.matmul %108, %109, %cst_13 {dimension_numbers = #tpu.dot_dimension_numbers<[1], [0], [0], [1], [0, 0, 1, 1], [], []>} : vector<128x128xbf16>, vector<128x128xbf16>, vector<128x128xf32> -> vector<128x128xf32>
    %cst_14 = arith.constant dense<0.000000e+00> : vector<128xf32>
    %111 = vector.multi_reduction <add>, %1, %cst_14 [1] : vector<128x8xf32> to vector<128xf32>
    %112 = vector.shape_cast %111 : vector<128xf32> to vector<128x1xf32>
    %cst_15 = arith.constant 1.000000e+00 : f32
    %113 = vector.broadcast %cst_15 : f32 to vector<128x1xf32>
    %114 = arith.maximumf %112, %113 : vector<128x1xf32>
    %cst_16 = arith.constant 1.000000e+00 : f32
    %115 = vector.broadcast %cst_16 : f32 to vector<128x1xf32>
    %116 = arith.divf %115, %114 : vector<128x1xf32>
    %117 = vector.broadcast %116 : vector<128x1xf32> to vector<128x128xf32>
    %118 = arith.mulf %110, %117 : vector<128x128xf32>
    %119 = arith.truncf %118 : vector<128x128xf32> to vector<128x128xbf16>
    %c0_17 = arith.constant 0 : index
    %c0_18 = arith.constant 0 : index
    %120 = vector.load %arg4[%c0_17, %c0_18] : memref<128x128xbf16, #tpu.memory_space<vmem>>, vector<128x128xbf16>
    %cst_19 = arith.constant dense<0.000000e+00> : vector<128x128xf32>
    %121 = tpu.matmul %119, %120, %cst_19 {dimension_numbers = #tpu.dot_dimension_numbers<[1], [0], [0], [1], [0, 0, 1, 1], [], []>} : vector<128x128xbf16>, vector<128x128xbf16>, vector<128x128xf32> -> vector<128x128xf32>
    %c0_20 = arith.constant 0 : index
    %c0_21 = arith.constant 0 : index
    %122 = vector.load %arg5[%c0_20, %c0_21] : memref<1x128xf32, #tpu.memory_space<vmem>>, vector<1x128xf32>
    %123 = vector.broadcast %122 : vector<1x128xf32> to vector<128x128xf32>
    %124 = arith.addf %121, %123 : vector<128x128xf32>
    %125 = math.tanh %124 : vector<128x128xf32>
    %126 = arith.truncf %125 : vector<128x128xf32> to vector<128x128xbf16>
    %c0_22 = arith.constant 0 : index
    %c0_23 = arith.constant 0 : index
    %127 = vector.load %arg6[%c0_22, %c0_23] : memref<128x128xbf16, #tpu.memory_space<vmem>>, vector<128x128xbf16>
    tpu.vector_store %arg6[%c0_22, %c0_23], %126 {strides = array<i32>} : memref<128x128xbf16, #tpu.memory_space<vmem>>, vector<128x128xbf16>,
    return
  }
  func.func @transform_0(%arg0: i32) -> (i32, i32) {
    %c0_i32 = arith.constant 0 : i32
    %c0_i32_0 = arith.constant 0 : i32
    return %arg0, %c0_i32 : i32, i32
  }
  func.func @transform_1(%arg0: i32) -> (i32, i32) {
    %c0_i32 = arith.constant 0 : i32
    %c0_i32_0 = arith.constant 0 : i32
    return %arg0, %c0_i32 : i32, i32
  }
  func.func @transform_2(%arg0: i32) -> (i32, i32) {
    %c0_i32 = arith.constant 0 : i32
    %c0_i32_0 = arith.constant 0 : i32
    %c0_i32_1 = arith.constant 0 : i32
    return %c0_i32, %c0_i32_0 : i32, i32
  }
  func.func @transform_3(%arg0: i32) -> (i32, i32) {
    %c0_i32 = arith.constant 0 : i32
    %c0_i32_0 = arith.constant 0 : i32
    %c0_i32_1 = arith.constant 0 : i32
    return %c0_i32, %c0_i32_0 : i32, i32
  }
  func.func @transform_4(%arg0: i32) -> (i32, i32) {
    %c0_i32 = arith.constant 0 : i32
    %c0_i32_0 = arith.constant 0 : i32
    %c0_i32_1 = arith.constant 0 : i32
    return %c0_i32, %c0_i32_0 : i32, i32
  }
  func.func @transform_5(%arg0: i32) -> (i32, i32) {
    %c0_i32 = arith.constant 0 : i32
    %c0_i32_0 = arith.constant 0 : i32
    return %arg0, %c0_i32 : i32, i32
  }
}

module attributes {stable_mosaic.version = 11 : i64} {
  func.func @kernel(%arg0: i32, %arg1: memref<32x128xbf16, #tpu.memory_space<vmem>>, %arg2: memref<128x128xbf16, #tpu.memory_space<vmem>>, %arg3: memref<1x1xf32, #tpu.memory_space<smem>>, %arg4: memref<32x1xi32, #tpu.memory_space<vmem>>, %arg5: memref<32x1xi32, #tpu.memory_space<vmem>>, %arg6: memref<32x1xf32, #tpu.memory_space<vmem>>, %arg7: memref<32x1xf32, #tpu.memory_space<vmem>>, %arg8: memref<32x1xf32, #tpu.memory_space<vmem>>, %arg9: memref<32x1xf32, #tpu.memory_space<vmem>>, %arg10: memref<32x1xi32, #tpu.memory_space<vmem>>) attributes {dimension_semantics = [#tpu.dimension_semantics<arbitrary>], iteration_bounds = array<i64: 2>, scalar_prefetch = 0 : i64, scratch_operands = 5 : i64, tpu.core_type = #tpu.core_type<tc>, window_params = [{pipeline_mode = #tpu.pipeline_mode<synchronous>, transform_indices = @transform_0, window_bounds = array<i64: 32, 128>}, {transform_indices = @transform_1, window_bounds = array<i64: 128, 128>}, {transform_indices = @transform_2, window_bounds = array<i64: 1, 1>}, {pipeline_mode = #tpu.pipeline_mode<synchronous>, transform_indices = @transform_3, window_bounds = array<i64: 32, 1>}, {pipeline_mode = #tpu.pipeline_mode<synchronous>, transform_indices = @transform_4, window_bounds = array<i64: 32, 1>}]} {
    %c0_i32 = arith.constant 0 : i32
    %0 = arith.cmpi eq, %arg0, %c0_i32 : i32
    %1 = arith.extui %0 : i1 to i32
    %c0_i32_0 = arith.constant 0 : i32
    %2 = arith.cmpi ne, %1, %c0_i32_0 : i32
    scf.if %2 {
      %cst_34 = arith.constant 0xFF800000 : f32
      %53 = vector.broadcast %cst_34 : f32 to vector<32x1xf32>
      %c0_35 = arith.constant 0 : index
      %c0_36 = arith.constant 0 : index
      %54 = vector.load %arg6[%c0_35, %c0_36] : memref<32x1xf32, #tpu.memory_space<vmem>>, vector<32x1xf32>
      tpu.vector_store %arg6[%c0_35, %c0_36], %53 {strides = array<i32>} : memref<32x1xf32, #tpu.memory_space<vmem>>, vector<32x1xf32>,
      %cst_37 = arith.constant 0.000000e+00 : f32
      %55 = vector.broadcast %cst_37 : f32 to vector<32x1xf32>
      %c0_38 = arith.constant 0 : index
      %c0_39 = arith.constant 0 : index
      %56 = vector.load %arg7[%c0_38, %c0_39] : memref<32x1xf32, #tpu.memory_space<vmem>>, vector<32x1xf32>
      tpu.vector_store %arg7[%c0_38, %c0_39], %55 {strides = array<i32>} : memref<32x1xf32, #tpu.memory_space<vmem>>, vector<32x1xf32>,
      %cst_40 = arith.constant 0.000000e+00 : f32
      %57 = vector.broadcast %cst_40 : f32 to vector<32x1xf32>
      %c0_41 = arith.constant 0 : index
      %c0_42 = arith.constant 0 : index
      %58 = vector.load %arg8[%c0_41, %c0_42] : memref<32x1xf32, #tpu.memory_space<vmem>>, vector<32x1xf32>
      tpu.vector_store %arg8[%c0_41, %c0_42], %57 {strides = array<i32>} : memref<32x1xf32, #tpu.memory_space<vmem>>, vector<32x1xf32>,
      %cst_43 = arith.constant 0xFF800000 : f32
      %59 = vector.broadcast %cst_43 : f32 to vector<32x1xf32>
      %c0_44 = arith.constant 0 : index
      %c0_45 = arith.constant 0 : index
      %60 = vector.load %arg9[%c0_44, %c0_45] : memref<32x1xf32, #tpu.memory_space<vmem>>, vector<32x1xf32>
      tpu.vector_store %arg9[%c0_44, %c0_45], %59 {strides = array<i32>} : memref<32x1xf32, #tpu.memory_space<vmem>>, vector<32x1xf32>,
      %c0_i32_46 = arith.constant 0 : i32
      %61 = vector.broadcast %c0_i32_46 : i32 to vector<32x1xi32>
      %c0_47 = arith.constant 0 : index
      %c0_48 = arith.constant 0 : index
      %62 = vector.load %arg10[%c0_47, %c0_48] : memref<32x1xi32, #tpu.memory_space<vmem>>, vector<32x1xi32>
      tpu.vector_store %arg10[%c0_47, %c0_48], %61 {strides = array<i32>} : memref<32x1xi32, #tpu.memory_space<vmem>>, vector<32x1xi32>,
    } else {
    }
    %c0 = arith.constant 0 : index
    %c0_1 = arith.constant 0 : index
    %3 = vector.load %arg1[%c0, %c0_1] : memref<32x128xbf16, #tpu.memory_space<vmem>>, vector<32x128xbf16>
    %c0_2 = arith.constant 0 : index
    %c0_3 = arith.constant 0 : index
    %4 = vector.load %arg2[%c0_2, %c0_3] : memref<128x128xbf16, #tpu.memory_space<vmem>>, vector<128x128xbf16>
    %cst = arith.constant dense<0.000000e+00> : vector<32x128xf32>
    %5 = tpu.matmul %3, %4, %cst {dimension_numbers = #tpu.dot_dimension_numbers<[1], [0], [0], [1], [0, 0, 1, 1], [], []>} : vector<32x128xbf16>, vector<128x128xbf16>, vector<32x128xf32> -> vector<32x128xf32>
    %6 = tpu.iota {dimensions = array<i32: 1>} : vector<32x128xi32>
    %c128_i32 = arith.constant 128 : i32
    %7 = arith.muli %arg0, %c128_i32 : i32
    %8 = vector.broadcast %7 : i32 to vector<32x128xi32>
    %9 = arith.addi %6, %8 : vector<32x128xi32>
    %10 = tpu.iota {dimensions = array<i32: 0>} : vector<32x128xi32>
    %cst_4 = arith.constant dense<0xFF800000> : vector<32xf32>
    %11 = vector.multi_reduction <maximumf>, %5, %cst_4 [1] : vector<32x128xf32> to vector<32xf32>
    %12 = vector.shape_cast %11 : vector<32xf32> to vector<32x1xf32>
    %c0_5 = arith.constant 0 : index
    %c0_6 = arith.constant 0 : index
    %13 = vector.load %arg6[%c0_5, %c0_6] : memref<32x1xf32, #tpu.memory_space<vmem>>, vector<32x1xf32>
    %14 = arith.maximumf %13, %12 : vector<32x1xf32>
    %c0_7 = arith.constant 0 : index
    %c0_8 = arith.constant 0 : index
    %15 = vector.load %arg7[%c0_7, %c0_8] : memref<32x1xf32, #tpu.memory_space<vmem>>, vector<32x1xf32>
    %c0_9 = arith.constant 0 : index
    %c0_10 = arith.constant 0 : index
    %16 = vector.load %arg6[%c0_9, %c0_10] : memref<32x1xf32, #tpu.memory_space<vmem>>, vector<32x1xf32>
    %17 = arith.subf %16, %14 : vector<32x1xf32>
    %18 = math.exp %17 : vector<32x1xf32>
    %19 = arith.mulf %15, %18 : vector<32x1xf32>
    %20 = vector.broadcast %14 : vector<32x1xf32> to vector<32x128xf32>
    %21 = arith.subf %5, %20 : vector<32x128xf32>
    %22 = math.exp %21 : vector<32x128xf32>
    %cst_11 = arith.constant dense<0.000000e+00> : vector<32xf32>
    %23 = vector.multi_reduction <add>, %22, %cst_11 [1] : vector<32x128xf32> to vector<32xf32>
    %24 = vector.shape_cast %23 : vector<32xf32> to vector<32x1xf32>
    %25 = arith.addf %19, %24 : vector<32x1xf32>
    %c0_12 = arith.constant 0 : index
    %c0_13 = arith.constant 0 : index
    %26 = vector.load %arg7[%c0_12, %c0_13] : memref<32x1xf32, #tpu.memory_space<vmem>>, vector<32x1xf32>
    tpu.vector_store %arg7[%c0_12, %c0_13], %25 {strides = array<i32>} : memref<32x1xf32, #tpu.memory_space<vmem>>, vector<32x1xf32>,
    %c0_14 = arith.constant 0 : index
    %c0_15 = arith.constant 0 : index
    %27 = vector.load %arg6[%c0_14, %c0_15] : memref<32x1xf32, #tpu.memory_space<vmem>>, vector<32x1xf32>
    tpu.vector_store %arg6[%c0_14, %c0_15], %14 {strides = array<i32>} : memref<32x1xf32, #tpu.memory_space<vmem>>, vector<32x1xf32>,
    %c0_16 = arith.constant 0 : index
    %c0_17 = arith.constant 0 : index
    %28 = vector.load %arg8[%c0_16, %c0_17] : memref<32x1xf32, #tpu.memory_space<vmem>>, vector<32x1xf32>
    %29 = arith.cmpi eq, %9, %10 : vector<32x128xi32>
    %cst_18 = arith.constant 0.000000e+00 : f32
    %30 = vector.broadcast %cst_18 : f32 to vector<32x128xf32>
    %31 = arith.select %29, %5, %30 : vector<32x128xi1>, vector<32x128xf32>
    %cst_19 = arith.constant dense<0.000000e+00> : vector<32xf32>
    %32 = vector.multi_reduction <add>, %31, %cst_19 [1] : vector<32x128xf32> to vector<32xf32>
    %33 = vector.shape_cast %32 : vector<32xf32> to vector<32x1xf32>
    %34 = arith.addf %28, %33 : vector<32x1xf32>
    %c0_20 = arith.constant 0 : index
    %c0_21 = arith.constant 0 : index
    %35 = vector.load %arg8[%c0_20, %c0_21] : memref<32x1xf32, #tpu.memory_space<vmem>>, vector<32x1xf32>
    tpu.vector_store %arg8[%c0_20, %c0_21], %34 {strides = array<i32>} : memref<32x1xf32, #tpu.memory_space<vmem>>, vector<32x1xf32>,
    %36 = vector.broadcast %12 : vector<32x1xf32> to vector<32x128xf32>
    %37 = arith.cmpf oge, %5, %36 : vector<32x128xf32>
    %c256_i32 = arith.constant 256 : i32
    %38 = vector.broadcast %c256_i32 : i32 to vector<32x128xi32>
    %39 = arith.select %37, %9, %38 : vector<32x128xi1>, vector<32x128xi32>
    %cst_22 = arith.constant dense<2147483647> : vector<32xi32>
    %40 = vector.multi_reduction <minsi>, %39, %cst_22 [1] : vector<32x128xi32> to vector<32xi32>
    %41 = vector.shape_cast %40 : vector<32xi32> to vector<32x1xi32>
    %c0_23 = arith.constant 0 : index
    %c0_24 = arith.constant 0 : index
    %42 = vector.load %arg9[%c0_23, %c0_24] : memref<32x1xf32, #tpu.memory_space<vmem>>, vector<32x1xf32>
    %43 = arith.cmpf ogt, %12, %42 : vector<32x1xf32>
    %c0_25 = arith.constant 0 : index
    %c0_26 = arith.constant 0 : index
    %44 = vector.load %arg9[%c0_25, %c0_26] : memref<32x1xf32, #tpu.memory_space<vmem>>, vector<32x1xf32>
    %45 = arith.select %43, %12, %44 : vector<32x1xi1>, vector<32x1xf32>
    %c0_27 = arith.constant 0 : index
    %c0_28 = arith.constant 0 : index
    %46 = vector.load %arg9[%c0_27, %c0_28] : memref<32x1xf32, #tpu.memory_space<vmem>>, vector<32x1xf32>
    tpu.vector_store %arg9[%c0_27, %c0_28], %45 {strides = array<i32>} : memref<32x1xf32, #tpu.memory_space<vmem>>, vector<32x1xf32>,
    %c0_29 = arith.constant 0 : index
    %c0_30 = arith.constant 0 : index
    %47 = vector.load %arg10[%c0_29, %c0_30] : memref<32x1xi32, #tpu.memory_space<vmem>>, vector<32x1xi32>
    %48 = arith.select %43, %41, %47 : vector<32x1xi1>, vector<32x1xi32>
    %c0_31 = arith.constant 0 : index
    %c0_32 = arith.constant 0 : index
    %49 = vector.load %arg10[%c0_31, %c0_32] : memref<32x1xi32, #tpu.memory_space<vmem>>, vector<32x1xi32>
    tpu.vector_store %arg10[%c0_31, %c0_32], %48 {strides = array<i32>} : memref<32x1xi32, #tpu.memory_space<vmem>>, vector<32x1xi32>,
    %c1_i32 = arith.constant 1 : i32
    %50 = arith.cmpi eq, %arg0, %c1_i32 : i32
    %51 = arith.extui %50 : i1 to i32
    %c0_i32_33 = arith.constant 0 : i32
    %52 = arith.cmpi ne, %51, %c0_i32_33 : i32
    scf.if %52 {
      %c0_34 = arith.constant 0 : index
      %c0_35 = arith.constant 0 : index
      %53 = vector.load %arg6[%c0_34, %c0_35] : memref<32x1xf32, #tpu.memory_space<vmem>>, vector<32x1xf32>
      %c0_36 = arith.constant 0 : index
      %c0_37 = arith.constant 0 : index
      %54 = vector.load %arg7[%c0_36, %c0_37] : memref<32x1xf32, #tpu.memory_space<vmem>>, vector<32x1xf32>
      %55 = math.log %54 : vector<32x1xf32>
      %56 = arith.addf %53, %55 : vector<32x1xf32>
      %c0_38 = arith.constant 0 : index
      %c0_39 = arith.constant 0 : index
      %57 = vector.load %arg8[%c0_38, %c0_39] : memref<32x1xf32, #tpu.memory_space<vmem>>, vector<32x1xf32>
      %58 = arith.subf %57, %56 : vector<32x1xf32>
      %59 = vector.shape_cast %58 : vector<32x1xf32> to vector<1x32x1xf32>
      %cst_40 = arith.constant dense<0.000000e+00> : vector<1xf32>
      %60 = vector.multi_reduction <add>, %59, %cst_40 [1, 2] : vector<1x32x1xf32> to vector<1xf32>
      %61 = vector.shape_cast %60 : vector<1xf32> to vector<1x1x1xf32>
      %62 = vector.extract %61[0, 0, 0] : f32 from vector<1x1x1xf32>
      %cst_41 = arith.constant 0.000000e+00 : f32
      %63 = arith.subf %cst_41, %62 : f32
      %cst_42 = arith.constant 3.200000e+01 : f32
      %64 = arith.divf %63, %cst_42 : f32
      %c0_43 = arith.constant 0 : index
      %c0_44 = arith.constant 0 : index
      %65 = memref.load %arg3[%c0_43, %c0_44] : memref<1x1xf32, #tpu.memory_space<smem>>
      memref.store %64, %arg3[%c0_43, %c0_44] : memref<1x1xf32, #tpu.memory_space<smem>>
      %c0_45 = arith.constant 0 : index
      %c0_46 = arith.constant 0 : index
      %66 = vector.load %arg10[%c0_45, %c0_46] : memref<32x1xi32, #tpu.memory_space<vmem>>, vector<32x1xi32>
      %c0_47 = arith.constant 0 : index
      %c0_48 = arith.constant 0 : index
      %67 = vector.load %arg4[%c0_47, %c0_48] : memref<32x1xi32, #tpu.memory_space<vmem>>, vector<32x1xi32>
      tpu.vector_store %arg4[%c0_47, %c0_48], %66 {strides = array<i32>} : memref<32x1xi32, #tpu.memory_space<vmem>>, vector<32x1xi32>,
      %68 = vector.extract_strided_slice %10 {offsets = [0, 0], sizes = [32, 1], strides = [1, 1]} : vector<32x128xi32> to vector<32x1xi32>
      %c0_49 = arith.constant 0 : index
      %c0_50 = arith.constant 0 : index
      %69 = vector.load %arg5[%c0_49, %c0_50] : memref<32x1xi32, #tpu.memory_space<vmem>>, vector<32x1xi32>
      tpu.vector_store %arg5[%c0_49, %c0_50], %68 {strides = array<i32>} : memref<32x1xi32, #tpu.memory_space<vmem>>, vector<32x1xi32>,
    } else {
    }
    return
  }
  func.func @transform_0(%arg0: i32) -> (i32, i32) {
    %c0_i32 = arith.constant 0 : i32
    %c0_i32_0 = arith.constant 0 : i32
    %c0_i32_1 = arith.constant 0 : i32
    return %c0_i32, %c0_i32_0 : i32, i32
  }
  func.func @transform_1(%arg0: i32) -> (i32, i32) {
    %c0_i32 = arith.constant 0 : i32
    %c0_i32_0 = arith.constant 0 : i32
    return %c0_i32, %arg0 : i32, i32
  }
  func.func @transform_2(%arg0: i32) -> (i32, i32) {
    %c0_i32 = arith.constant 0 : i32
    %c0_i32_0 = arith.constant 0 : i32
    %c0_i32_1 = arith.constant 0 : i32
    return %c0_i32, %c0_i32_0 : i32, i32
  }
  func.func @transform_3(%arg0: i32) -> (i32, i32) {
    %c0_i32 = arith.constant 0 : i32
    %c0_i32_0 = arith.constant 0 : i32
    %c0_i32_1 = arith.constant 0 : i32
    return %c0_i32, %c0_i32_0 : i32, i32
  }
  func.func @transform_4(%arg0: i32) -> (i32, i32) {
    %c0_i32 = arith.constant 0 : i32
    %c0_i32_0 = arith.constant 0 : i32
    %c0_i32_1 = arith.constant 0 : i32
    return %c0_i32, %c0_i32_0 : i32, i32
  }
}

module attributes {stable_mosaic.version = 11 : i64} {
  func.func @_pooled_encoder_kernel(%arg0: i32, %arg1: memref<32x8xi32, #tpu.memory_space<vmem>>, %arg2: memref<32x8xf32, #tpu.memory_space<vmem>>, %arg3: memref<128x128xbf16, #tpu.memory_space<vmem>>, %arg4: memref<128x128xbf16, #tpu.memory_space<vmem>>, %arg5: memref<1x128xf32, #tpu.memory_space<vmem>>, %arg6: memref<32x128xbf16, #tpu.memory_space<vmem>>) attributes {dimension_semantics = [#tpu.dimension_semantics<parallel>], iteration_bounds = array<i64: 1>, scalar_prefetch = 0 : i64, scratch_operands = 0 : i64, tpu.core_type = #tpu.core_type<tc>, window_params = [{transform_indices = @transform_0, window_bounds = array<i64: 32, 8>}, {transform_indices = @transform_1, window_bounds = array<i64: 32, 8>}, {pipeline_mode = #tpu.pipeline_mode<synchronous>, transform_indices = @transform_2, window_bounds = array<i64: 128, 128>}, {pipeline_mode = #tpu.pipeline_mode<synchronous>, transform_indices = @transform_3, window_bounds = array<i64: 128, 128>}, {pipeline_mode = #tpu.pipeline_mode<synchronous>, transform_indices = @transform_4, window_bounds = array<i64: 1, 128>}, {transform_indices = @transform_5, window_bounds = array<i64: 32, 128>}]} {
    %c0 = arith.constant 0 : index
    %c0_0 = arith.constant 0 : index
    %0 = vector.load %arg1[%c0, %c0_0] : memref<32x8xi32, #tpu.memory_space<vmem>>, vector<32x8xi32>
    %c0_1 = arith.constant 0 : index
    %c0_2 = arith.constant 0 : index
    %1 = vector.load %arg2[%c0_1, %c0_2] : memref<32x8xf32, #tpu.memory_space<vmem>>, vector<32x8xf32>
    %2 = tpu.iota {dimensions = array<i32: 1>} : vector<32x128xi32>
    %cst = arith.constant 0.000000e+00 : f32
    %3 = vector.broadcast %cst : f32 to vector<32x128xf32>
    %4 = vector.extract_strided_slice %0 {offsets = [0, 0], sizes = [32, 1], strides = [1, 1]} : vector<32x8xi32> to vector<32x1xi32>
    %5 = vector.shape_cast %4 : vector<32x1xi32> to vector<32xi32>
    %6 = vector.shape_cast %5 : vector<32xi32> to vector<32x1xi32>
    %7 = vector.broadcast %6 : vector<32x1xi32> to vector<32x128xi32>
    %8 = arith.cmpi eq, %2, %7 : vector<32x128xi32>
    %9 = vector.extract_strided_slice %1 {offsets = [0, 0], sizes = [32, 1], strides = [1, 1]} : vector<32x8xf32> to vector<32x1xf32>
    %10 = vector.shape_cast %9 : vector<32x1xf32> to vector<32xf32>
    %11 = vector.shape_cast %10 : vector<32xf32> to vector<32x1xf32>
    %cst_3 = arith.constant 0.000000e+00 : f32
    %12 = vector.shape_cast %11 : vector<32x1xf32> to vector<32x1xf32>
    %13 = vector.broadcast %12 : vector<32x1xf32> to vector<32x128xf32>
    %14 = vector.broadcast %cst_3 : f32 to vector<32x128xf32>
    %15 = arith.select %8, %13, %14 : vector<32x128xi1>, vector<32x128xf32>
    %16 = arith.addf %3, %15 : vector<32x128xf32>
    %17 = vector.extract_strided_slice %0 {offsets = [0, 1], sizes = [32, 1], strides = [1, 1]} : vector<32x8xi32> to vector<32x1xi32>
    %18 = vector.shape_cast %17 : vector<32x1xi32> to vector<32xi32>
    %19 = vector.shape_cast %18 : vector<32xi32> to vector<32x1xi32>
    %20 = vector.broadcast %19 : vector<32x1xi32> to vector<32x128xi32>
    %21 = arith.cmpi eq, %2, %20 : vector<32x128xi32>
    %22 = vector.extract_strided_slice %1 {offsets = [0, 1], sizes = [32, 1], strides = [1, 1]} : vector<32x8xf32> to vector<32x1xf32>
    %23 = vector.shape_cast %22 : vector<32x1xf32> to vector<32xf32>
    %24 = vector.shape_cast %23 : vector<32xf32> to vector<32x1xf32>
    %cst_4 = arith.constant 0.000000e+00 : f32
    %25 = vector.shape_cast %24 : vector<32x1xf32> to vector<32x1xf32>
    %26 = vector.broadcast %25 : vector<32x1xf32> to vector<32x128xf32>
    %27 = vector.broadcast %cst_4 : f32 to vector<32x128xf32>
    %28 = arith.select %21, %26, %27 : vector<32x128xi1>, vector<32x128xf32>
    %29 = arith.addf %16, %28 : vector<32x128xf32>
    %30 = vector.extract_strided_slice %0 {offsets = [0, 2], sizes = [32, 1], strides = [1, 1]} : vector<32x8xi32> to vector<32x1xi32>
    %31 = vector.shape_cast %30 : vector<32x1xi32> to vector<32xi32>
    %32 = vector.shape_cast %31 : vector<32xi32> to vector<32x1xi32>
    %33 = vector.broadcast %32 : vector<32x1xi32> to vector<32x128xi32>
    %34 = arith.cmpi eq, %2, %33 : vector<32x128xi32>
    %35 = vector.extract_strided_slice %1 {offsets = [0, 2], sizes = [32, 1], strides = [1, 1]} : vector<32x8xf32> to vector<32x1xf32>
    %36 = vector.shape_cast %35 : vector<32x1xf32> to vector<32xf32>
    %37 = vector.shape_cast %36 : vector<32xf32> to vector<32x1xf32>
    %cst_5 = arith.constant 0.000000e+00 : f32
    %38 = vector.shape_cast %37 : vector<32x1xf32> to vector<32x1xf32>
    %39 = vector.broadcast %38 : vector<32x1xf32> to vector<32x128xf32>
    %40 = vector.broadcast %cst_5 : f32 to vector<32x128xf32>
    %41 = arith.select %34, %39, %40 : vector<32x128xi1>, vector<32x128xf32>
    %42 = arith.addf %29, %41 : vector<32x128xf32>
    %43 = vector.extract_strided_slice %0 {offsets = [0, 3], sizes = [32, 1], strides = [1, 1]} : vector<32x8xi32> to vector<32x1xi32>
    %44 = vector.shape_cast %43 : vector<32x1xi32> to vector<32xi32>
    %45 = vector.shape_cast %44 : vector<32xi32> to vector<32x1xi32>
    %46 = vector.broadcast %45 : vector<32x1xi32> to vector<32x128xi32>
    %47 = arith.cmpi eq, %2, %46 : vector<32x128xi32>
    %48 = vector.extract_strided_slice %1 {offsets = [0, 3], sizes = [32, 1], strides = [1, 1]} : vector<32x8xf32> to vector<32x1xf32>
    %49 = vector.shape_cast %48 : vector<32x1xf32> to vector<32xf32>
    %50 = vector.shape_cast %49 : vector<32xf32> to vector<32x1xf32>
    %cst_6 = arith.constant 0.000000e+00 : f32
    %51 = vector.shape_cast %50 : vector<32x1xf32> to vector<32x1xf32>
    %52 = vector.broadcast %51 : vector<32x1xf32> to vector<32x128xf32>
    %53 = vector.broadcast %cst_6 : f32 to vector<32x128xf32>
    %54 = arith.select %47, %52, %53 : vector<32x128xi1>, vector<32x128xf32>
    %55 = arith.addf %42, %54 : vector<32x128xf32>
    %56 = vector.extract_strided_slice %0 {offsets = [0, 4], sizes = [32, 1], strides = [1, 1]} : vector<32x8xi32> to vector<32x1xi32>
    %57 = vector.shape_cast %56 : vector<32x1xi32> to vector<32xi32>
    %58 = vector.shape_cast %57 : vector<32xi32> to vector<32x1xi32>
    %59 = vector.broadcast %58 : vector<32x1xi32> to vector<32x128xi32>
    %60 = arith.cmpi eq, %2, %59 : vector<32x128xi32>
    %61 = vector.extract_strided_slice %1 {offsets = [0, 4], sizes = [32, 1], strides = [1, 1]} : vector<32x8xf32> to vector<32x1xf32>
    %62 = vector.shape_cast %61 : vector<32x1xf32> to vector<32xf32>
    %63 = vector.shape_cast %62 : vector<32xf32> to vector<32x1xf32>
    %cst_7 = arith.constant 0.000000e+00 : f32
    %64 = vector.shape_cast %63 : vector<32x1xf32> to vector<32x1xf32>
    %65 = vector.broadcast %64 : vector<32x1xf32> to vector<32x128xf32>
    %66 = vector.broadcast %cst_7 : f32 to vector<32x128xf32>
    %67 = arith.select %60, %65, %66 : vector<32x128xi1>, vector<32x128xf32>
    %68 = arith.addf %55, %67 : vector<32x128xf32>
    %69 = vector.extract_strided_slice %0 {offsets = [0, 5], sizes = [32, 1], strides = [1, 1]} : vector<32x8xi32> to vector<32x1xi32>
    %70 = vector.shape_cast %69 : vector<32x1xi32> to vector<32xi32>
    %71 = vector.shape_cast %70 : vector<32xi32> to vector<32x1xi32>
    %72 = vector.broadcast %71 : vector<32x1xi32> to vector<32x128xi32>
    %73 = arith.cmpi eq, %2, %72 : vector<32x128xi32>
    %74 = vector.extract_strided_slice %1 {offsets = [0, 5], sizes = [32, 1], strides = [1, 1]} : vector<32x8xf32> to vector<32x1xf32>
    %75 = vector.shape_cast %74 : vector<32x1xf32> to vector<32xf32>
    %76 = vector.shape_cast %75 : vector<32xf32> to vector<32x1xf32>
    %cst_8 = arith.constant 0.000000e+00 : f32
    %77 = vector.shape_cast %76 : vector<32x1xf32> to vector<32x1xf32>
    %78 = vector.broadcast %77 : vector<32x1xf32> to vector<32x128xf32>
    %79 = vector.broadcast %cst_8 : f32 to vector<32x128xf32>
    %80 = arith.select %73, %78, %79 : vector<32x128xi1>, vector<32x128xf32>
    %81 = arith.addf %68, %80 : vector<32x128xf32>
    %82 = vector.extract_strided_slice %0 {offsets = [0, 6], sizes = [32, 1], strides = [1, 1]} : vector<32x8xi32> to vector<32x1xi32>
    %83 = vector.shape_cast %82 : vector<32x1xi32> to vector<32xi32>
    %84 = vector.shape_cast %83 : vector<32xi32> to vector<32x1xi32>
    %85 = vector.broadcast %84 : vector<32x1xi32> to vector<32x128xi32>
    %86 = arith.cmpi eq, %2, %85 : vector<32x128xi32>
    %87 = vector.extract_strided_slice %1 {offsets = [0, 6], sizes = [32, 1], strides = [1, 1]} : vector<32x8xf32> to vector<32x1xf32>
    %88 = vector.shape_cast %87 : vector<32x1xf32> to vector<32xf32>
    %89 = vector.shape_cast %88 : vector<32xf32> to vector<32x1xf32>
    %cst_9 = arith.constant 0.000000e+00 : f32
    %90 = vector.shape_cast %89 : vector<32x1xf32> to vector<32x1xf32>
    %91 = vector.broadcast %90 : vector<32x1xf32> to vector<32x128xf32>
    %92 = vector.broadcast %cst_9 : f32 to vector<32x128xf32>
    %93 = arith.select %86, %91, %92 : vector<32x128xi1>, vector<32x128xf32>
    %94 = arith.addf %81, %93 : vector<32x128xf32>
    %95 = vector.extract_strided_slice %0 {offsets = [0, 7], sizes = [32, 1], strides = [1, 1]} : vector<32x8xi32> to vector<32x1xi32>
    %96 = vector.shape_cast %95 : vector<32x1xi32> to vector<32xi32>
    %97 = vector.shape_cast %96 : vector<32xi32> to vector<32x1xi32>
    %98 = vector.broadcast %97 : vector<32x1xi32> to vector<32x128xi32>
    %99 = arith.cmpi eq, %2, %98 : vector<32x128xi32>
    %100 = vector.extract_strided_slice %1 {offsets = [0, 7], sizes = [32, 1], strides = [1, 1]} : vector<32x8xf32> to vector<32x1xf32>
    %101 = vector.shape_cast %100 : vector<32x1xf32> to vector<32xf32>
    %102 = vector.shape_cast %101 : vector<32xf32> to vector<32x1xf32>
    %cst_10 = arith.constant 0.000000e+00 : f32
    %103 = vector.shape_cast %102 : vector<32x1xf32> to vector<32x1xf32>
    %104 = vector.broadcast %103 : vector<32x1xf32> to vector<32x128xf32>
    %105 = vector.broadcast %cst_10 : f32 to vector<32x128xf32>
    %106 = arith.select %99, %104, %105 : vector<32x128xi1>, vector<32x128xf32>
    %107 = arith.addf %94, %106 : vector<32x128xf32>
    %108 = arith.truncf %107 : vector<32x128xf32> to vector<32x128xbf16>
    %c0_11 = arith.constant 0 : index
    %c0_12 = arith.constant 0 : index
    %109 = vector.load %arg3[%c0_11, %c0_12] : memref<128x128xbf16, #tpu.memory_space<vmem>>, vector<128x128xbf16>
    %cst_13 = arith.constant dense<0.000000e+00> : vector<32x128xf32>
    %110 = tpu.matmul %108, %109, %cst_13 {dimension_numbers = #tpu.dot_dimension_numbers<[1], [0], [0], [1], [0, 0, 1, 1], [], []>} : vector<32x128xbf16>, vector<128x128xbf16>, vector<32x128xf32> -> vector<32x128xf32>
    %cst_14 = arith.constant dense<0.000000e+00> : vector<32xf32>
    %111 = vector.multi_reduction <add>, %1, %cst_14 [1] : vector<32x8xf32> to vector<32xf32>
    %112 = vector.shape_cast %111 : vector<32xf32> to vector<32x1xf32>
    %cst_15 = arith.constant 1.000000e+00 : f32
    %113 = vector.broadcast %cst_15 : f32 to vector<32x1xf32>
    %114 = arith.maximumf %112, %113 : vector<32x1xf32>
    %cst_16 = arith.constant 1.000000e+00 : f32
    %115 = vector.broadcast %cst_16 : f32 to vector<32x1xf32>
    %116 = arith.divf %115, %114 : vector<32x1xf32>
    %117 = vector.broadcast %116 : vector<32x1xf32> to vector<32x128xf32>
    %118 = arith.mulf %110, %117 : vector<32x128xf32>
    %119 = arith.truncf %118 : vector<32x128xf32> to vector<32x128xbf16>
    %c0_17 = arith.constant 0 : index
    %c0_18 = arith.constant 0 : index
    %120 = vector.load %arg4[%c0_17, %c0_18] : memref<128x128xbf16, #tpu.memory_space<vmem>>, vector<128x128xbf16>
    %cst_19 = arith.constant dense<0.000000e+00> : vector<32x128xf32>
    %121 = tpu.matmul %119, %120, %cst_19 {dimension_numbers = #tpu.dot_dimension_numbers<[1], [0], [0], [1], [0, 0, 1, 1], [], []>} : vector<32x128xbf16>, vector<128x128xbf16>, vector<32x128xf32> -> vector<32x128xf32>
    %c0_20 = arith.constant 0 : index
    %c0_21 = arith.constant 0 : index
    %122 = vector.load %arg5[%c0_20, %c0_21] : memref<1x128xf32, #tpu.memory_space<vmem>>, vector<1x128xf32>
    %123 = vector.broadcast %122 : vector<1x128xf32> to vector<32x128xf32>
    %124 = arith.addf %121, %123 : vector<32x128xf32>
    %125 = math.tanh %124 : vector<32x128xf32>
    %126 = arith.truncf %125 : vector<32x128xf32> to vector<32x128xbf16>
    %c0_22 = arith.constant 0 : index
    %c0_23 = arith.constant 0 : index
    %127 = vector.load %arg6[%c0_22, %c0_23] : memref<32x128xbf16, #tpu.memory_space<vmem>>, vector<32x128xbf16>
    tpu.vector_store %arg6[%c0_22, %c0_23], %126 {strides = array<i32>} : memref<32x128xbf16, #tpu.memory_space<vmem>>, vector<32x128xbf16>,
    return
  }
  func.func @transform_0(%arg0: i32) -> (i32, i32) {
    %c0_i32 = arith.constant 0 : i32
    %c0_i32_0 = arith.constant 0 : i32
    return %arg0, %c0_i32 : i32, i32
  }
  func.func @transform_1(%arg0: i32) -> (i32, i32) {
    %c0_i32 = arith.constant 0 : i32
    %c0_i32_0 = arith.constant 0 : i32
    return %arg0, %c0_i32 : i32, i32
  }
  func.func @transform_2(%arg0: i32) -> (i32, i32) {
    %c0_i32 = arith.constant 0 : i32
    %c0_i32_0 = arith.constant 0 : i32
    %c0_i32_1 = arith.constant 0 : i32
    return %c0_i32, %c0_i32_0 : i32, i32
  }
  func.func @transform_3(%arg0: i32) -> (i32, i32) {
    %c0_i32 = arith.constant 0 : i32
    %c0_i32_0 = arith.constant 0 : i32
    %c0_i32_1 = arith.constant 0 : i32
    return %c0_i32, %c0_i32_0 : i32, i32
  }
  func.func @transform_4(%arg0: i32) -> (i32, i32) {
    %c0_i32 = arith.constant 0 : i32
    %c0_i32_0 = arith.constant 0 : i32
    %c0_i32_1 = arith.constant 0 : i32
    return %c0_i32, %c0_i32_0 : i32, i32
  }
  func.func @transform_5(%arg0: i32) -> (i32, i32) {
    %c0_i32 = arith.constant 0 : i32
    %c0_i32_0 = arith.constant 0 : i32
    return %arg0, %c0_i32 : i32, i32
  }
}

</mosaic_0001>

<bundles_post_ra>
// kernel: biencoder_forward.3
= control target key start
LH: loop header
LB: loop body
LE: loop exit
PB: predicated region body
PF: predicated region fallthrough
CT: control target
= control target key end

     0   :  { %10 = vsyncpa [#allocation3], 0  ;;  %s1302_s0 = inlined_call_operand.hbm [shape: s32[32,8], index: 0, kind: input, shape index: {}]   ;;  %s1303_s1 = inlined_call_operand.hbm [shape: f32[32,8], index: 1, kind: input, shape index: {}]   ;;  %s1304_s2 = inlined_call_operand.hbm [shape: bf16[128,128], index: 2, kind: input, shape index: {}]   ;;  %s1305_s3 = inlined_call_operand.hbm [shape: bf16[128,128], index: 3, kind: input, shape index: {}]   ;;  %s1306_s4 = inlined_call_operand.hbm [shape: f32[1,128], index: 4, kind: input, shape index: {}]   ;;  %s1307_s5 = inlined_call_operand.hbm [shape: bf16[32,128], index: 5, kind: output, shape index: {}]  }
   0x1   :  { %11 = vsyncpa [#allocation6], 0 }
   0x2   :  { %12 = vsyncpa [#allocation9], 0 }
   0x3   :  { %13 = vsyncpa [#allocation4], 0  ;;  %s1036_s18 = smov [#allocation5]   ;;  %s896_s22 = scalar_lea.hbm %s1303_s1, 512 }
   0x4   :  { %s31_s19 = sshll.u32 %s1036_s18, 4  ;;  %p897_p0 = scmp.ne.s32.totalorder %s1303_s1, %s896_s22  ;;  %s32_s19 = int_to_ptr.vmem [resolvable:$true] %s31_s19 }
   0x5   :  { %p900_p1 = scmp.lt.u32.totalorder %s896_s22, %s1303_s1 }
   0x7   :  { %p902_p2 = pnand %p900_p1, %p897_p0 }
   0x9   :  { %905 = shalt.err (!%p902_p2)
}
   0xa   :  { %s906_s27 = scalar_lea.vmem %s32_s19, 512  ;;  %p911_p4 = scmp.lt.s32.totalorder %s32_s19, %s32_s19 }
   0xb   :  { %p907_p3 = scmp.ne.s32.totalorder %s32_s19, %s906_s27  ;;  %p912_p5 = scmp.lt.s32.totalorder %s906_s27, %s906_s27 }
   0xd   :  { %p913_p6 = por %p912_p5, %p911_p4 }
   0xf   :  { %p914_p7 = pnand %p913_p6, %p907_p3 }
  0x11   :  { %917 = shalt.err (!%p914_p7)
}
  0x12   :  { %s1037_s28 = smov 128   ;;  %s1038_s29 = smov 8  }
  0x13   :  { %37 = dma.hbm_to_vmem [thread:$0]  %s1303_s1, 512, %s32_s19, [#allocation6], %s1037_s28, %s1037_s28, %s1038_s29  }
  0x14   :  { %s1039_s7 = smov [#allocation8]   ;;  %s1040_s9 = smov [#allocation2]  }
  0x15   :  { %s55_s8 = sshll.u32 %s1039_s7, 4  ;;  %s19_s10 = sshll.u32 %s1040_s9, 4  ;;  %s56_s8 = int_to_ptr.vmem [resolvable:$true] %s55_s8  ;;  %s20_s10 = int_to_ptr.vmem [resolvable:$true] %s19_s10 }
  0x16   :  { %s918_s13 = scalar_lea.hbm %s1305_s3, 1024 }
  0x17   :  { %p919_p8 = scmp.ne.s32.totalorder %s1305_s3, %s918_s13  ;;  %p922_p9 = scmp.lt.u32.totalorder %s918_s13, %s1305_s3 }
  0x19   :  { %p924_p10 = pnand %p922_p9, %p919_p8 }
  0x1b   :  { %927 = shalt.err (!%p924_p10)
}
  0x1c   :  { %s928_s1 = scalar_lea.vmem %s56_s8, 1024  ;;  %p933_p12 = scmp.lt.s32.totalorder %s56_s8, %s56_s8 }
  0x1d   :  { %p929_p11 = scmp.ne.s32.totalorder %s56_s8, %s928_s1  ;;  %p934_p13 = scmp.lt.s32.totalorder %s928_s1, %s928_s1 }
  0x1f   :  { %p935_p0 = por %p934_p13, %p933_p12 }
  0x21   :  { %p936_p1 = pnand %p935_p0, %p929_p11 }
  0x23   :  { %939 = shalt.err (!%p936_p1)
}
  0x24   :  { %s1041_s18 = smov 64   ;;  %s1042_s19 = smov 4  }
  0x25   :  { %61 = dma.hbm_to_vmem [thread:$0]  %s1305_s3, 1024, %s56_s8, [#allocation9], %s1041_s18, %s1041_s18, %s1042_s19  }
  0x26   :  { %s940_s24 = scalar_lea.hbm %s1302_s0, 512 }
  0x27   :  { %p941_p2 = scmp.ne.s32.totalorder %s1302_s0, %s940_s24  ;;  %p944_p3 = scmp.lt.u32.totalorder %s940_s24, %s1302_s0 }
  0x29   :  { %p946_p4 = pnand %p944_p3, %p941_p2 }
  0x2b   :  { %949 = shalt.err (!%p946_p4)
}
  0x2c   :  { %s950_s6 = scalar_lea.vmem %s20_s10, 512  ;;  %p955_p6 = scmp.lt.s32.totalorder %s20_s10, %s20_s10 }
  0x2d   :  { %p951_p5 = scmp.ne.s32.totalorder %s20_s10, %s950_s6  ;;  %p956_p7 = scmp.lt.s32.totalorder %s950_s6, %s950_s6 }
  0x2f   :  { %p957_p8 = por %p956_p7, %p955_p6 }
  0x31   :  { %p958_p9 = pnand %p957_p8, %p951_p5 }
  0x33   :  { %961 = shalt.err (!%p958_p9)
}
  0x34   :  { %25 = dma.hbm_to_vmem [thread:$0]  %s1302_s0, 512, %s20_s10, [#allocation3], %s1037_s28, %s1037_s28, %s1038_s29  }
  0x35   :  { %s1043_s8 = smov [#allocation7]   ;;  %s1044_s11 = smov [#allocation10]  }
  0x36   :  { %s43_s9 = sshll.u32 %s1043_s8, 4  ;;  %s68_s12 = sshll.u32 %s1044_s11, 4  ;;  %s44_s9 = int_to_ptr.vmem [resolvable:$true] %s43_s9  ;;  %s69_s12 = int_to_ptr.vmem [resolvable:$true] %s68_s12 }
  0x37   :  { %s962_s15 = scalar_lea.hbm %s1304_s2, 1024 }
  0x38   :  { %p963_p10 = scmp.ne.s32.totalorder %s1304_s2, %s962_s15  ;;  %p966_p11 = scmp.lt.u32.totalorder %s962_s15, %s1304_s2 }
  0x3a   :  { %p968_p12 = pnand %p966_p11, %p963_p10 }
  0x3c   :  { %971 = shalt.err (!%p968_p12)
}
  0x3d   :  { %s972_s0 = scalar_lea.vmem %s44_s9, 1024  ;;  %p977_p0 = scmp.lt.s32.totalorder %s44_s9, %s44_s9 }
  0x3e   :  { %p973_p13 = scmp.ne.s32.totalorder %s44_s9, %s972_s0  ;;  %p978_p1 = scmp.lt.s32.totalorder %s972_s0, %s972_s0 }
  0x40   :  { %p979_p2 = por %p978_p1, %p977_p0 }
  0x42   :  { %p980_p3 = pnand %p979_p2, %p973_p13 }
  0x44   :  { %983 = shalt.err (!%p980_p3)
}
  0x45   :  { %49 = dma.hbm_to_vmem [thread:$0]  %s1304_s2, 1024, %s44_s9, [#allocation6], %s1041_s18, %s1041_s18, %s1042_s19  }
  0x46   :  { %s984_s22 = scalar_lea.hbm %s1306_s4, 16 }
  0x47   :  { %p985_p4 = scmp.ne.s32.totalorder %s1306_s4, %s984_s22  ;;  %p988_p5 = scmp.lt.u32.totalorder %s984_s22, %s1306_s4 }
  0x49   :  { %p990_p6 = pnand %p988_p5, %p985_p4 }
  0x4b   :  { %993 = shalt.err (!%p990_p6)
}
  0x4c   :  { %s994_s27 = scalar_lea.vmem %s69_s12, 16  ;;  %s998_s30 = scalar_lea.vmem %s69_s12, 32 }
  0x4d   :  { %p995_p7 = scmp.ne.s32.totalorder %s69_s12, %s994_s27  ;;  %p999_p8 = scmp.lt.s32.totalorder %s69_s12, %s69_s12 }
  0x4e   :  { %p1000_p9 = scmp.lt.s32.totalorder %s998_s30, %s994_s27 }
  0x50   :  { %p1001_p10 = por %p1000_p9, %p999_p8 }
  0x52   :  { %p1002_p11 = pnand %p1001_p10, %p995_p7 }
  0x54   :  { %1005 = shalt.err (!%p1002_p11)
}
  0x55   :  { %71 = dma.hbm_to_vmem [thread:$0]  %s1306_s4, 16, %s69_s12, [#allocation9]  }
  0x56   :  { %1028 = dma.done.wait [#allocation3], 512  }
  0x57   :  { %1029 = vsyncadd [#allocation3], 4294966784 }
  0x58   :  { %1030 = dma.done.wait [#allocation6], 1536  }
  0x59   :  { %1031 = vsyncadd [#allocation6], 4294965760 }
  0x5a   :  { %1032 = dma.done.wait [#allocation9], 1040  }
  0x5b   :  { %1033 = vsyncadd [#allocation9], 4294966256  ;;  %v1045_v0 = vmov 1   ;;  %v1156_v1 = vld [vmem:[#allocation2 + $0x10] sm:$0xff]  ;;  %v1158_v2 = vld [vmem:[#allocation2] sm:$0xff]  ;;  %v1046_v6 = vmov 0   ;;  %v96_v18 = vlaneseq }
  0x5c   :  { %847 = vset.pattern.permute.xlu0 %v1045_v0  ;;  %845 = vset.pattern.permute.xlu1 %v1045_v0  ;;  %v1162_v3 = vld [vmem:[#allocation5 + $0x8] sm:$0xff]  ;;  %v1168_v5 = vld [vmem:[#allocation2 + $0x18] sm:$0xff]  ;;  %v1176_v7 = vld [vmem:[#allocation5] sm:$0xff]  ;;  %v1047_v10 = vmov 2   ;;  %v1048_v11 = vmov 3   ;;  %v1049_v12 = vmov 4  }
  0x5d   :  { %149 = vperm.xlu0 %847, %v1156_v1   ;;  %143 = vperm.xlu1 %845, %v1158_v2   ;;  %v1164_v4 = vld [vmem:[#allocation2 + $0x8] sm:$0xff]  ;;  %v1180_v8 = vld [vmem:[#allocation5 + $0x18] sm:$0xff]  ;;  %v1182_v9 = vld [vmem:[#allocation5 + $0x10] sm:$0xff]  ;;  %v1050_v13 = vmov 5   ;;  %v1051_v14 = vmov 6   ;;  %v1052_v15 = vmov 7  }
  0x5e   :  { %v864_v16 = vld [vmem:[#allocation7] sm:$0xff]   ;;  %v865_v17 = vld [vmem:[#allocation7 + $0x8] sm:$0xff]   ;;  %v866_v21 = vld [vmem:[#allocation7 + $0x10] sm:$0xff]   ;;  %v1233_v22 = vand.u32 127, %v96_v18  ;;  %vm537_vm6 = vcmask 64512   ;;  %s1053_s4 = smov [#allocation11]  }
  0x5f   :  { %787 = vmatprep.subr.bf16.mxu0 %v864_v16  ;;  %v867_v26 = vld [vmem:[#allocation7 + $0x18] sm:$0xff]   ;;  %v868_v29 = vld [vmem:[#allocation7 + $0x20] sm:$0xff]   ;;  %v869_v32 = vld [vmem:[#allocation7 + $0x28] sm:$0xff]   ;;  %v538_v50 = vsel %vm537_vm6, %v1176_v7, 0.0  ;;  %v544_v52 = vsel %vm537_vm6, %v1182_v9, 0.0  ;;  %v547_v57 = vsel %vm537_vm6, %v1180_v8, 0.0 }
  0x60   :  { %788 = vmatpush3.bf16.msra.mxu0 %v864_v16  ;;  %v870_v37 = vld [vmem:[#allocation7 + $0x30] sm:$0xff]   ;;  %v871_v41 = vld [vmem:[#allocation7 + $0x38] sm:$0xff]   ;;  %v872_v48 = vld [vmem:[#allocation8] sm:$0xff]   ;;  %s717_s3 = sshll.u32 %s1053_s4, 4  ;;  %s718_s3 = int_to_ptr.vmem [resolvable:$true] %s717_s3 }
  0x61   :  { %163 = vperm.xlu0 %847, %v1162_v3   ;;  %146 = vperm.xlu1 %845, %v1164_v4   ;;  %v873_v49 = vld [vmem:[#allocation8 + $0x8] sm:$0xff]   ;;  %s1006_s7 = scalar_lea.vmem %s718_s3, 256  ;;  %p1011_p13 = scmp.lt.s32.totalorder %s718_s3, %s718_s3 }
  0x62   :  { %789 = vmatprep.subr.bf16.mxu0 %v865_v17  ;;  %807 = vmatprep.subr.bf16.mxu1 %v872_v48  ;;  %p1007_p12 = scmp.ne.s32.totalorder %s718_s3, %s1006_s7  ;;  %p1012_p0 = scmp.lt.s32.totalorder %s1006_s7, %s1006_s7 }
  0x63   :  { %808 = vmatpush3.bf16.msra.mxu1 %v872_v48 }
  0x64   :  { %790 = vmatpush3.bf16.msra.mxu0 %v865_v17  ;;  %809 = vmatprep.subr.bf16.mxu1 %v873_v49  ;;  %p1013_p1 = por %p1012_p0, %p1011_p13 }
  0x65   :  { %849 = vset.pattern.permute.xlu0 %v1046_v6  ;;  %846 = vset.pattern.permute.xlu1 %v1046_v6 }
  0x66   :  { %99 = vperm.xlu0 %849, %v1158_v2   ;;  %108 = vperm.xlu1 %846, %v1168_v5   ;;  %p1014_p2 = pnand %p1013_p1, %p1007_p12 }
  0x67   :  { %791 = vmatprep.subr.bf16.mxu0 %v866_v21  ;;  %810 = vmatpush3.bf16.msra.mxu1 %v873_v49 }
  0x68   :  { %792 = vmatpush3.bf16.msra.mxu0 %v866_v21 }
  0x69   :  { %793 = vmatprep.subr.bf16.mxu0 %v867_v26 }
  0x6a   :  { %102 = vperm.xlu0 %849, %v1164_v4   ;;  %121 = vperm.xlu1 %846, %v1162_v3  }
  0x6c   :  { %794 = vmatpush3.bf16.msra.mxu0 %v867_v26 }
  0x6d   :  { %795 = vmatprep.subr.bf16.mxu0 %v868_v29 }
  0x6e   :  { %105 = vperm.xlu0 %849, %v1156_v1   ;;  %848 = vset.pattern.permute.xlu1 %v1045_v0 }
  0x6f   :  { %152 = vperm.xlu1 %848, %v1168_v5  }
  0x70   :  { %796 = vmatpush3.bf16.msra.mxu0 %v868_v29 }
  0x71   :  { %797 = vmatprep.subr.bf16.mxu0 %v869_v32 }
  0x72   :  { %116 = vperm.xlu0 %849, %v1176_v7  }
  0x73   :  { %159 = vperm.xlu1 %848, %v1176_v7  }
  0x74   :  { %798 = vmatpush3.bf16.msra.mxu0 %v869_v32  ;;  %v877_v32 = vld [vmem:[#allocation8 + $0x28] sm:$0xff]  }
  0x75   :  { %799 = vmatprep.subr.bf16.mxu0 %v870_v37 }
  0x76   :  { %131 = vperm.xlu0 %849, %v1180_v8  }
  0x77   :  { %850 = vset.pattern.permute.xlu1 %v1046_v6  ;;  %v874_v6 = vld [vmem:[#allocation8 + $0x10] sm:$0xff]  }
  0x78   :  { %126 = vperm.xlu1 %850, %v1182_v9   ;;  %800 = vmatpush3.bf16.msra.mxu0 %v870_v37 }
  0x79   :  { %801 = vmatprep.subr.bf16.mxu0 %v871_v41  ;;  %811 = vmatprep.subr.bf16.mxu1 %v874_v6 }
  0x7a   :  { %852 = vset.pattern.permute.xlu0 %v1047_v10  ;;  %812 = vmatpush3.bf16.msra.mxu1 %v874_v6 }
  0x7b   :  { %183 = vperm.xlu0 %852, %v1158_v2  }
  0x7c   :  { %851 = vset.pattern.permute.xlu1 %v1045_v0  ;;  %802 = vmatpush3.bf16.msra.mxu0 %v871_v41 }
  0x7d   :  { %167 = vperm.xlu1 %851, %v1182_v9  }
  0x7f   :  { %192 = vperm.xlu0 %852, %v1168_v5  }
  0x81   :  { %171 = vperm.xlu1 %851, %v1180_v8  }
  0x83   :  { %203 = vperm.xlu0 %852, %v1162_v3  }
  0x85   :  { %853 = vset.pattern.permute.xlu1 %v1047_v10 }
  0x86   :  { %186 = vperm.xlu1 %853, %v1164_v4  }
  0x87   :  { %211 = vperm.xlu0 %852, %v1180_v8  }
  0x8a   :  { %189 = vperm.xlu1 %853, %v1156_v1  }
  0x8b   :  { %855 = vset.pattern.permute.xlu0 %v1048_v11 }
  0x8c   :  { %226 = vperm.xlu0 %855, %v1164_v4  }
  0x8e   :  { %199 = vperm.xlu1 %853, %v1176_v7  }
  0x90   :  { %239 = vperm.xlu0 %855, %v1176_v7  }
  0x92   :  { %207 = vperm.xlu1 %853, %v1182_v9  }
  0x94   :  { %247 = vperm.xlu0 %855, %v1182_v9  }
  0x96   :  { %854 = vset.pattern.permute.xlu1 %v1048_v11 }
  0x97   :  { %223 = vperm.xlu1 %854, %v1158_v2  }
  0x98   :  { %856 = vset.pattern.permute.xlu0 %v1049_v12 }
  0x99   :  { %263 = vperm.xlu0 %856, %v1158_v2  }
  0x9b   :  { %229 = vperm.xlu1 %854, %v1156_v1  }
  0x9d   :  { %272 = vperm.xlu0 %856, %v1168_v5  }
  0x9f   :  { %232 = vperm.xlu1 %854, %v1168_v5  }
  0xa1   :  { %283 = vperm.xlu0 %856, %v1162_v3  }
  0xa3   :  { %243 = vperm.xlu1 %854, %v1162_v3  }
  0xa5   :  { %291 = vperm.xlu0 %856, %v1180_v8  }
  0xa7   :  { %251 = vperm.xlu1 %854, %v1180_v8  }
  0xa9   :  { %859 = vset.pattern.permute.xlu0 %v1050_v13 }
  0xaa   :  { %306 = vperm.xlu0 %859, %v1164_v4  }
  0xab   :  { %857 = vset.pattern.permute.xlu1 %v1049_v12 }
  0xac   :  { %266 = vperm.xlu1 %857, %v1164_v4  }
  0xae   :  { %319 = vperm.xlu0 %859, %v1176_v7  }
  0xb0   :  { %269 = vperm.xlu1 %857, %v1156_v1  }
  0xb2   :  { %327 = vperm.xlu0 %859, %v1182_v9  }
  0xb4   :  { %279 = vperm.xlu1 %857, %v1176_v7  }
  0xb6   :  { %860 = vset.pattern.permute.xlu0 %v1051_v14 }
  0xb7   :  { %343 = vperm.xlu0 %860, %v1158_v2  }
  0xb8   :  { %287 = vperm.xlu1 %857, %v1182_v9  }
  0xbb   :  { %352 = vperm.xlu0 %860, %v1168_v5  }
  0xbc   :  { %858 = vset.pattern.permute.xlu1 %v1050_v13 }
  0xbd   :  { %303 = vperm.xlu1 %858, %v1158_v2  }
  0xbf   :  { %363 = vperm.xlu0 %860, %v1162_v3  }
  0xc1   :  { %309 = vperm.xlu1 %858, %v1156_v1  }
  0xc3   :  { %371 = vperm.xlu0 %860, %v1180_v8  }
  0xc5   :  { %312 = vperm.xlu1 %858, %v1168_v5  }
  0xc7   :  { %863 = vset.pattern.permute.xlu0 %v1052_v15 }
  0xc8   :  { %386 = vperm.xlu0 %863, %v1164_v4  }
  0xc9   :  { %323 = vperm.xlu1 %858, %v1162_v3  }
  0xcc   :  { %399 = vperm.xlu0 %863, %v1176_v7  }
  0xcd   :  { %331 = vperm.xlu1 %858, %v1180_v8  }
  0xd0   :  { %407 = vperm.xlu0 %863, %v1182_v9  }
  0xd1   :  { %861 = vset.pattern.permute.xlu1 %v1051_v14 }
  0xd2   :  { %346 = vperm.xlu1 %861, %v1164_v4  }
  0xd6   :  { %349 = vperm.xlu1 %861, %v1156_v1  }
  0xda   :  { %359 = vperm.xlu1 %861, %v1176_v7  }
  0xdc   :  { %v144_v19 = vpop.permute.xlu1 %143  ;;  %v1230_v20 = vpop.permute.xlu0 %149 }
  0xdd   :  { %vm154_vm3 = vcmp.eq.s32.totalorder %v1233_v22, %v144_v19  ;;  %vm156_vm7 = vcmp.eq.s32.totalorder %v1233_v22, %v1230_v20 }
  0xde   :  { %367 = vperm.xlu1 %861, %v1182_v9   ;;  %v875_v9 = vld [vmem:[#allocation8 + $0x18] sm:$0xff]  }
  0xdf   :  { %813 = vmatprep.subr.bf16.mxu1 %v875_v9 }
  0xe0   :  { %v147_v23 = vpop.permute.xlu1 %146  ;;  %v164_v24 = vpop.permute.xlu0 %163  ;;  %814 = vmatpush3.bf16.msra.mxu1 %v875_v9 }
  0xe1   :  { %vm155_vm0 = vcmp.eq.s32.totalorder %v1233_v22, %v147_v23 }
  0xe2   :  { %v175_v25 = vsel %vm155_vm0, %v164_v24, 0.0  ;;  %862 = vset.pattern.permute.xlu1 %v1052_v15  ;;  %v541_v15 = vsel %vm537_vm6, %v1162_v3, 0.0 }
  0xe3   :  { %383 = vperm.xlu1 %862, %v1158_v2  }
  0xe5   :  { %v100_v27 = vpop.permute.xlu0 %99  ;;  %v109_v28 = vpop.permute.xlu1 %108 }
  0xe6   :  { %vm110_vm2 = vcmp.eq.s32.totalorder %v1233_v22, %v100_v27  ;;  %vm113_vm4 = vcmp.eq.s32.totalorder %v1233_v22, %v109_v28 }
  0xe7   :  { %389 = vperm.xlu1 %862, %v1156_v1  }
  0xe9   :  { %v103_v30 = vpop.permute.xlu0 %102  ;;  %v122_v31 = vpop.permute.xlu1 %121 }
  0xea   :  { %vm111_vm1 = vcmp.eq.s32.totalorder %v1233_v22, %v103_v30 }
  0xeb   :  { %v135_v33 = vsel %vm111_vm1, %v122_v31, 0.0  ;;  %392 = vperm.xlu1 %862, %v1168_v5   ;;  %v876_v31 = vld [vmem:[#allocation8 + $0x20] sm:$0xff]  }
  0xec   :  { %v179_v34 = vadd.f32 %v175_v25, %v135_v33  ;;  %815 = vmatprep.subr.bf16.mxu1 %v876_v31 }
  0xed   :  { %v106_v35 = vpop.permute.xlu0 %105  ;;  %816 = vmatpush3.bf16.msra.mxu1 %v876_v31 }
  0xee   :  { %v153_v36 = vpop.permute.xlu1 %152  ;;  %vm112_vm5 = vcmp.eq.s32.totalorder %v1233_v22, %v106_v35  ;;  %817 = vmatprep.subr.bf16.mxu1 %v877_v32 }
  0xef   :  { %403 = vperm.xlu1 %862, %v1162_v3   ;;  %539 = vadd.xlane.f32.xlu0 %v538_v50  ;;  %vm157_vm8 = vcmp.eq.s32.totalorder %v1233_v22, %v153_v36 }
  0xf1   :  { %v117_v38 = vpop.permute.xlu0 %116  ;;  %818 = vmatpush3.bf16.msra.mxu1 %v877_v32 }
  0xf2   :  { %v134_v39 = vsel %vm110_vm2, %v117_v38, 0.0  ;;  %v160_v40 = vpop.permute.xlu1 %159 }
  0xf3   :  { %v174_v42 = vsel %vm154_vm3, %v160_v40, 0.0  ;;  %411 = vperm.xlu1 %862, %v1180_v8   ;;  %545 = vadd.xlane.f32.xlu0 %v544_v52 }
  0xf4   :  { %v178_v43 = vadd.f32 %v174_v42, %v134_v39 }
  0xf5   :  { %v132_v44 = vpop.permute.xlu0 %131 }
  0xf6   :  { %v137_v45 = vsel %vm113_vm4, %v132_v44, 0.0 }
  0xf7   :  { %v127_v46 = vpop.permute.xlu1 %126  ;;  %548 = vadd.xlane.f32.xlu0 %v547_v57 }
  0xf8   :  { %v136_v47 = vsel %vm112_vm5, %v127_v46, 0.0 }
  0xfa   :  { %v184_v51 = vpop.permute.xlu0 %183 }
  0xfb   :  { %vm194_vm11 = vcmp.eq.s32.totalorder %v1233_v22, %v184_v51 }
  0xfc   :  { %v168_v53 = vpop.permute.xlu1 %167 }
  0xfd   :  { %v176_v54 = vsel %vm156_vm7, %v168_v53, 0.0 }
  0xfe   :  { %v180_v55 = vadd.f32 %v176_v54, %v136_v47  ;;  %v193_v56 = vpop.permute.xlu0 %192 }
  0xff   :  { %vm197_vm9 = vcmp.eq.s32.totalorder %v1233_v22, %v193_v56 }
 0x100   :  { %v172_v58 = vpop.permute.xlu1 %171 }
 0x101   :  { %v177_v59 = vsel %vm157_vm8, %v172_v58, 0.0 }
 0x102   :  { %v181_v60 = vadd.f32 %v177_v59, %v137_v45  ;;  %v204_v61 = vpop.permute.xlu0 %203 }
 0x105   :  { %v187_v62 = vpop.permute.xlu1 %186 }
 0x106   :  { %vm195_vm10 = vcmp.eq.s32.totalorder %v1233_v22, %v187_v62  ;;  %v212_v63 = vpop.permute.xlu0 %211 }
 0x107   :  { %v215_v0 = vsel %vm195_vm10, %v204_v61, 0.0  ;;  %v217_v1 = vsel %vm197_vm9, %v212_v63, 0.0 }
 0x108   :  { %v219_v2 = vadd.f32 %v215_v0, %v179_v34  ;;  %v221_v4 = vadd.f32 %v217_v1, %v181_v60 }
 0x109   :  { %v190_v5 = vpop.permute.xlu1 %189 }
 0x10a   :  { %vm196_vm12 = vcmp.eq.s32.totalorder %v1233_v22, %v190_v5 }
 0x10b   :  { %v227_v11 = vpop.permute.xlu0 %226 }
 0x10c   :  { %vm235_vm15 = vcmp.eq.s32.totalorder %v1233_v22, %v227_v11 }
 0x10d   :  { %v200_v7 = vpop.permute.xlu1 %199 }
 0x10e   :  { %v214_v8 = vsel %vm194_vm11, %v200_v7, 0.0 }
 0x10f   :  { %v218_v10 = vadd.f32 %v214_v8, %v178_v43  ;;  %v240_v16 = vpop.permute.xlu0 %239 }
 0x111   :  { %v208_v12 = vpop.permute.xlu1 %207 }
 0x112   :  { %v216_v13 = vsel %vm196_vm12, %v208_v12, 0.0 }
 0x113   :  { %v220_v14 = vadd.f32 %v216_v13, %v180_v55  ;;  %v248_v21 = vpop.permute.xlu0 %247 }
 0x116   :  { %v224_v17 = vpop.permute.xlu1 %223 }
 0x117   :  { %vm234_vm13 = vcmp.eq.s32.totalorder %v1233_v22, %v224_v17  ;;  %542 = vadd.xlane.f32.xlu1 %v541_v15 }
 0x118   :  { %v254_v18 = vsel %vm234_vm13, %v240_v16, 0.0  ;;  %v264_v27 = vpop.permute.xlu0 %263 }
 0x119   :  { %v1262_v19 = vadd.f32 %v254_v18, %v218_v10  ;;  %vm274_vm2 = vcmp.eq.s32.totalorder %v1233_v22, %v264_v27 }
 0x11a   :  { %v230_v20 = vpop.permute.xlu1 %229 }
 0x11b   :  { %vm236_vm14 = vcmp.eq.s32.totalorder %v1233_v22, %v230_v20 }
 0x11c   :  { %v256_v23 = vsel %vm236_vm14, %v248_v21, 0.0  ;;  %v273_v34 = vpop.permute.xlu0 %272 }
 0x11d   :  { %v1265_v24 = vadd.f32 %v256_v23, %v220_v14  ;;  %vm277_vm3 = vcmp.eq.s32.totalorder %v1233_v22, %v273_v34 }
 0x11e   :  { %v233_v25 = vpop.permute.xlu1 %232 }
 0x11f   :  { %vm237_vm0 = vcmp.eq.s32.totalorder %v1233_v22, %v233_v25 }
 0x120   :  { %v284_v37 = vpop.permute.xlu0 %283 }
 0x122   :  { %v244_v26 = vpop.permute.xlu1 %243 }
 0x123   :  { %v255_v3 = vsel %vm235_vm15, %v244_v26, 0.0 }
 0x124   :  { %v259_v28 = vadd.f32 %v255_v3, %v219_v2  ;;  %v292_v39 = vpop.permute.xlu0 %291 }
 0x125   :  { %v297_v61 = vsel %vm277_vm3, %v292_v39, 0.0 }
 0x126   :  { %v252_v29 = vpop.permute.xlu1 %251 }
 0x127   :  { %v257_v30 = vsel %vm237_vm0, %v252_v29, 0.0 }
 0x128   :  { %v261_v33 = vadd.f32 %v257_v30, %v221_v4 }
 0x129   :  { %v307_v41 = vpop.permute.xlu0 %306 }
 0x12a   :  { %vm315_vm4 = vcmp.eq.s32.totalorder %v1233_v22, %v307_v41  ;;  %v301_v8 = vadd.f32 %v297_v61, %v261_v33 }
 0x12b   :  { %v267_v35 = vpop.permute.xlu1 %266 }
 0x12c   :  { %vm275_vm1 = vcmp.eq.s32.totalorder %v1233_v22, %v267_v35 }
 0x12d   :  { %v320_v43 = vpop.permute.xlu0 %319  ;;  %v295_v59 = vsel %vm275_vm1, %v284_v37, 0.0  ;;  %v879_v37 = vld [vmem:[#allocation8 + $0x38] sm:$0xff]  }
 0x12e   :  { %v299_v63 = vadd.f32 %v295_v59, %v259_v28  ;;  %v739_v59 = vld [vmem:[#allocation10] ss:$0 sm:$0xff] }
 0x12f   :  { %v270_v36 = vpop.permute.xlu1 %269 }
 0x130   :  { %vm276_vm6 = vcmp.eq.s32.totalorder %v1233_v22, %v270_v36  ;;  %v878_v36 = vld [vmem:[#allocation8 + $0x30] sm:$0xff]  }
 0x131   :  { %v328_v46 = vpop.permute.xlu0 %327  ;;  %819 = vmatprep.subr.bf16.mxu1 %v878_v36 }
 0x132   :  { %820 = vmatpush3.bf16.msra.mxu1 %v878_v36 }
 0x133   :  { %v280_v38 = vpop.permute.xlu1 %279  ;;  %821 = vmatprep.subr.bf16.mxu1 %v879_v37 }
 0x134   :  { %v294_v62 = vsel %vm274_vm2, %v280_v38, 0.0 }
 0x135   :  { %v298_v5 = vadd.f32 %v294_v62, %v1262_v19 }
 0x136   :  { %v344_v48 = vpop.permute.xlu0 %343  ;;  %822 = vmatpush3.bf16.msra.mxu1 %v879_v37 }
 0x137   :  { %v288_v40 = vpop.permute.xlu1 %287  ;;  %vm354_vm7 = vcmp.eq.s32.totalorder %v1233_v22, %v344_v48 }
 0x138   :  { %v296_v1 = vsel %vm276_vm6, %v288_v40, 0.0 }
 0x139   :  { %v300_v11 = vadd.f32 %v296_v1, %v1265_v24 }
 0x13a   :  { %v353_v51 = vpop.permute.xlu0 %352 }
 0x13b   :  { %vm357_vm12 = vcmp.eq.s32.totalorder %v1233_v22, %v353_v51 }
 0x13c   :  { %v304_v42 = vpop.permute.xlu1 %303 }
 0x13d   :  { %vm314_vm5 = vcmp.eq.s32.totalorder %v1233_v22, %v304_v42 }
 0x13e   :  { %v364_v53 = vpop.permute.xlu0 %363  ;;  %v334_v2 = vsel %vm314_vm5, %v320_v43, 0.0 }
 0x13f   :  { %v338_v12 = vadd.f32 %v334_v2, %v298_v5 }
 0x140   :  { %v310_v44 = vpop.permute.xlu1 %309 }
 0x141   :  { %vm316_vm10 = vcmp.eq.s32.totalorder %v1233_v22, %v310_v44 }
 0x142   :  { %v372_v56 = vpop.permute.xlu0 %371  ;;  %v336_v14 = vsel %vm316_vm10, %v328_v46, 0.0 }
 0x143   :  { %v377_v21 = vsel %vm357_vm12, %v372_v56, 0.0  ;;  %v340_v25 = vadd.f32 %v336_v14, %v300_v11 }
 0x144   :  { %v313_v45 = vpop.permute.xlu1 %312 }
 0x145   :  { %vm317_vm9 = vcmp.eq.s32.totalorder %v1233_v22, %v313_v45 }
 0x147   :  { %v387_v57 = vpop.permute.xlu0 %386 }
 0x148   :  { %v324_v47 = vpop.permute.xlu1 %323  ;;  %vm395_vm13 = vcmp.eq.s32.totalorder %v1233_v22, %v387_v57 }
 0x149   :  { %v335_v4 = vsel %vm315_vm4, %v324_v47, 0.0 }
 0x14a   :  { %v339_v13 = vadd.f32 %v335_v4, %v299_v63 }
 0x14b   :  { %v400_v0 = vpop.permute.xlu0 %399 }
 0x14c   :  { %v332_v49 = vpop.permute.xlu1 %331 }
 0x14d   :  { %v337_v6 = vsel %vm317_vm9, %v332_v49, 0.0 }
 0x14e   :  { %v341_v15 = vadd.f32 %v337_v6, %v301_v8 }
 0x14f   :  { %v408_v19 = vpop.permute.xlu0 %407 }
 0x150   :  { %v381_v28 = vadd.f32 %v377_v21, %v341_v15 }
 0x151   :  { %v347_v50 = vpop.permute.xlu1 %346 }
 0x152   :  { %vm355_vm8 = vcmp.eq.s32.totalorder %v1233_v22, %v347_v50 }
 0x153   :  { %v375_v9 = vsel %vm355_vm8, %v364_v53, 0.0 }
 0x154   :  { %v379_v17 = vadd.f32 %v375_v9, %v339_v13 }
 0x155   :  { %v350_v52 = vpop.permute.xlu1 %349 }
 0x156   :  { %vm356_vm14 = vcmp.eq.s32.totalorder %v1233_v22, %v350_v52 }
 0x159   :  { %v360_v54 = vpop.permute.xlu1 %359 }
 0x15a   :  { %v374_v10 = vsel %vm354_vm7, %v360_v54, 0.0 }
 0x15b   :  { %v378_v18 = vadd.f32 %v374_v10, %v338_v12 }
 0x15d   :  { %v368_v55 = vpop.permute.xlu1 %367 }
 0x15e   :  { %v376_v23 = vsel %vm356_vm14, %v368_v55, 0.0 }
 0x15f   :  { %v380_v29 = vadd.f32 %v376_v23, %v340_v25 }
 0x162   :  { %v384_v58 = vpop.permute.xlu1 %383 }
 0x163   :  { %vm394_vm11 = vcmp.eq.s32.totalorder %v1233_v22, %v384_v58 }
 0x164   :  { %v414_v16 = vsel %vm394_vm11, %v400_v0, 0.0 }
 0x165   :  { %v418_v26 = vadd.f32 %v414_v16, %v378_v18 }
 0x166   :  { %v390_v60 = vpop.permute.xlu1 %389 }
 0x167   :  { %vm396_vm15 = vcmp.eq.s32.totalorder %v1233_v22, %v390_v60 }
 0x168   :  { %v416_v27 = vsel %vm396_vm15, %v408_v19, 0.0 }
 0x169   :  { %v420_v33 = vadd.f32 %v416_v27, %v380_v29 }
 0x16a   :  { %v393_v7 = vpop.permute.xlu1 %392 }
 0x16b   :  { %vm397_vm0 = vcmp.eq.s32.totalorder %v1233_v22, %v393_v7 }
 0x16e   :  { %v404_v20 = vpop.permute.xlu1 %403 }
 0x16f   :  { %v415_v24 = vsel %vm395_vm13, %v404_v20, 0.0 }
 0x170   :  { %v419_v3 = vadd.f32 %v415_v24, %v379_v17 }
 0x172   :  { %v412_v30 = vpop.permute.xlu1 %411  ;;  %v422_v31 = vpack.c.bf16 %v419_v3, %v418_v26 }
 0x173   :  { %v417_v32 = vsel %vm397_vm0, %v412_v30, 0.0 }
 0x174   :  { %v421_v34 = vadd.f32 %v417_v32, %v381_v28  ;;  %803 = vmatprep.mubr.bf16.mxu0 %v422_v31 }
 0x176   :  { %v423_v35 = vpack.c.bf16 %v421_v34, %v420_v33 }
 0x178   :  { %804 = vmatmul.mubr.bf16.vlgmr.msra.gmra.mrb[0].mxu0 %v423_v35 }
 0x17c   :  { %v540_v38 = vpop.xlane.xlu0 %539 }
 0x17d   :  { %v550_v44 = vmax.f32 %v540_v38, 1.0 }
 0x180   :  { %v546_v39 = vpop.xlane.xlu0 %545 }
 0x181   :  { %v552_v42 = vmax.f32 %v546_v39, 1.0 }
 0x183   :  { %880 = vrcp.f32 %v552_v42 }
 0x184   :  { %v549_v40 = vpop.xlane.xlu0 %548 }
 0x185   :  { %v553_v22 = vmax.f32 %v549_v40, 1.0 }
 0x187   :  { %882 = vrcp.f32 %v553_v22 }
 0x18d   :  { %v881_v45 = vpop.eup %880 }
 0x191   :  { %v883_v46 = vpop.eup %882 }
 0x1a4   :  { %v543_v41 = vpop.xlane.xlu1 %542 }
 0x1a5   :  { %v551_v43 = vmax.f32 %v543_v41, 1.0 }
 0x1a7   :  { %884 = vrcp.f32 %v551_v43 }
 0x1a8   :  { %886 = vrcp.f32 %v550_v44 }
 0x1b1   :  { %v885_v48 = vpop.eup %884 }
 0x1b2   :  { %v887_v51 = vpop.eup %886 }
 0x24b   :  { %v805_v47 = vpop.f32.mrb[0].mxu0 }
 0x24c   :  { %v522_v49 = vpop.f32.mrb[1].mxu0  ;;  %v564_v52 = vmul.f32 %v881_v45, %v805_v47 }
 0x24d   :  { %v806_v50 = vpop.f32.mrb[2].mxu0  ;;  %v562_v55 = vmul.f32 %v887_v51, %v522_v49 }
 0x24e   :  { %v565_v53 = vmul.f32 %v883_v46, %v806_v50  ;;  %v525_v54 = vpop.f32.mrb[3].mxu0 }
 0x24f   :  { %v563_v56 = vmul.f32 %v885_v48, %v525_v54 }
 0x250   :  { %v567_v57 = vpack.c.bf16 %v565_v53, %v564_v52 }
 0x251   :  { %v566_v58 = vpack.c.bf16 %v563_v56, %v562_v55 }
 0x253   :  { %823 = vmatprep.mubr.bf16.mxu1 %v566_v58 }
 0x254   :  { %824 = vmatmul.mubr.bf16.vlgmr.msra.gmra.mrb[0].mxu1 %v567_v57 }
 0x327   :  { %v825_v60 = vpop.f32.mrb[0].mxu1 }
 0x328   :  { %v682_v61 = vadd.f32 %v825_v60, %v739_v59  ;;  %v673_v62 = vpop.f32.mrb[1].mxu1 }
 0x329   :  { %v674_v63 = vadd.f32 %v739_v59, %v673_v62  ;;  %v826_v0 = vpop.f32.mrb[2].mxu1 }
 0x32a   :  { %888 = vtanh.f32 %v682_v61  ;;  %v685_v1 = vadd.f32 %v826_v0, %v739_v59  ;;  %v676_v2 = vpop.f32.mrb[3].mxu1 }
 0x32b   :  { %890 = vtanh.f32 %v674_v63  ;;  %v677_v4 = vadd.f32 %v739_v59, %v676_v2 }
 0x32c   :  { %892 = vtanh.f32 %v685_v1 }
 0x32d   :  { %894 = vtanh.f32 %v677_v4 }
 0x334   :  { %v889_v5 = vpop.eup %888 }
 0x335   :  { %v891_v6 = vpop.eup %890 }
 0x336   :  { %v893_v7 = vpop.eup %892 }
 0x337   :  { %v895_v8 = vpop.eup %894  ;;  %v764_v9 = vpack.c.bf16 %v893_v7, %v889_v5 }
 0x338   :  { %v759_v10 = vpack.c.bf16 %v895_v8, %v891_v6 }
 0x339   :  { %766 = vst [vmem:[#allocation11 + $0x8] sm:$0xff] %v764_v9  }
 0x33a   :  { %760 = vst [vmem:[#allocation11] sm:$0xff] %v759_v10  }
 0x33b   :  { %1017 = shalt.err (!%p1014_p2)
}
 0x33c   :  { %s1018_s11 = scalar_lea.hbm %s1307_s5, 256 }
 0x33d   :  { %p1019_p3 = scmp.ne.s32.totalorder %s1307_s5, %s1018_s11  ;;  %p1022_p4 = scmp.lt.u32.totalorder %s1018_s11, %s1307_s5 }
 0x33f   :  { %p1024_p5 = pnand %p1022_p4, %p1019_p3 }
 0x341   :  { %1027 = shalt.err (!%p1024_p5)
}
 0x342   :  { %723 = dma.vmem_to_hbm [thread:$0]  %s718_s3, 256, %s1307_s5, [#allocation4], %s1041_s18, %s1041_s18, %s1042_s19  }
 0x343   :  { %1034 = dma.done.wait [#allocation4], 256  }
 0x344   :  { %1035 = vsyncadd [#allocation4], 4294967040 }
 0x345   :  { %727 = vsyncpa [#allocation3], 1 }
 0x346   :  { %728 = vsyncpa [#allocation6], 1 }
 0x347   :  { %729 = vsyncpa [#allocation9], 1 }
 0x348   :  { %730 = vsyncpa [#allocation4], 1 }

// kernel: biencoder_forward.5
= control target key start
LH: loop header
LB: loop body
LE: loop exit
PB: predicated region body
PF: predicated region fallthrough
CT: control target
= control target key end

     0   :  { %10 = vsyncpa [#allocation8], 0  ;;  %s1631_s0 = inlined_call_operand.hbm [shape: bf16[32,128], index: 0, kind: input, shape index: {}]   ;;  %s1632_s1 = inlined_call_operand.hbm [shape: bf16[128,256], index: 1, kind: input, shape index: {}]   ;;  %s1633_s2 = inlined_call_operand.hbm [shape: f32[1,1], index: 2, kind: output, shape index: {0}]   ;;  %s1634_s3 = inlined_call_operand.hbm [shape: s32[32,1], index: 3, kind: output, shape index: {1}]   ;;  %s1635_s4 = inlined_call_operand.hbm [shape: s32[32,1], index: 4, kind: output, shape index: {2}]  }
   0x1   :  { %11 = vsyncpa [#allocation12], 0 }
   0x2   :  { %13 = vsyncpa [#allocation12 + $0x1], 0 }
   0x3   :  { %14 = vsyncpa [#allocation10], 0 }
   0x4   :  { %15 = vsyncpa [#allocation9], 0 }
   0x5   :  { %16 = vsyncpa [#allocation16], 0  ;;  %s1164_s15 = smov 0   ;;  %s1166_s16 = smov 0  }
   0x6   :  { %s1168_s17 = smov 0   ;;  %s1170_s18 = smov 0  }
   0x7 LB: > { %s1183_s19 = sadd.s32 4294967295, %s1123_s18   ;;  %s1186_s20 = sadd.s32 1, %s1123_s18   ;;  %s1123_s18 = sphi %s1170_s18, %s1654_s18   ;;  %s1119_s17 = sphi %s1168_s17, %s1653_s17   ;;  %s1115_s16 = sphi %s1166_s16, %s1652_s16   ;;  %s1111_s15 = sphi %s1164_s15, %s1651_s15  }
   0x8   : > { %s47_s21 = ssub.s32 %s1123_s18, %s1186_s20  ;;  %s50_s22 = sadd.s32 1, %s1119_s17 }
   0x9   : > { %p48_p0 = scmp.eq.s32.totalorder %s47_s21, 0  ;;  %p57_p1 = scmp.ne.s32.totalorder %s1119_s17, %s1115_s16 }
   0xa   : > { %p58_p2 = scmp.eq.s32.totalorder %s1123_s18, 0  ;;  %p63_p3 = scmp.ne.s32.totalorder %s1115_s16, %s1111_s15 }
   0xb   : > { %s1196_s23 = scalar_select %p48_p0, %s1119_s17, %s50_s22  }
   0xc   : > { %p1198_p4 = por %p58_p2, %p57_p1  ;;  %p1636_p5 = scmp.eq.s32.totalorder %s1183_s19, 0 }
   0xd   : > { %p774_p6 = scmp.ge.s32.totalorder %s1123_s18, 1  ;;  %p137_p7 = scmp.lt.s32.totalorder %s1123_s18, 3 }
   0xe   : > { %p1207_p8 = por %p1636_p5, %p63_p3  ;;  %s1125_s27 = smov [#allocation7]  }
   0xf   : > { %p1212_p10 = pnand %p774_p6, %p137_p7  ;;  %s149_s28 = sshll.u32 %s1125_s27, 4  ;;  %s150_s28 = int_to_ptr.vmem [resolvable:$true] %s149_s28 }
  0x10   : > { %s1641_s25 = scalar_select %p1207_p8, 1, 0 }
  0x11   : > { %s1642_s26 = scalar_select %p1212_p10, 1, 0 }
  0x12   : > { %p853_p11 = pneg %p1212_p10  ;;  %p862_p13 = scmp.lt.s32.totalorder %s1123_s18, 2 }
  0x13   : > { %s163_s30 = sand.u32 1, %s1119_s17   ;;  %s778_s5 = sshll.u32 %s1123_s18, 6 }
  0x14   : > { %p1220_p12 = pnand %p853_p11, %p1636_p5  ;;  %p1229_p0 = pnand %p862_p13, %p1198_p4 }
  0x15   : > { %s951_s9 = scalar_lea.hbm %s1631_s0, 256 }
  0x16   : > { %s1644_s6 = scalar_select %p1229_p0, 1, 0 }
  0x17   : > { %p952_p1 = scmp.ne.s32.totalorder %s1631_s0, %s951_s9  ;;  %p953_p2 = pneg %p1220_p12 }
  0x18   : > { %p958_p7 = scmp.lt.u32.totalorder %s951_s9, %s1631_s0 }
  0x19   : > { %p954_p3 = pnand %p953_p2, %p952_p1 }
  0x1b   : > { %p955_p6 = pneg %p954_p3 }
  0x1d   : > { %p960_p4 = pnand %p958_p7, %p955_p6 }
  0x1f   : > { %963 = shalt.err (!%p960_p4)
}
  0x20   : > { %s964_s14 = scalar_lea.vmem %s150_s28, 256  ;;  %p972_p5 = scmp.lt.s32.totalorder %s150_s28, %s150_s28 }
  0x21   : > { %p965_p11 = scmp.ne.s32.totalorder %s150_s28, %s964_s14  ;;  %p973_p8 = scmp.lt.s32.totalorder %s964_s14, %s964_s14 }
  0x23   : > { %p967_p13 = pnand %p965_p11, %p953_p2  ;;  %p974_p10 = por %p973_p8, %p972_p5 }
  0x25   : > { %p968_p9 = pneg %p967_p13 }
  0x27   : > { %p975_p0 = pnand %p974_p10, %p968_p9 }
  0x29   : > { %978 = shalt.err (!%p975_p0)
}
  0x2a   : > { %s1126_s15 = smov 64   ;;  %s1127_s18 = smov 4  }
  0x2b   : > { %856 = dma.hbm_to_vmem [thread:$0]  (!%p1220_p12), %s1631_s0, 256, %s150_s28, [#allocation8], %s1126_s15, %s1126_s15, %s1127_s18  }
  0x2c   : > { %s777_s24 = sshll.u32 %s163_s30, 6  ;;  %s1255_s8 = scalar_lea.hbm %s1632_s1, %s778_s5 }
  0x2d   : > { %s167_s9 = scalar_lea.vmem [#allocation11], %s777_s24  ;;  %s1259_s29 = scalar_lea.sflag [#allocation12], %s163_s30 }
  0x2e   : > { %s173_s10 = sshll.u32 %s167_s9, 4  ;;  %s979_s11 = scalar_lea.hbm %s1255_s8, 1024  ;;  %s1257_s10 = int_to_ptr.vmem [resolvable:$true] %s173_s10 }
  0x2f   : > { %p980_p5 = scmp.ne.s32.totalorder %s1255_s8, %s979_s11  ;;  %p1645_p8 = scmp.ne.s32.totalorder %s1644_s6, 0 }
  0x30   : > { %s984_s12 = scalar_lea.hbm %s1632_s1, 2048  ;;  %p985_p0 = scmp.lt.u32.totalorder %s1255_s8, %s1632_s1 }
  0x31   : > { %p981_p9 = pneg %p1645_p8  ;;  %p986_p1 = scmp.lt.u32.totalorder %s984_s12, %s979_s11 }
  0x32   : > { %p988_p3 = scmp.lt.u32.totalorder %s979_s11, %s1255_s8 }
  0x33   : > { %p982_p10 = pnand %p981_p9, %p980_p5  ;;  %p987_p2 = por %p986_p1, %p985_p0 }
  0x35   : > { %p983_p12 = pneg %p982_p10  ;;  %p989_p6 = por %p988_p3, %p987_p2 }
  0x37   : > { %p990_p7 = pnand %p989_p6, %p983_p12 }
  0x39   : > { %993 = shalt.err (!%p990_p7)
}
  0x3a   : > { %s994_s30 = scalar_lea.vmem %s1257_s10, 1024  ;;  %s1128_s21 = smov [#allocation11]  }
  0x3b   : > { %p995_p4 = scmp.ne.s32.totalorder %s1257_s10, %s994_s30  ;;  %s999_s22 = sshll.u32 %s1128_s21, 4  ;;  %s1000_s22 = int_to_ptr.vmem [resolvable:$false] %s999_s22 }
  0x3c   : > { %s1001_s24 = scalar_lea.vmem %s1000_s22, 2048  ;;  %p1002_p5 = scmp.lt.s32.totalorder %s1257_s10, %s1000_s22 }
  0x3d   : > { %p997_p11 = pnand %p995_p4, %p981_p9  ;;  %p1003_p10 = scmp.lt.s32.totalorder %s1001_s24, %s994_s30 }
  0x3f   : > { %p998_p13 = pneg %p997_p11  ;;  %p1004_p0 = por %p1003_p10, %p1002_p5 }
  0x41   : > { %p1005_p1 = pnand %p1004_p0, %p998_p13 }
  0x43   : > { %1008 = shalt.err (!%p1005_p1)
}
  0x44   : > { %s1129_s27 = smov 128   ;;  %p1646_p9 = scmp.ne.s32.totalorder %s1642_s26, 0 }
  0x45   : > { %860 = dma.hbm_to_vmem [thread:$0]  (!%p1645_p8), %s1255_s8, 1024, %s1257_s10, %s1259_s29, %s1129_s27, %s1126_s15, %s1127_s18  }
  0x46   : > { %185 = sbr.rel (%p1646_p9) target bundleno = 1118 (0x45e), region = 28  ;;  %p1647_p12 = scmp.eq.s32.totalorder (!%p1646_p9), %s1183_s19, 0 }
  0x4d   : > { %1090 = dma.done.wait (%p1647_p12), [#allocation8], 256   ;;  %p1648_p2 = pmov %p1647_p12 }
  0x4e   : > { %s191_s7 = sand.u32 1, %s1115_s16   ;;  %p1649_p3 = scmp.ne.s32.totalorder %s1641_s25, 0 }
  0x4f   : > { %1092 = vsyncadd (%p1648_p2), [#allocation8], 4294967040  ;;  %s781_s9 = sshll.u32 %s191_s7, 6  ;;  %s192_s6 = scalar_lea.sflag [#allocation12], %s191_s7 }
  0x50   : > { %s1296_s11 = scalar_lea.vmem [#allocation11], %s781_s9 }
  0x51   : > { %1094 = dma.done.wait (%p1649_p3), %s192_s6, 1024  }
  0x52   : > { %1096 = vsyncadd (%p1649_p3), %s192_s6, 4294966272  ;;  %p1650_p8 = scmp.ne.s32.totalorder %s1183_s19, 0 }
  0x53   : > { %vm220_vm0 = vcmask (!%p1650_p8), 7168   ;;  %v1130_v0 = vmov (!%p1650_p8), -inf   ;;  %v1131_v1 = vmov (!%p1650_p8), 0.0   ;;  %v1132_v2 = vmov (!%p1650_p8), 0  }
  0x54   : > { %219 = sbr.rel (%p1650_p8) target bundleno = 94 (0x5e), region = 40  ;;  %221 = vst.msk [vmem:[#allocation2] sm:$0xff] (!%p1650_p8), %vm220_vm0, %v1130_v0  ;;  %222 = vst.msk [vmem:[#allocation2 + $0x8] sm:$0xff] (!%p1650_p8), %vm220_vm0, %v1130_v0 }
  0x55   : > { %223 = vst.msk [vmem:[#allocation2 + $0x10] sm:$0xff] (!%p1650_p8), %vm220_vm0, %v1130_v0  ;;  %224 = vst.msk [vmem:[#allocation2 + $0x18] sm:$0xff] (!%p1650_p8), %vm220_vm0, %v1130_v0 }
  0x56   : > { %233 = vst.msk [vmem:[#allocation5] sm:$0xff] (!%p1650_p8), %vm220_vm0, %v1130_v0  ;;  %234 = vst.msk [vmem:[#allocation5 + $0x8] sm:$0xff] (!%p1650_p8), %vm220_vm0, %v1130_v0 }
  0x57   : > { %235 = vst.msk [vmem:[#allocation5 + $0x10] sm:$0xff] (!%p1650_p8), %vm220_vm0, %v1130_v0  ;;  %236 = vst.msk [vmem:[#allocation5 + $0x18] sm:$0xff] (!%p1650_p8), %vm220_vm0, %v1130_v0 }
  0x58   : > { %225 = vst.msk [vmem:[#allocation3] sm:$0xff] (!%p1650_p8), %vm220_vm0, %v1131_v1  ;;  %226 = vst.msk [vmem:[#allocation3 + $0x8] sm:$0xff] (!%p1650_p8), %vm220_vm0, %v1131_v1 }
  0x59   : > { %227 = vst.msk [vmem:[#allocation3 + $0x10] sm:$0xff] (!%p1650_p8), %vm220_vm0, %v1131_v1  ;;  %228 = vst.msk [vmem:[#allocation3 + $0x18] sm:$0xff] (!%p1650_p8), %vm220_vm0, %v1131_v1 }
  0x5a   : > { %229 = vst.msk [vmem:[#allocation4] sm:$0xff] (!%p1650_p8), %vm220_vm0, %v1131_v1  ;;  %230 = vst.msk [vmem:[#allocation4 + $0x8] sm:$0xff] (!%p1650_p8), %vm220_vm0, %v1131_v1 }
  0x5b   : > { %231 = vst.msk [vmem:[#allocation4 + $0x10] sm:$0xff] %vm220_vm0, %v1131_v1  ;;  %232 = vst.msk [vmem:[#allocation4 + $0x18] sm:$0xff] %vm220_vm0, %v1131_v1 }
  0x5c   : > { %237 = vst.msk [vmem:[#allocation6] sm:$0xff] %vm220_vm0, %v1132_v2  ;;  %238 = vst.msk [vmem:[#allocation6 + $0x8] sm:$0xff] %vm220_vm0, %v1132_v2 }
  0x5d   : > { %239 = vst.msk [vmem:[#allocation6 + $0x10] sm:$0xff] %vm220_vm0, %v1132_v2  ;;  %240 = vst.msk [vmem:[#allocation6 + $0x18] sm:$0xff] %vm220_vm0, %v1132_v2 }
  0x5e PF: > { %v917_v3 = vld [vmem:[%s1296_s11] sm:$0xff]   ;;  %v918_v4 = vld [vmem:[%s1296_s11 + $0x8] sm:$0xff]   ;;  %v919_v5 = vld [vmem:[%s1296_s11 + $0x10] sm:$0xff]   ;;  %v370_v13 = vlaneseq  ;;  %s793_s25 = sshll.u32 %s1183_s19, 7  ;;  %v1133_v26 = vmov 0   ;;  %vm460_vm3 = vcmask 7168  }
  0x5f   : > { %813 = vmatprep.subr.bf16.mxu0 %v917_v3  ;;  %v920_v6 = vld [vmem:[%s1296_s11 + $0x18] sm:$0xff]   ;;  %v925_v7 = vld [vmem:[#allocation7] sm:$0xff]   ;;  %v921_v8 = vld [vmem:[%s1296_s11 + $0x20] sm:$0xff]   ;;  %v373_v16 = vstv %s793_s25  ;;  %915 = vset.pattern.permute.xlu1 %v1133_v26  ;;  %p794_p6 = scmp.ne.s32.totalorder %s1183_s19, 1 }
  0x60   : > { %814 = vmatpush3.bf16.msra.mxu0 %v917_v3  ;;  %829 = vmatprep.mubr.bf16.mxu0 %v925_v7  ;;  %v922_v9 = vld [vmem:[%s1296_s11 + $0x28] sm:$0xff]   ;;  %v923_v10 = vld [vmem:[%s1296_s11 + $0x30] sm:$0xff]   ;;  %v924_v11 = vld [vmem:[%s1296_s11 + $0x38] sm:$0xff]   ;;  %v371_v14 = vand.u32 127, %v370_v13  ;;  %v1333_v15 = vshrl.u32 %v370_v13, 7 }
  0x61   : > { %815 = vmatprep.subr.bf16.mxu0 %v918_v4  ;;  %v926_v12 = vld [vmem:[#allocation7 + $0x8] sm:$0xff]   ;;  %916 = vset.pattern.permute.xlu0 %v1133_v26  ;;  %v1365_v27 = vld [vmem:[#allocation5 + $0x10] sm:$0xff]  ;;  %v1369_v29 = vld [vmem:[#allocation5] sm:$0xff] }
  0x62   : > { %v1335_v17 = vadd.s32 %v373_v16, %v371_v14  ;;  %v1338_v18 = vadd.s32 16, %v1333_v15  ;;  %v1341_v19 = vadd.s32 24, %v1333_v15  ;;  %v1367_v28 = vld [vmem:[#allocation2 + $0x10] sm:$0xff]  ;;  %v1371_v30 = vld [vmem:[#allocation2] sm:$0xff]  ;;  %v1390_v35 = vld [vmem:[#allocation5 + $0x18] sm:$0xff]  ;;  %v1479_v63 = vadd.s32 8, %v1333_v15 }
  0x63   : > { %v1396_v37 = vld [vmem:[#allocation2 + $0x18] sm:$0xff]  ;;  %v1409_v40 = vld [vmem:[#allocation5 + $0x8] sm:$0xff]  ;;  %651 = vst.msk [vmem:[#allocation15] sm:$0xff] (!%p794_p6), %vm460_vm3, %v1333_v15 }
  0x64   : > { %816 = vmatpush3.bf16.msra.mxu0 %v918_v4  ;;  %vm475_vm1 = vcmp.eq.s32.totalorder %v1335_v17, %v1338_v18  ;;  %vm476_vm2 = vcmp.eq.s32.totalorder %v1335_v17, %v1341_v19  ;;  %v1411_v41 = vld [vmem:[#allocation2 + $0x8] sm:$0xff]  ;;  %vm473_vm9 = vcmp.eq.s32.totalorder %v1335_v17, %v1333_v15  ;;  %vm474_vm13 = vcmp.eq.s32.totalorder %v1335_v17, %v1479_v63  ;;  %v469_v26 = vld [vmem:[#allocation4] sm:$0xff] }
  0x65   : > { %817 = vmatprep.subr.bf16.mxu0 %v919_v5  ;;  %652 = vst.msk [vmem:[#allocation15 + $0x8] sm:$0xff] (!%p794_p6), %vm460_vm3, %v1479_v63  ;;  %653 = vst.msk [vmem:[#allocation15 + $0x10] sm:$0xff] (!%p794_p6), %vm460_vm3, %v1338_v18 }
  0x66   : > { %654 = vst.msk [vmem:[#allocation15 + $0x18] sm:$0xff] (!%p794_p6), %vm460_vm3, %v1341_v19 }
  0x68   : > { %818 = vmatpush3.bf16.msra.mxu0 %v919_v5 }
  0x69   : > { %819 = vmatprep.subr.bf16.mxu0 %v920_v6 }
  0x6c   : > { %820 = vmatpush3.bf16.msra.mxu0 %v920_v6 }
  0x6d   : > { %821 = vmatprep.subr.bf16.mxu0 %v921_v8 }
  0x70   : > { %822 = vmatpush3.bf16.msra.mxu0 %v921_v8 }
  0x71   : > { %823 = vmatprep.subr.bf16.mxu0 %v922_v9 }
  0x74   : > { %824 = vmatpush3.bf16.msra.mxu0 %v922_v9 }
  0x75   : > { %825 = vmatprep.subr.bf16.mxu0 %v923_v10 }
  0x78   : > { %826 = vmatpush3.bf16.msra.mxu0 %v923_v10 }
  0x79   : > { %827 = vmatprep.subr.bf16.mxu0 %v924_v11 }
  0x7c   : > { %828 = vmatpush3.bf16.msra.mxu0 %v924_v11 }
  0x7f   : > { %830 = vmatmul.mubr.bf16.vlgmr.msra.gmra.mrb[0].mxu0 %v926_v12 }
 0x152   : > { %v1345_v20 = vpop.f32.mrb[0].mxu0 }
 0x153   : > { %384 = vmax.xlane.f32.xlu1 %v1345_v20  ;;  %v1350_v21 = vpop.f32.mrb[1].mxu0  ;;  %v1353_v22 = vsel %vm475_vm1, %v1345_v20, 0.0 }
 0x154   : > { %380 = vmax.xlane.f32.xlu0 %v1350_v21  ;;  %v1356_v23 = vpop.f32.mrb[2].mxu0  ;;  %v477_v54 = vsel %vm473_vm9, %v1350_v21, 0.0 }
 0x155   : > { %v1358_v24 = vpop.f32.mrb[3].mxu0  ;;  %v1361_v25 = vsel %vm476_vm2, %v1356_v23, 0.0 }
 0x156   : > { %v478_v1 = vsel %vm474_vm13, %v1358_v24, 0.0 }
 0x157   : > { %386 = vmax.xlane.f32.xlu1 %v1356_v23 }
 0x158   : > { %382 = vmax.xlane.f32.xlu0 %v1358_v24 }
 0x1e0   : > { %v1373_v31 = vpop.xlane.xlu1 %384 }
 0x1e1   : > { %vm567_vm4 = vcmp.gt.f32.partialorder %v1373_v31, %v1365_v27  ;;  %v1377_v32 = vpop.xlane.xlu0 %380  ;;  %v1381_v33 = vmax.f32 %v1367_v28, %v1373_v31  ;;  %vm499_vm11 = vcmp.ge.f32.partialorder %v1345_v20, %v1373_v31 }
 0x1e2   : > { %v571_v34 = vsel %vm567_vm4, %v1373_v31, %v1365_v27  ;;  %vm565_vm5 = vcmp.gt.f32.partialorder %v1377_v32, %v1369_v29  ;;  %v1394_v36 = vmax.f32 %v1371_v30, %v1377_v32  ;;  %vm497_vm10 = vcmp.ge.f32.partialorder %v1350_v21, %v1377_v32  ;;  %v472_v27 = vld [vmem:[#allocation4 + $0x18] sm:$0xff] }
 0x1e3   : > { %575 = vst.msk [vmem:[#allocation5 + $0x10] sm:$0xff] %vm460_vm3, %v571_v34  ;;  %v569_v38 = vsel %vm565_vm5, %v1377_v32, %v1369_v29  ;;  %v402_v39 = vsub.f32 %v1367_v28, %v1381_v33  ;;  %467 = vst.msk [vmem:[#allocation2 + $0x10] sm:$0xff] %vm460_vm3, %v1381_v33  ;;  %428 = vperm.xlu1 %915, %v1381_v33   ;;  %v501_v55 = vsel %vm497_vm10, %v1335_v17, 256  ;;  %v503_v57 = vsel %vm499_vm11, %v1335_v17, 256  ;;  %v580_v29 = vld [vmem:[#allocation6 + $0x18] sm:$0xff] }
 0x1e4   : > { %573 = vst.msk [vmem:[#allocation5] sm:$0xff] %vm460_vm3, %v569_v38  ;;  %v1414_v42 = vpop.xlane.xlu1 %386  ;;  %v400_v43 = vsub.f32 %v1371_v30, %v1394_v36  ;;  %465 = vst.msk [vmem:[#allocation2] sm:$0xff] %vm460_vm3, %v1394_v36  ;;  %418 = vperm.xlu0 %916, %v1394_v36   ;;  %v506_v56 = vshra.s32 %v501_v55, 16  ;;  %v534_v59 = vshra.s32 %v503_v57, 16  ;;  %v505_v38 = vand.u32 65535, %v501_v55  ;;  %v396_v30 = vld [vmem:[#allocation3] sm:$0xff] }
 0x1e5   : > { %vm568_vm6 = vcmp.gt.f32.partialorder %v1414_v42, %v1390_v35  ;;  %v1423_v44 = vpop.xlane.xlu0 %382  ;;  %v1427_v45 = vmax.f32 %v1396_v37, %v1414_v42  ;;  %vm500_vm12 = vcmp.ge.f32.partialorder %v1356_v23, %v1414_v42  ;;  %v399_v36 = vld [vmem:[#allocation3 + $0x18] sm:$0xff] }
 0x1e6   : > { %v572_v46 = vsel %vm568_vm6, %v1414_v42, %v1390_v35  ;;  %vm566_vm7 = vcmp.gt.f32.partialorder %v1423_v44, %v1409_v40  ;;  %v1438_v47 = vmax.f32 %v1411_v41, %v1423_v44  ;;  %vm498_vm8 = vcmp.ge.f32.partialorder %v1358_v24, %v1423_v44 }
 0x1e7   : > { %576 = vst.msk [vmem:[#allocation5 + $0x18] sm:$0xff] %vm460_vm3, %v572_v46  ;;  %v570_v48 = vsel %vm566_vm7, %v1423_v44, %v1409_v40  ;;  %433 = vperm.xlu1 %915, %v1427_v45   ;;  %v403_v49 = vsub.f32 %v1396_v37, %v1427_v45  ;;  %468 = vst.msk [vmem:[#allocation2 + $0x18] sm:$0xff] %vm460_vm3, %v1427_v45  ;;  %v1460_v51 = vsel %vm498_vm8, %v1335_v17, 256  ;;  %v508_v58 = vcvt.s32.f32 %v506_v56 }
 0x1e8   : > { %574 = vst.msk [vmem:[#allocation5 + $0x8] sm:$0xff] %vm460_vm3, %v570_v48  ;;  %v401_v50 = vsub.f32 %v1411_v41, %v1438_v47  ;;  %466 = vst.msk [vmem:[#allocation2 + $0x8] sm:$0xff] %vm460_vm3, %v1438_v47  ;;  %v520_v52 = vshra.s32 %v1460_v51, 16  ;;  %v504_v60 = vsel %vm500_vm12, %v1335_v17, 256  ;;  %v536_v61 = vcvt.s32.f32 %v534_v59 }
 0x1e9   : > { %v548_v62 = vshra.s32 %v504_v60, 16  ;;  %v533_v48 = vand.u32 65535, %v503_v57  ;;  %v547_v59 = vand.u32 65535, %v504_v60 }
 0x1ea   : > { %v1463_v53 = vcvt.s32.f32 %v520_v52 }
 0x1eb   : > { %423 = vperm.xlu1 %915, %v1438_v47   ;;  %v550_v0 = vcvt.s32.f32 %v548_v62  ;;  %v535_v56 = vcvt.s32.f32 %v533_v48 }
 0x203   : > { %523 = vmin.xlane.f32.xlu0 %v1463_v53 }
 0x207   : > { %481 = vadd.xlane.f32.xlu0 %v477_v54 }
 0x20f   : > { %509 = vmin.xlane.f32.xlu1 %v508_v58 }
 0x213   : > { %537 = vmin.xlane.f32.xlu1 %v536_v61 }
 0x217   : > { %551 = vmin.xlane.f32.xlu1 %v550_v0 }
 0x21b   : > { %483 = vadd.xlane.f32.xlu1 %v478_v1 }
 0x262   : > { %v429_v2 = vpop.permute.xlu1 %428 }
 0x263   : > { %v438_v3 = vsub.f32 %v1345_v20, %v429_v2  ;;  %v419_v4 = vpop.permute.xlu0 %418  ;;  %v549_v2 = vcvt.s32.f32 %v547_v59 }
 0x264   : > { %v436_v5 = vsub.f32 %v1350_v21, %v419_v4  ;;  %v470_v4 = vld [vmem:[#allocation4 + $0x8] sm:$0xff] }
 0x265   : > { %v444_v6 = vmul.f32 1.442695, %v438_v3  ;;  %v519_v3 = vand.u32 65535, %v1460_v51  ;;  %v408_v51 = vmul.f32 1.442695, %v402_v39 }
 0x266   : > { %v440_v7 = vmul.f32 1.442695, %v436_v5  ;;  %v434_v8 = vpop.permute.xlu1 %433  ;;  %v398_v5 = vld [vmem:[#allocation3 + $0x10] sm:$0xff] }
 0x267   : > { %927 = vpow2.f32 %v444_v6  ;;  %v439_v9 = vsub.f32 %v1356_v23, %v434_v8 }
 0x268   : > { %929 = vpow2.f32 %v440_v7 }
 0x269   : > { %v446_v10 = vmul.f32 1.442695, %v439_v9  ;;  %v397_v9 = vld [vmem:[#allocation3 + $0x8] sm:$0xff] }
 0x26a   : > { %v424_v11 = vpop.permute.xlu1 %423 }
 0x26b   : > { %931 = vpow2.f32 %v446_v10  ;;  %v437_v12 = vsub.f32 %v1358_v24, %v424_v11  ;;  %v507_v24 = vcvt.s32.f32 %v505_v38 }
 0x26d   : > { %v442_v13 = vmul.f32 1.442695, %v437_v12 }
 0x26f   : > { %933 = vpow2.f32 %v442_v13 }
 0x270   : > { %935 = vpow2.f32 %v408_v51 }
 0x271   : > { %v928_v14 = vpop.eup %927 }
 0x272   : > { %452 = vadd.xlane.f32.xlu0 %v928_v14  ;;  %v930_v16 = vpop.eup %929 }
 0x275   : > { %v932_v17 = vpop.eup %931 }
 0x276   : > { %448 = vadd.xlane.f32.xlu0 %v930_v16  ;;  %454 = vadd.xlane.f32.xlu1 %v932_v17 }
 0x279   : > { %v934_v20 = vpop.eup %933 }
 0x27a   : > { %450 = vadd.xlane.f32.xlu1 %v934_v20  ;;  %v577_v20 = vld [vmem:[#allocation6] sm:$0xff] }
 0x290   : > { %v1488_v21 = vpop.xlane.xlu0 %523 }
 0x291   : > { %vm525_vm1 = vcmp.eq.f32.partialorder %v1463_v53, %v1488_v21  ;;  %v410_v53 = vmul.f32 1.442695, %v403_v49  ;;  %v530_v59 = vcvt.f32.s32 %v1488_v21 }
 0x294   : > { %v482_v23 = vpop.xlane.xlu0 %481 }
 0x295   : > { %v489_v34 = vadd.f32 %v482_v23, %v469_v26 }
 0x297   : > { %493 = vst.msk [vmem:[#allocation4] sm:$0xff] %vm460_vm3, %v489_v34 }
 0x29c   : > { %v510_v46 = vpop.xlane.xlu1 %509 }
 0x29d   : > { %vm511_vm14 = vcmp.eq.f32.partialorder %v508_v58, %v510_v46  ;;  %v521_v58 = vcvt.s32.f32 %v519_v3  ;;  %v516_v12 = vcvt.f32.s32 %v510_v46 }
 0x29e   : > { %v512_v52 = vsel %vm511_vm14, %v507_v24, inf  ;;  %v613_v18 = vld [vmem:[#allocation4] sm:$0xff] (!%p794_p6) }
 0x29f   : > { %513 = vmin.xlane.f32.xlu1 %v512_v52  ;;  %v517_v14 = vshll.u32 %v516_v12, 16  ;;  %v579_v52 = vld [vmem:[#allocation6 + $0x10] sm:$0xff] }
 0x2a0   : > { %v538_v54 = vpop.xlane.xlu1 %537 }
 0x2a1   : > { %vm539_vm15 = vcmp.eq.f32.partialorder %v536_v61, %v538_v54  ;;  %v526_v61 = vsel %vm525_vm1, %v521_v58, inf  ;;  %v544_v16 = vcvt.f32.s32 %v538_v54 }
 0x2a2   : > { %v540_v62 = vsel %vm539_vm15, %v535_v56, inf  ;;  %v471_v56 = vld [vmem:[#allocation4 + $0x10] sm:$0xff] }
 0x2a3   : > { %541 = vmin.xlane.f32.xlu0 %v540_v62  ;;  %v545_v34 = vshll.u32 %v544_v16, 16 }
 0x2a4   : > { %v1491_v1 = vpop.xlane.xlu1 %551 }
 0x2a5   : > { %vm553_vm0 = vcmp.eq.f32.partialorder %v550_v0, %v1491_v1  ;;  %v406_v0 = vmul.f32 1.442695, %v401_v50  ;;  %v558_v38 = vcvt.f32.s32 %v1491_v1 }
 0x2a6   : > { %v554_v55 = vsel %vm553_vm0, %v549_v2, inf }
 0x2a7   : > { %485 = vadd.xlane.f32.xlu0 %v1353_v22  ;;  %555 = vmin.xlane.f32.xlu1 %v554_v55  ;;  %v404_v22 = vmul.f32 1.442695, %v400_v43  ;;  %v559_v2 = vshll.u32 %v558_v38, 16 }
 0x2a8   : > { %v484_v57 = vpop.xlane.xlu1 %483 }
 0x2a9   : > { %v490_v60 = vadd.f32 %v484_v57, %v470_v4  ;;  %937 = vpow2.f32 %v404_v22  ;;  %v531_v57 = vshll.u32 %v530_v59, 16 }
 0x2aa   : > { %939 = vpow2.f32 %v410_v53 }
 0x2ab   : > { %494 = vst.msk [vmem:[#allocation4 + $0x8] sm:$0xff] %vm460_vm3, %v490_v60  ;;  %527 = vmin.xlane.f32.xlu1 %v526_v61  ;;  %941 = vpow2.f32 %v406_v0  ;;  %v578_v60 = vld [vmem:[#allocation6 + $0x8] sm:$0xff]  ;;  %v593_v0 = vld [vmem:[#allocation2] sm:$0xff] (!%p794_p6) }
 0x2af   : > { %487 = vadd.xlane.f32.xlu1 %v1361_v25  ;;  %v936_v25 = vpop.eup %935 }
 0x2b0   : > { %v414_v33 = vmul.f32 %v936_v25, %v398_v5  ;;  %v594_v25 = vld [vmem:[#allocation2 + $0x8] sm:$0xff] (!%p794_p6) }
 0x2b3   : > { %v938_v28 = vpop.eup %937 }
 0x2b4   : > { %v940_v39 = vpop.eup %939  ;;  %v412_v37 = vmul.f32 %v938_v28, %v396_v30  ;;  %v595_v28 = vld [vmem:[#allocation2 + $0x10] sm:$0xff] (!%p794_p6) }
 0x2b5   : > { %v415_v45 = vmul.f32 %v940_v39, %v399_v36  ;;  %v942_v49 = vpop.eup %941  ;;  %v614_v36 = vld [vmem:[#allocation4 + $0x8] sm:$0xff] (!%p794_p6) }
 0x2b6   : > { %v413_v50 = vmul.f32 %v942_v49, %v397_v9 }
 0x2ff   : > { %v453_v6 = vpop.xlane.xlu0 %452 }
 0x300   : > { %v458_v43 = vadd.f32 %v453_v6, %v414_v33  ;;  %v596_v6 = vld [vmem:[#allocation2 + $0x18] sm:$0xff] (!%p794_p6) }
 0x302   : > { %463 = vst.msk [vmem:[#allocation3 + $0x10] sm:$0xff] %vm460_vm3, %v458_v43 }
 0x303   : > { %v449_v7 = vpop.xlane.xlu0 %448  ;;  %v455_v8 = vpop.xlane.xlu1 %454 }
 0x304   : > { %v456_v41 = vadd.f32 %v449_v7, %v412_v37  ;;  %v459_v47 = vadd.f32 %v455_v8, %v415_v45 }
 0x306   : > { %461 = vst.msk [vmem:[#allocation3] sm:$0xff] %vm460_vm3, %v456_v41  ;;  %464 = vst.msk [vmem:[#allocation3 + $0x18] sm:$0xff] %vm460_vm3, %v459_v47 }
 0x307   : > { %v451_v10 = vpop.xlane.xlu1 %450 }
 0x308   : > { %v457_v11 = vadd.f32 %v451_v10, %v413_v50 }
 0x309   : > { %v599_v42 = vld [vmem:[#allocation3 + $0x10] sm:$0xff] (!%p794_p6) }
 0x30a   : > { %462 = vst.msk [vmem:[#allocation3 + $0x8] sm:$0xff] %vm460_vm3, %v457_v11 }
 0x30d   : > { %v597_v35 = vld [vmem:[#allocation3] sm:$0xff] (!%p794_p6)  ;;  %v600_v44 = vld [vmem:[#allocation3 + $0x18] sm:$0xff] (!%p794_p6) }
 0x30e   : > { %943 = vlog2.f32 (!%p794_p6), %v597_v35 }
 0x311   : > { %v598_v40 = vld [vmem:[#allocation3 + $0x8] sm:$0xff] (!%p794_p6) }
 0x312   : > { %945 = vlog2.f32 (!%p794_p6), %v598_v40 }
 0x313   : > { %947 = vlog2.f32 (!%p794_p6), %v599_v42 }
 0x314   : > { %949 = vlog2.f32 (!%p794_p6), %v600_v44 }
 0x318   : > { %v944_v53 = vpop.eup (!%p794_p6), %943 }
 0x319   : > { %v602_v5 = vmul.f32 (!%p794_p6), 0.6931472, %v944_v53 }
 0x31b   : > { %v609_v30 = vadd.f32 (!%p794_p6), %v602_v5, %v593_v0 }
 0x31c   : > { %v946_v15 = vpop.eup (!%p794_p6), %945 }
 0x31d   : > { %v948_v63 = vpop.eup (!%p794_p6), %947  ;;  %v604_v33 = vmul.f32 (!%p794_p6), 0.6931472, %v946_v15  ;;  %v617_v8 = vsub.f32 (!%p794_p6), %v613_v18, %v609_v30 }
 0x31e   : > { %v950_v39 = vpop.eup (!%p794_p6), %949  ;;  %v606_v19 = vmul.f32 (!%p794_p6), 0.6931472, %v948_v63 }
 0x31f   : > { %v608_v43 = vmul.f32 (!%p794_p6), 0.6931472, %v950_v39  ;;  %v610_v37 = vadd.f32 (!%p794_p6), %v604_v33, %v594_v25  ;;  %v621_v50 = vsel (!%p794_p6), %vm460_vm3, %v617_v8, 0.0 }
 0x320   : > { %v611_v49 = vadd.f32 (!%p794_p6), %v606_v19, %v595_v28 }
 0x321   : > { %v612_v9 = vadd.f32 (!%p794_p6), %v608_v43, %v596_v6  ;;  %v618_v41 = vsub.f32 (!%p794_p6), %v614_v36, %v610_v37 }
 0x323   : > { %v622_v11 = vsel (!%p794_p6), %vm460_vm3, %v618_v41, 0.0 }
 0x324   : > { %v623_v12 = vadd.f32 (!%p794_p6), %v622_v11, %v621_v50 }
 0x32c   : > { %v514_v13 = vpop.xlane.xlu1 %513 }
 0x32d   : > { %v515_v17 = vcvt.f32.s32 %v514_v13 }
 0x32f   : > { %v518_v26 = vadd.s32 %v517_v14, %v515_v17 }
 0x330   : > { %v542_v23 = vpop.xlane.xlu0 %541 }
 0x331   : > { %v581_v24 = vsel %vm565_vm5, %v518_v26, %v577_v20  ;;  %v543_v48 = vcvt.f32.s32 %v542_v23 }
 0x332   : > { %585 = vst.msk [vmem:[#allocation6] sm:$0xff] %vm460_vm3, %v581_v24 }
 0x333   : > { %v546_v46 = vadd.s32 %v545_v34, %v543_v48 }
 0x334   : > { %v486_v54 = vpop.xlane.xlu0 %485  ;;  %v556_v62 = vpop.xlane.xlu1 %555 }
 0x335   : > { %v583_v3 = vsel %vm567_vm4, %v546_v46, %v579_v52  ;;  %v491_v1 = vadd.f32 %v486_v54, %v471_v56  ;;  %v557_v55 = vcvt.f32.s32 %v556_v62 }
 0x336   : > { %587 = vst.msk [vmem:[#allocation6 + $0x10] sm:$0xff] %vm460_vm3, %v583_v3 }
 0x337   : > { %495 = vst.msk [vmem:[#allocation4 + $0x10] sm:$0xff] %vm460_vm3, %v491_v1  ;;  %v560_v32 = vadd.s32 %v559_v2, %v557_v55 }
 0x338   : > { %v528_v4 = vpop.xlane.xlu1 %527 }
 0x339   : > { %v584_v21 = vsel %vm568_vm6, %v560_v32, %v580_v29  ;;  %v529_v58 = vcvt.f32.s32 %v528_v4  ;;  %592 = sbr.rel (%p794_p6) target bundleno = 1053 (0x41d), region = 44  ;;  %v643_v20 = vld [vmem:[#allocation6] sm:$0xff] (!%p794_p6) }
 0x33a   : > { %588 = vst.msk [vmem:[#allocation6 + $0x18] sm:$0xff] %vm460_vm3, %v584_v21  ;;  %647 = vst.msk [vmem:[#allocation14] sm:$0xff] (!%p794_p6), %vm460_vm3, %v643_v20 }
 0x33b   : > { %v532_v31 = vadd.s32 %v531_v57, %v529_v58 }
 0x33c   : > { %v488_v61 = vpop.xlane.xlu1 %487 }
 0x33d   : > { %v582_v51 = vsel %vm566_vm7, %v532_v31, %v578_v60  ;;  %v492_v22 = vadd.f32 %v488_v61, %v472_v27  ;;  %v645_v23 = vld [vmem:[#allocation6 + $0x10] sm:$0xff] (!%p794_p6) }
 0x33e   : > { %586 = vst.msk [vmem:[#allocation6 + $0x8] sm:$0xff] %vm460_vm3, %v582_v51  ;;  %v615_v45 = vld [vmem:[#allocation4 + $0x10] sm:$0xff] (!%p794_p6)  ;;  %649 = vst.msk [vmem:[#allocation14 + $0x10] sm:$0xff] (!%p794_p6), %vm460_vm3, %v645_v23 }
 0x33f   : > { %496 = vst.msk [vmem:[#allocation4 + $0x18] sm:$0xff] %vm460_vm3, %v492_v22  ;;  %v619_v47 = vsub.f32 (!%p794_p6), %v615_v45, %v611_v49 }
 0x341   : > { %v624_v13 = vsel %vm460_vm3, %v619_v47, 0.0  ;;  %v646_v34 = vld [vmem:[#allocation6 + $0x18] sm:$0xff] }
 0x342   : > { %v625_v16 = vadd.f32 %v624_v13, %v623_v12  ;;  %650 = vst.msk [vmem:[#allocation14 + $0x18] sm:$0xff] %vm460_vm3, %v646_v34 }
 0x345   : > { %v644_v26 = vld [vmem:[#allocation6 + $0x8] sm:$0xff] }
 0x346   : > { %v616_v7 = vld [vmem:[#allocation4 + $0x18] sm:$0xff]  ;;  %648 = vst.msk [vmem:[#allocation14 + $0x8] sm:$0xff] %vm460_vm3, %v644_v26 }
 0x347   : > { %v620_v10 = vsub.f32 %v616_v7, %v612_v9 }
 0x349   : > { %v626_v14 = vsel %vm460_vm3, %v620_v10, 0.0 }
 0x34a   : > { %v627_v17 = vadd.f32 %v626_v14, %v625_v16 }
 0x34c   : > { %628 = vadd.xlane.f32.xlu0 %v627_v17 }
 0x3d9   : > { %v629_v38 = vpop.xlane.xlu0 %628 }
 0x3da   : > { %v630_v24 = vrot.slane %v629_v38, 4 }
 0x3dc   : > { %v631_v48 = vadd.f32 %v630_v24, %v629_v38 }
 0x3de   : > { %v632_v52 = vrot.slane %v631_v48, 2 }
 0x3e0   : > { %v633_v56 = vadd.f32 %v632_v52, %v631_v48 }
 0x3e2   : > { %v634_v46 = vrot.slane %v633_v56, 1 }
 0x3e4   : > { %v635_v59 = vadd.f32 %v634_v46, %v633_v56 }
 0x3e6   : > { %833 = vpush %v635_v59 }
 0x417   : > { %s834_s26 = spop %833 }
 0x418   : > { %s637_s15 = ssub.f32 0.0, %s834_s26 }
 0x41a   : > { %s640_s18 = smul.f32 0.03125, %s637_s15 }
 0x41c   : > { %642 = sst [smem:[#allocation13]] %s640_s18 }
 0x41d PF: > { %p864_p7 = scmp.eq.s32.totalorder %s1183_s19, 1  ;;  %s1009_s29 = scalar_lea.hbm %s1633_s2, 16 }
 0x41e   : > { %p1010_p4 = scmp.ne.s32.totalorder %s1633_s2, %s1009_s29  ;;  %p1015_p5 = scmp.lt.u32.totalorder %s1009_s29, %s1633_s2 }
 0x420   : > { %p1011_p11 = pnand %p1010_p4, %p864_p7 }
 0x422   : > { %p1012_p13 = pneg %p1011_p11 }
 0x424   : > { %p1017_p10 = pnand %p1015_p5, %p1012_p13 }
 0x426   : > { %1020 = shalt.err (!%p1017_p10)
}
 0x427   : > { %s1134_s14 = smov [#allocation13]   ;;  %s1135_s22 = smov [#allocation14]  }
 0x428   : > { %842 = dma.smem_to_hbm (%p864_p7), %s1134_s14, 16, %s1633_s2, [#allocation10]  }
 0x429   : > { %s670_s24 = sshll.u32 %s1135_s22, 4  ;;  %s671_s24 = int_to_ptr.vmem [resolvable:$true] %s670_s24 }
 0x42a   : > { %s1021_s27 = scalar_lea.vmem %s671_s24, 512  ;;  %p1028_p12 = scmp.lt.s32.totalorder %s671_s24, %s671_s24 }
 0x42b   : > { %p1022_p0 = scmp.ne.s32.totalorder %s671_s24, %s1021_s27  ;;  %p1029_p2 = scmp.lt.s32.totalorder %s1021_s27, %s1021_s27 }
 0x42d   : > { %p1023_p1 = pnand %p1022_p0, %p864_p7  ;;  %p1030_p3 = por %p1029_p2, %p1028_p12 }
 0x42f   : > { %p1024_p9 = pneg %p1023_p1 }
 0x431   : > { %p1031_p8 = pnand %p1030_p3, %p1024_p9 }
 0x433   : > { %1034 = shalt.err (!%p1031_p8)
}
 0x434   : > { %s1035_s6 = scalar_lea.hbm %s1634_s3, 512 }
 0x435   : > { %p1036_p6 = scmp.ne.s32.totalorder %s1634_s3, %s1035_s6  ;;  %p1041_p13 = scmp.lt.u32.totalorder %s1035_s6, %s1634_s3 }
 0x437   : > { %p1037_p4 = pnand %p1036_p6, %p864_p7 }
 0x439   : > { %p1038_p11 = pneg %p1037_p4 }
 0x43b   : > { %p1043_p5 = pnand %p1041_p13, %p1038_p11 }
 0x43d   : > { %1046 = shalt.err (!%p1043_p5)
}
 0x43e   : > { %s1136_s18 = smov 128   ;;  %s1137_s8 = smov 8  }
 0x43f   : > { %844 = dma.vmem_to_hbm [thread:$0]  (%p864_p7), %s671_s24, 512, %s1634_s3, [#allocation9], %s1136_s18, %s1136_s18, %s1137_s8  }
 0x440   : > { %s1138_s28 = smov [#allocation15]  }
 0x441   : > { %s683_s5 = sshll.u32 %s1138_s28, 4  ;;  %s684_s5 = int_to_ptr.vmem [resolvable:$true] %s683_s5 }
 0x442   : > { %s1047_s12 = scalar_lea.vmem %s684_s5, 512  ;;  %p1054_p9 = scmp.lt.s32.totalorder %s684_s5, %s684_s5 }
 0x443   : > { %p1048_p10 = scmp.ne.s32.totalorder %s684_s5, %s1047_s12  ;;  %p1055_p12 = scmp.lt.s32.totalorder %s1047_s12, %s1047_s12 }
 0x445   : > { %p1049_p0 = pnand %p1048_p10, %p864_p7  ;;  %p1056_p2 = por %p1055_p12, %p1054_p9 }
 0x447   : > { %p1050_p1 = pneg %p1049_p0 }
 0x449   : > { %p1057_p3 = pnand %p1056_p2, %p1050_p1 }
 0x44b   : > { %1060 = shalt.err (!%p1057_p3)
}
 0x44c   : > { %s1061_s30 = scalar_lea.hbm %s1635_s4, 512 }
 0x44d   : > { %p1062_p8 = scmp.ne.s32.totalorder %s1635_s4, %s1061_s30  ;;  %p1067_p11 = scmp.lt.u32.totalorder %s1061_s30, %s1635_s4 }
 0x44f   : > { %p1063_p6 = pnand %p1062_p8, %p864_p7 }
 0x451   : > { %p1064_p4 = pneg %p1063_p6 }
 0x453   : > { %p1069_p13 = pnand %p1067_p11, %p1064_p4 }
 0x455   : > { %1072 = shalt.err (!%p1069_p13)
}
 0x456   : > { %846 = dma.vmem_to_hbm [thread:$0]  (%p864_p7), %s684_s5, 512, %s1635_s4, [#allocation16], %s1136_s18, %s1136_s18, %s1137_s8  }
 0x457   : > { %1098 = dma.done.wait (%p864_p7), [#allocation10], 16  }
 0x458   : > { %1100 = vsyncadd (%p864_p7), [#allocation10], 4294967280 }
 0x459   : > { %1102 = dma.done.wait (%p864_p7), [#allocation9], 512  }
 0x45a   : > { %1104 = vsyncadd (%p864_p7), [#allocation9], 4294966784 }
 0x45b   : > { %1106 = dma.done.wait (%p864_p7), [#allocation16], 512  }
 0x45c   : > { %1108 = vsyncadd (%p864_p7), [#allocation16], 4294966784 }
 0x45d   : > { %702 = sfence }
 0x45e PF: > { %p19_p5 = scmp.ge.s32.totalorder %s1186_s20, 4   ;;  %s1651_s15 = smov %s1115_s16 }
 0x45f   : > { %s1652_s16 = smov %s1119_s17  ;;  %s1653_s17 = smov %s1196_s23 }
 0x460   : > { %s1654_s18 = smov %s1186_s20  ;;  %21 = sbr.rel (!%p19_p5) target bundleno = 7 (0x7), region = 96 }
 0x467   :  { %708 = vsyncpa [#allocation8], 1 }
 0x468   :  { %710 = vsyncpa [#allocation8 + $0x1], 1 }
 0x469   :  { %711 = vsyncpa [#allocation12], 1 }
 0x46a   :  { %713 = vsyncpa [#allocation12 + $0x1], 1 }
 0x46b   :  { %714 = vsyncpa [#allocation9], 1 }
 0x46c   :  { %716 = vsyncpa [#allocation9 + $0x1], 1 }
 0x46d   :  { %717 = vsyncpa [#allocation16], 1 }
 0x46e   :  { %718 = vsyncpa [#allocation10], 1 }
 0x46f   :  { %720 = vsyncpa [#allocation10 + $0x1], 1 }

// kernel: biencoder_forward.4
= control target key start
LH: loop header
LB: loop body
LE: loop exit
PB: predicated region body
PF: predicated region fallthrough
CT: control target
= control target key end

     0   :  { %s4721_s0 = inlined_call_operand.hbm [shape: s32[256,8], index: 0, kind: input, shape index: {}]   ;;  %s4722_s1 = inlined_call_operand.hbm [shape: f32[256,8], index: 1, kind: input, shape index: {}]   ;;  %s4723_s2 = inlined_call_operand.hbm [shape: bf16[128,128], index: 2, kind: input, shape index: {}]   ;;  %s4724_s3 = inlined_call_operand.hbm [shape: bf16[128,128], index: 3, kind: input, shape index: {}]   ;;  %s4725_s4 = inlined_call_operand.hbm [shape: f32[1,128], index: 4, kind: input, shape index: {}]   ;;  %s4726_s5 = inlined_call_operand.hbm [shape: bf16[256,128], index: 5, kind: output, shape index: {}]  }
   0x1   :  { %4753 = sst [smem:[#allocation158_spill]] %s4721_s0 }
   0x2   :  { %4754 = sst [smem:[#allocation159_spill]] %s4723_s2 }
   0x3   :  { %10 = vsyncpa [#allocation3], 0 }
   0x4   :  { %12 = vsyncpa [#allocation3 + $0x1], 0 }
   0x5   :  { %13 = vsyncpa [#allocation6], 0 }
   0x6   :  { %15 = vsyncpa [#allocation6 + $0x1], 0 }
   0x7   :  { %16 = vsyncpa [#allocation9], 0 }
   0x8   :  { %17 = vsyncpa [#allocation4], 0 }
   0x9   :  { %19 = vsyncpa [#allocation4 + $0x1], 0  ;;  %s3070_s18 = smov 0   ;;  %s3072_s19 = smov 0  }
   0xa   :  { %s3074_s20 = smov 0   ;;  %s3076_s21 = smov 0  }
   0xb LB: > { %s3091_s22 = sadd.s32 4294967295, %s3018_s21   ;;  %s2350_s23 = sadd.s32 4294967294, %s3018_s21   ;;  %s3018_s21 = sphi %s3076_s21, %s5080_s21   ;;  %s3014_s20 = sphi %s3074_s20, %s5079_s20   ;;  %s3010_s19 = sphi %s3072_s19, %s5078_s19   ;;  %s3006_s18 = sphi %s3070_s18, %s5077_s18  }
   0xc   : > { %p45_p0 = scmp.ne.s32.totalorder %s3010_s19, %s3006_s18  ;;  %p4727_p1 = scmp.eq.s32.totalorder %s3091_s22, 0 }
   0xd   : > { %p164_p3 = scmp.eq.s32.totalorder %s2350_s23, 1  ;;  %p2351_p5 = scmp.ge.s32.totalorder %s3018_s21, 1 }
   0xe   : > { %p3100_p4 = por %p4727_p1, %p45_p0  ;;  %p171_p7 = scmp.lt.s32.totalorder %s3018_s21, 3 }
   0xf   : > { %p3105_p6 = por %p164_p3, %p45_p0  ;;  %s3020_s27 = smov [#allocation7]  }
  0x10   : > { %s4755_s24 = scalar_select %p3100_p4, 1, 0 }
  0x11   : > { %s4756_s25 = scalar_select %p3105_p6, 1, 0 }
  0x12   : > { %p3110_p8 = pnand %p2351_p5, %p171_p7  ;;  %s183_s28 = sshll.u32 %s3020_s27, 4  ;;  %s3114_s28 = int_to_ptr.vmem [resolvable:$true] %s183_s28 }
  0x13   : > { %s3021_s30 = smov [#allocation8]   ;;  %s3022_s7 = smov [#allocation10]  }
  0x14   : > { %s4757_s26 = scalar_select %p3110_p8, 1, 0 }
  0x15   : > { %p2587_p9 = pneg %p3110_p8  ;;  %s196_s6 = sshll.u32 %s3021_s30, 4  ;;  %s3125_s6 = int_to_ptr.vmem [resolvable:$true] %s196_s6 }
  0x16   : > { %s3127_s8 = sshll.u32 %s3022_s7, 4  ;;  %s4759_s2 = sld [smem:[#allocation159_spill]]  ;;  %s211_s8 = int_to_ptr.vmem [resolvable:$true] %s3127_s8 }
  0x17   : > { %p3121_p11 = pnand %p2587_p9, %p4727_p1 }
  0x19   : > { %p3137_p13 = pneg %p3121_p11 }
  0x1c   : > { %s2796_s11 = scalar_lea.hbm %s4759_s2, 1024 }
  0x1d   : > { %p2797_p12 = scmp.ne.s32.totalorder %s4759_s2, %s2796_s11  ;;  %p2803_p5 = scmp.lt.u32.totalorder %s2796_s11, %s4759_s2 }
  0x1f   : > { %p2799_p0 = pnand %p3137_p13, %p2797_p12 }
  0x21   : > { %p2800_p3 = pneg %p2799_p0 }
  0x23   : > { %p2805_p7 = pnand %p2803_p5, %p2800_p3 }
  0x25   : > { %2808 = shalt.err (!%p2805_p7)
}
  0x26   : > { %s2809_s17 = scalar_lea.vmem %s3114_s28, 1024  ;;  %p2817_p2 = scmp.lt.s32.totalorder %s3114_s28, %s3114_s28 }
  0x27   : > { %p2810_p9 = scmp.ne.s32.totalorder %s3114_s28, %s2809_s17  ;;  %p2818_p6 = scmp.lt.s32.totalorder %s2809_s17, %s2809_s17 }
  0x29   : > { %p2812_p10 = pnand %p2810_p9, %p3137_p13  ;;  %p2819_p12 = por %p2818_p6, %p2817_p2 }
  0x2b   : > { %p2813_p1 = pneg %p2812_p10 }
  0x2d   : > { %p2820_p0 = pnand %p2819_p12, %p2813_p1 }
  0x2f   : > { %2823 = shalt.err (!%p2820_p0)
}
  0x30   : > { %s3023_s23 = smov 64   ;;  %s3024_s27 = smov 4  }
  0x31   : > { %2590 = dma.hbm_to_vmem [thread:$0]  (!%p3121_p11), %s4759_s2, 1024, %s3114_s28, [#allocation6], %s3023_s23, %s3023_s23, %s3024_s27  }
  0x32   : > { %s2824_s11 = scalar_lea.hbm %s4724_s3, 1024 }
  0x33   : > { %p2825_p2 = scmp.ne.s32.totalorder %s4724_s3, %s2824_s11  ;;  %p2831_p10 = scmp.lt.u32.totalorder %s2824_s11, %s4724_s3 }
  0x35   : > { %p2827_p1 = pnand %p2825_p2, %p3137_p13 }
  0x37   : > { %p2828_p6 = pneg %p2827_p1 }
  0x39   : > { %p2833_p3 = pnand %p2831_p10, %p2828_p6 }
  0x3b   : > { %2836 = shalt.err (!%p2833_p3)
}
  0x3c   : > { %s2837_s28 = scalar_lea.vmem %s3125_s6, 1024  ;;  %p2845_p12 = scmp.lt.s32.totalorder %s3125_s6, %s3125_s6 }
  0x3d   : > { %p2838_p5 = scmp.ne.s32.totalorder %s3125_s6, %s2837_s28  ;;  %p2846_p0 = scmp.lt.s32.totalorder %s2837_s28, %s2837_s28 }
  0x3f   : > { %p2840_p7 = pnand %p2838_p5, %p3137_p13  ;;  %p2847_p2 = por %p2846_p0, %p2845_p12 }
  0x41   : > { %p2841_p9 = pneg %p2840_p7 }
  0x43   : > { %p2848_p1 = pnand %p2847_p2, %p2841_p9 }
  0x45   : > { %2851 = shalt.err (!%p2848_p1)
}
  0x46   : > { %2593 = dma.hbm_to_vmem [thread:$0]  (!%p3121_p11), %s4724_s3, 1024, %s3125_s6, [#allocation9], %s3023_s23, %s3023_s23, %s3024_s27  }
  0x47   : > { %s2852_s10 = scalar_lea.hbm %s4725_s4, 16 }
  0x48   : > { %p2853_p6 = scmp.ne.s32.totalorder %s4725_s4, %s2852_s10  ;;  %p2859_p5 = scmp.lt.u32.totalorder %s2852_s10, %s4725_s4 }
  0x4a   : > { %p2855_p10 = pnand %p2853_p6, %p3137_p13 }
  0x4c   : > { %p2856_p3 = pneg %p2855_p10 }
  0x4e   : > { %p2861_p7 = pnand %p2859_p5, %p2856_p3 }
  0x50   : > { %2864 = shalt.err (!%p2861_p7)
}
  0x51   : > { %s2865_s16 = scalar_lea.vmem %s211_s8, 16  ;;  %s2872_s6 = scalar_lea.vmem %s211_s8, 32 }
  0x52   : > { %p2866_p9 = scmp.ne.s32.totalorder %s211_s8, %s2865_s16  ;;  %p2873_p2 = scmp.lt.s32.totalorder %s211_s8, %s211_s8 }
  0x53   : > { %p2874_p1 = scmp.lt.s32.totalorder %s2872_s6, %s2865_s16 }
  0x54   : > { %p2868_p12 = pnand %p2866_p9, %p3137_p13 }
  0x55   : > { %p2875_p4 = por %p2874_p1, %p2873_p2 }
  0x56   : > { %p2869_p0 = pneg %p2868_p12 }
  0x58   : > { %p2876_p8 = pnand %p2875_p4, %p2869_p0 }
  0x5a   : > { %2879 = shalt.err (!%p2876_p8)
}
  0x5b   : > { %2596 = dma.hbm_to_vmem [thread:$0]  (!%p3121_p11), %s4725_s4, 16, %s211_s8, [#allocation9]  }
  0x5c   : > { %s3201_s14 = sadd.s32 1, %s3018_s21   ;;  %s32_s28 = sadd.s32 1, %s3014_s20 }
  0x5d   : > { %s29_s29 = ssub.s32 %s3018_s21, %s3201_s14  ;;  %p39_p8 = scmp.ne.s32.totalorder %s3014_s20, %s3010_s19 }
  0x5e   : > { %p30_p4 = scmp.eq.s32.totalorder %s29_s29, 0  ;;  %p40_p13 = scmp.eq.s32.totalorder %s3018_s21, 0 }
  0x5f   : > { %p2611_p6 = scmp.lt.s32.totalorder %s3018_s21, 2  ;;  %p4761_p3 = scmp.eq.s32.totalorder %s3091_s22, 1 }
  0x60   : > { %s3211_s17 = scalar_select %p30_p4, %s3014_s20, %s32_s28  }
  0x61   : > { %p41_p10 = por %p40_p13, %p39_p8  ;;  %p3215_p5 = por %p4761_p3, %p39_p8 }
  0x62   : > { %s221_s7 = sand.u32 1, %s3014_s20   ;;  %s2407_s9 = sshll.u32 %s3018_s21, 11 }
  0x63   : > { %s3221_s8 = sshll.u32 %s221_s7, 7  ;;  %s4763_s0 = sld [smem:[#allocation158_spill]] }
  0x64   : > { %s225_s13 = scalar_lea.vmem [#allocation2], %s3221_s8  ;;  %p3231_p11 = pnand %p2611_p6, %p41_p10 }
  0x65   : > { %s232_s15 = sshll.u32 %s225_s13, 4  ;;  %s3237_s6 = scalar_lea.sflag [#allocation3], %s221_s7  ;;  %s3235_s15 = int_to_ptr.vmem [resolvable:$true] %s232_s15 }
  0x66   : > { %p2882_p9 = pneg %p3231_p11 }
  0x69   : > { %s3228_s12 = scalar_lea.hbm %s4763_s0, %s2407_s9  ;;  %s2885_s28 = scalar_lea.hbm %s4763_s0, 4096 }
  0x6a   : > { %s2880_s23 = scalar_lea.hbm %s3228_s12, 2048  ;;  %p2886_p2 = scmp.lt.u32.totalorder %s3228_s12, %s4763_s0 }
  0x6b   : > { %p2881_p7 = scmp.ne.s32.totalorder %s3228_s12, %s2880_s23  ;;  %p2887_p1 = scmp.lt.u32.totalorder %s2885_s28, %s2880_s23 }
  0x6c   : > { %p2889_p8 = scmp.lt.u32.totalorder %s2880_s23, %s3228_s12 }
  0x6d   : > { %p2883_p12 = pnand %p2882_p9, %p2881_p7  ;;  %p2888_p4 = por %p2887_p1, %p2886_p2 }
  0x6f   : > { %p2884_p0 = pneg %p2883_p12  ;;  %p2890_p13 = por %p2889_p8, %p2888_p4 }
  0x71   : > { %p2891_p6 = pnand %p2890_p13, %p2884_p0 }
  0x73   : > { %2894 = shalt.err (!%p2891_p6)
}
  0x74   : > { %s2895_s7 = scalar_lea.vmem %s3235_s15, 2048  ;;  %s3025_s13 = smov [#allocation2]  }
  0x75   : > { %p2896_p10 = scmp.ne.s32.totalorder %s3235_s15, %s2895_s7  ;;  %s2900_s27 = sshll.u32 %s3025_s13, 4  ;;  %s2901_s27 = int_to_ptr.vmem [resolvable:$false] %s2900_s27 }
  0x76   : > { %s2902_s29 = scalar_lea.vmem %s2901_s27, 4096  ;;  %p2903_p12 = scmp.lt.s32.totalorder %s3235_s15, %s2901_s27 }
  0x77   : > { %p2898_p3 = pnand %p2896_p10, %p2882_p9  ;;  %p2904_p2 = scmp.lt.s32.totalorder %s2902_s29, %s2895_s7 }
  0x79   : > { %p2899_p7 = pneg %p2898_p3  ;;  %p2905_p1 = por %p2904_p2, %p2903_p12 }
  0x7b   : > { %p2906_p4 = pnand %p2905_p1, %p2899_p7 }
  0x7d   : > { %2909 = shalt.err (!%p2906_p4)
}
  0x7e   : > { %s3026_s23 = smov 128   ;;  %s3027_s28 = smov 8  }
  0x7f   : > { %2600 = dma.hbm_to_vmem [thread:$0]  (!%p3231_p11), %s3228_s12, 2048, %s3235_s15, %s3237_s6, %s3026_s23, %s3026_s23, %s3027_s28  }
  0x80   : > { %s3273_s7 = scalar_lea.hbm %s4722_s1, %s2407_s9  ;;  %s246_s13 = scalar_lea.vmem [#allocation5], %s3221_s8 }
  0x81   : > { %s253_s27 = sshll.u32 %s246_s13, 4  ;;  %s242_s29 = sand.u32 1, %s3018_s21   ;;  %s3277_s27 = int_to_ptr.vmem [resolvable:$true] %s253_s27 }
  0x82   : > { %s3279_s0 = scalar_lea.sflag [#allocation6], %s242_s29  ;;  %s2910_s2 = scalar_lea.hbm %s3273_s7, 2048 }
  0x83   : > { %p2911_p0 = scmp.ne.s32.totalorder %s3273_s7, %s2910_s2  ;;  %s2915_s15 = scalar_lea.hbm %s4722_s1, 4096 }
  0x84   : > { %p2916_p6 = scmp.lt.u32.totalorder %s3273_s7, %s4722_s1  ;;  %p2917_p10 = scmp.lt.u32.totalorder %s2915_s15, %s2910_s2 }
  0x85   : > { %p2913_p8 = pnand %p2911_p0, %p2882_p9  ;;  %p2919_p7 = scmp.lt.u32.totalorder %s2910_s2, %s3273_s7 }
  0x86   : > { %p2918_p3 = por %p2917_p10, %p2916_p6 }
  0x87   : > { %p2914_p13 = pneg %p2913_p8 }
  0x88   : > { %p2920_p12 = por %p2919_p7, %p2918_p3 }
  0x8a   : > { %p2921_p2 = pnand %p2920_p12, %p2914_p13 }
  0x8c   : > { %2924 = shalt.err (!%p2921_p2)
}
  0x8d   : > { %s2925_s8 = scalar_lea.vmem %s3277_s27, 2048  ;;  %s3028_s11 = smov [#allocation5]  }
  0x8e   : > { %p2926_p1 = scmp.ne.s32.totalorder %s3277_s27, %s2925_s8  ;;  %s2930_s13 = sshll.u32 %s3028_s11, 4  ;;  %s2931_s13 = int_to_ptr.vmem [resolvable:$false] %s2930_s13 }
  0x8f   : > { %s2932_s29 = scalar_lea.vmem %s2931_s13, 4096  ;;  %p2933_p8 = scmp.lt.s32.totalorder %s3277_s27, %s2931_s13 }
  0x90   : > { %p2928_p4 = pnand %p2926_p1, %p2882_p9  ;;  %p2934_p6 = scmp.lt.s32.totalorder %s2932_s29, %s2925_s8 }
  0x92   : > { %p2929_p0 = pneg %p2928_p4  ;;  %p2935_p10 = por %p2934_p6, %p2933_p8 }
  0x94   : > { %p2936_p3 = pnand %p2935_p10, %p2929_p0 }
  0x96   : > { %2939 = shalt.err (!%p2936_p3)
}
  0x97   : > { %2603 = dma.hbm_to_vmem [thread:$0]  (!%p3231_p11), %s3273_s7, 2048, %s3277_s27, %s3279_s0, %s3026_s23, %s3026_s23, %s3027_s28  }
  0x98   : > { %p4765_p9 = scmp.ne.s32.totalorder %s4757_s26, 0 }
  0x9a   : > { %265 = sbr.rel (%p4765_p9) target bundleno = 1344 (0x540), region = 40 }
  0xa1   : > { %s3311_s2 = sand.u32 1, %s3010_s19   ;;  %p4766_p13 = scmp.ne.s32.totalorder %s4755_s24, 0 }
  0xa2   : > { %s2363_s12 = sshll.u32 %s3311_s2, 7  ;;  %s268_s9 = scalar_lea.sflag [#allocation3], %s3311_s2 }
  0xa3   : > { %s3315_s15 = scalar_lea.vmem [#allocation2], %s2363_s12 }
  0xa4   : > { %2985 = dma.done.wait (%p4766_p13), %s268_s9, 2048  }
  0xa5   : > { %2987 = vsyncadd (%p4766_p13), %s268_s9, 4294965248  ;;  %s276_s0 = sand.u32 1, %s3091_s22   ;;  %s3322_s16 = scalar_lea.vmem [#allocation5], %s2363_s12 }
  0xa6   : > { %s277_s26 = scalar_lea.sflag [#allocation6], %s276_s0 }
  0xa7   : > { %2989 = dma.done.wait (%p4766_p13), %s277_s26, 2048  }
  0xa8   : > { %2991 = vsyncadd (%p4766_p13), %s277_s26, 4294965248  ;;  %p4767_p11 = scmp.eq.s32.totalorder %s3091_s22, 0 }
  0xaa   : > { %2993 = dma.done.wait (%p4767_p11), [#allocation6], 1024   ;;  %p4768_p7 = pmov %p4767_p11 }
  0xac   : > { %2995 = vsyncadd (%p4768_p7), [#allocation6], 4294966272  ;;  %p4769_p12 = pmov %p4768_p7 }
  0xad   : > { %p4770_p2 = pmov %p4768_p7 }
  0xae   : > { %2997 = dma.done.wait (%p4769_p12), [#allocation9], 1040  }
  0xaf   : > { %2999 = vsyncadd (%p4770_p2), [#allocation9], 4294966256  ;;  %v3029_v0 = vmov 0   ;;  %v3337_v1 = vld [vmem:[%s3315_s15 + $0x10] sm:$0xff]  ;;  %v3340_v2 = vld [vmem:[%s3315_s15] sm:$0xff]  ;;  %v3030_v33 = vmov 1  }
  0xb0   : > { %2666 = vset.pattern.permute.xlu1 %v3029_v0  ;;  %2665 = vset.pattern.permute.xlu0 %v3029_v0  ;;  %v3345_v3 = vld [vmem:[%s3315_s15 + $0x18] sm:$0xff]  ;;  %v3348_v4 = vld [vmem:[%s3315_s15 + $0x8] sm:$0xff]  ;;  %v3356_v6 = vld [vmem:[%s3315_s15 + $0x20] sm:$0xff]  ;;  %v3031_v36 = vmov 2   ;;  %vm1827_vm4 = vcmask 64512   ;;  %s2368_s24 = sshll.u32 %s3311_s2, 6 }
  0xb1   : > { %369 = vperm.xlu1 %2666, %v3337_v1   ;;  %363 = vperm.xlu0 %2665, %v3340_v2   ;;  %v3353_v5 = vld [vmem:[%s3315_s15 + $0x28] sm:$0xff]  ;;  %v3361_v7 = vld [vmem:[%s3315_s15 + $0x38] sm:$0xff]  ;;  %v3364_v8 = vld [vmem:[%s3315_s15 + $0x30] sm:$0xff]  ;;  %s4652_s23 = scalar_lea.vmem [#allocation11], %s2368_s24  ;;  %s2425_s28 = sshll.u32 %s3091_s22, 10 }
  0xb2   : > { %v3367_v9 = vld [vmem:[%s3315_s15 + $0x48] sm:$0xff]  ;;  %v3370_v10 = vld [vmem:[%s3315_s15 + $0x40] sm:$0xff]  ;;  %v3375_v11 = vld [vmem:[%s3315_s15 + $0x58] sm:$0xff]  ;;  %s2226_s7 = sshll.u32 %s4652_s23, 4  ;;  %s4673_s10 = scalar_lea.hbm %s4726_s5, %s2425_s28  ;;  %s4675_s7 = int_to_ptr.vmem [resolvable:$true] %s2226_s7 }
  0xb3   : > { %v3378_v12 = vld [vmem:[%s3315_s15 + $0x50] sm:$0xff]  ;;  %v3385_v13 = vld [vmem:[%s3315_s15 + $0x68] sm:$0xff]  ;;  %v3388_v14 = vld [vmem:[%s3315_s15 + $0x60] sm:$0xff]  ;;  %s2213_s8 = scalar_lea.sflag [#allocation4], %s3311_s2  ;;  %s2940_s22 = scalar_lea.vmem %s4675_s7, 1024 }
  0xb4   : > { %v3393_v15 = vld [vmem:[%s3315_s15 + $0x78] sm:$0xff]  ;;  %v3396_v16 = vld [vmem:[%s3315_s15 + $0x70] sm:$0xff]  ;;  %v3401_v17 = vld [vmem:[%s3322_s16 + $0x8] sm:$0xff]  ;;  %p2941_p1 = scmp.ne.s32.totalorder %s4675_s7, %s2940_s22  ;;  %s3037_s11 = smov [#allocation11]  }
  0xb5   : > { %372 = vperm.xlu1 %2666, %v3345_v3   ;;  %366 = vperm.xlu0 %2665, %v3348_v4   ;;  %v3404_v18 = vld [vmem:[%s3322_s16] sm:$0xff]  ;;  %v3409_v19 = vld [vmem:[%s3322_s16 + $0x18] sm:$0xff]  ;;  %v3412_v20 = vld [vmem:[%s3322_s16 + $0x10] sm:$0xff]  ;;  %s2944_s13 = sshll.u32 %s3037_s11, 4  ;;  %s2945_s13 = int_to_ptr.vmem [resolvable:$false] %s2944_s13 }
  0xb6   : > { %v3417_v21 = vld [vmem:[%s3322_s16 + $0x28] sm:$0xff]  ;;  %v3420_v22 = vld [vmem:[%s3322_s16 + $0x20] sm:$0xff]  ;;  %v3425_v23 = vld [vmem:[%s3322_s16 + $0x38] sm:$0xff]  ;;  %p2942_p4 = pnand %p2941_p1, %p3215_p5  ;;  %s2946_s29 = scalar_lea.vmem %s2945_s13, 2048 }
  0xb7   : > { %v3428_v24 = vld [vmem:[%s3322_s16 + $0x30] sm:$0xff]  ;;  %v3433_v25 = vld [vmem:[%s3322_s16 + $0x48] sm:$0xff]  ;;  %v3436_v26 = vld [vmem:[%s3322_s16 + $0x40] sm:$0xff]  ;;  %p2947_p8 = scmp.lt.s32.totalorder %s4675_s7, %s2945_s13  ;;  %p2948_p6 = scmp.lt.s32.totalorder %s2946_s29, %s2940_s22 }
  0xb8   : > { %v3441_v27 = vld [vmem:[%s3322_s16 + $0x58] sm:$0xff]  ;;  %v3444_v28 = vld [vmem:[%s3322_s16 + $0x50] sm:$0xff]  ;;  %v3449_v29 = vld [vmem:[%s3322_s16 + $0x68] sm:$0xff]  ;;  %p2943_p0 = pneg %p2942_p4 }
  0xb9   : > { %378 = vperm.xlu1 %2666, %v3353_v5   ;;  %375 = vperm.xlu0 %2665, %v3356_v6   ;;  %v3452_v30 = vld [vmem:[%s3322_s16 + $0x60] sm:$0xff]  ;;  %v3457_v31 = vld [vmem:[%s3322_s16 + $0x78] sm:$0xff]  ;;  %v3460_v32 = vld [vmem:[%s3322_s16 + $0x70] sm:$0xff]  ;;  %p2949_p10 = por %p2948_p6, %p2947_p8 }
  0xbb   : > { %p2950_p3 = pnand %p2949_p10, %p2943_p0 }
  0xbd   : > { %384 = vperm.xlu1 %2666, %v3361_v7   ;;  %381 = vperm.xlu0 %2665, %v3364_v8  }
  0xc1   : > { %390 = vperm.xlu1 %2666, %v3367_v9   ;;  %387 = vperm.xlu0 %2665, %v3370_v10  }
  0xc5   : > { %396 = vperm.xlu1 %2666, %v3375_v11   ;;  %393 = vperm.xlu0 %2665, %v3378_v12  }
  0xc9   : > { %402 = vperm.xlu1 %2666, %v3385_v13   ;;  %399 = vperm.xlu0 %2665, %v3388_v14  }
  0xcd   : > { %408 = vperm.xlu1 %2666, %v3393_v15   ;;  %405 = vperm.xlu0 %2665, %v3396_v16  }
  0xd1   : > { %433 = vperm.xlu1 %2666, %v3401_v17   ;;  %428 = vperm.xlu0 %2665, %v3404_v18  }
  0xd5   : > { %443 = vperm.xlu1 %2666, %v3409_v19   ;;  %438 = vperm.xlu0 %2665, %v3412_v20  }
  0xd9   : > { %453 = vperm.xlu1 %2666, %v3417_v21   ;;  %448 = vperm.xlu0 %2665, %v3420_v22  }
  0xdd   : > { %463 = vperm.xlu1 %2666, %v3425_v23   ;;  %458 = vperm.xlu0 %2665, %v3428_v24  }
  0xe1   : > { %473 = vperm.xlu1 %2666, %v3433_v25   ;;  %468 = vperm.xlu0 %2665, %v3436_v26  }
  0xe5   : > { %483 = vperm.xlu1 %2666, %v3441_v27   ;;  %478 = vperm.xlu0 %2665, %v3444_v28  }
  0xe9   : > { %493 = vperm.xlu1 %2666, %v3449_v29   ;;  %488 = vperm.xlu0 %2665, %v3452_v30  }
  0xed   : > { %503 = vperm.xlu1 %2666, %v3457_v31   ;;  %498 = vperm.xlu0 %2665, %v3460_v32  }
  0xf1   : > { %2668 = vset.pattern.permute.xlu1 %v3030_v33  ;;  %2667 = vset.pattern.permute.xlu0 %v3030_v33 }
  0xf2   : > { %542 = vperm.xlu1 %2668, %v3348_v4   ;;  %539 = vperm.xlu0 %2667, %v3340_v2  }
  0xf6   : > { %545 = vperm.xlu1 %2668, %v3337_v1   ;;  %548 = vperm.xlu0 %2667, %v3345_v3  }
  0xfa   : > { %551 = vperm.xlu1 %2668, %v3356_v6   ;;  %554 = vperm.xlu0 %2667, %v3353_v5  }
  0xfe   : > { %557 = vperm.xlu1 %2668, %v3364_v8   ;;  %560 = vperm.xlu0 %2667, %v3361_v7  }
 0x102   : > { %563 = vperm.xlu1 %2668, %v3370_v10   ;;  %566 = vperm.xlu0 %2667, %v3367_v9  }
 0x106   : > { %569 = vperm.xlu1 %2668, %v3378_v12   ;;  %572 = vperm.xlu0 %2667, %v3375_v11  }
 0x10a   : > { %575 = vperm.xlu1 %2668, %v3388_v14   ;;  %578 = vperm.xlu0 %2667, %v3385_v13  }
 0x10e   : > { %581 = vperm.xlu1 %2668, %v3396_v16   ;;  %584 = vperm.xlu0 %2667, %v3393_v15  }
 0x112   : > { %603 = vperm.xlu1 %2668, %v3404_v18   ;;  %607 = vperm.xlu0 %2667, %v3401_v17  }
 0x116   : > { %611 = vperm.xlu1 %2668, %v3412_v20   ;;  %615 = vperm.xlu0 %2667, %v3409_v19  }
 0x11a   : > { %619 = vperm.xlu1 %2668, %v3420_v22   ;;  %623 = vperm.xlu0 %2667, %v3417_v21  }
 0x11e   : > { %627 = vperm.xlu1 %2668, %v3428_v24   ;;  %631 = vperm.xlu0 %2667, %v3425_v23  }
 0x122   : > { %635 = vperm.xlu1 %2668, %v3436_v26   ;;  %639 = vperm.xlu0 %2667, %v3433_v25  }
 0x126   : > { %643 = vperm.xlu1 %2668, %v3444_v28   ;;  %647 = vperm.xlu0 %2667, %v3441_v27  }
 0x12a   : > { %651 = vperm.xlu1 %2668, %v3452_v30   ;;  %655 = vperm.xlu0 %2667, %v3449_v29  }
 0x12e   : > { %659 = vperm.xlu1 %2668, %v3460_v32   ;;  %663 = vperm.xlu0 %2667, %v3457_v31  }
 0x130   : > { %v3496_v34 = vpop.permute.xlu1 %369  ;;  %v3498_v35 = vpop.permute.xlu0 %363 }
 0x132   : > { %2669 = vset.pattern.permute.xlu1 %v3031_v36  ;;  %2670 = vset.pattern.permute.xlu0 %v3031_v36 }
 0x133   : > { %699 = vperm.xlu1 %2669, %v3340_v2   ;;  %702 = vperm.xlu0 %2670, %v3348_v4  }
 0x134   : > { %v3502_v37 = vpop.permute.xlu1 %372  ;;  %v3504_v38 = vpop.permute.xlu0 %366 }
 0x137   : > { %705 = vperm.xlu1 %2669, %v3337_v1   ;;  %711 = vperm.xlu0 %2670, %v3356_v6  }
 0x138   : > { %v3508_v39 = vpop.permute.xlu1 %378  ;;  %v3510_v40 = vpop.permute.xlu0 %375 }
 0x13b   : > { %708 = vperm.xlu1 %2669, %v3345_v3   ;;  %717 = vperm.xlu0 %2670, %v3364_v8  }
 0x13c   : > { %v3514_v41 = vpop.permute.xlu1 %384  ;;  %v3516_v42 = vpop.permute.xlu0 %381 }
 0x13f   : > { %714 = vperm.xlu1 %2669, %v3353_v5   ;;  %723 = vperm.xlu0 %2670, %v3370_v10  }
 0x140   : > { %v3520_v43 = vpop.permute.xlu1 %390  ;;  %v3522_v44 = vpop.permute.xlu0 %387 }
 0x141   : > { %4771 = vst [vmem:[#allocation17_spill] sm:$0xff] %v3520_v43 }
 0x143   : > { %720 = vperm.xlu1 %2669, %v3361_v7   ;;  %729 = vperm.xlu0 %2670, %v3378_v12  }
 0x144   : > { %v3526_v45 = vpop.permute.xlu1 %396  ;;  %v3528_v46 = vpop.permute.xlu0 %393 }
 0x145   : > { %4772 = vst [vmem:[#allocation18_spill] sm:$0xff] %v3526_v45  ;;  %4773 = vst [vmem:[#allocation19_spill] sm:$0xff] %v3528_v46 }
 0x147   : > { %726 = vperm.xlu1 %2669, %v3367_v9   ;;  %735 = vperm.xlu0 %2670, %v3388_v14  }
 0x148   : > { %v3532_v47 = vpop.permute.xlu1 %402  ;;  %v3534_v48 = vpop.permute.xlu0 %399 }
 0x149   : > { %4774 = vst [vmem:[#allocation20_spill] sm:$0xff] %v3532_v47  ;;  %4775 = vst [vmem:[#allocation21_spill] sm:$0xff] %v3534_v48 }
 0x14b   : > { %732 = vperm.xlu1 %2669, %v3375_v11   ;;  %741 = vperm.xlu0 %2670, %v3396_v16  }
 0x14c   : > { %v3538_v49 = vpop.permute.xlu1 %408  ;;  %v3540_v50 = vpop.permute.xlu0 %405 }
 0x14d   : > { %4776 = vst [vmem:[#allocation22_spill] sm:$0xff] %v3538_v49  ;;  %4777 = vst [vmem:[#allocation23_spill] sm:$0xff] %v3540_v50  ;;  %v3032_v50 = vmov 3  }
 0x14f   : > { %738 = vperm.xlu1 %2669, %v3385_v13   ;;  %763 = vperm.xlu0 %2670, %v3404_v18  }
 0x150   : > { %v3544_v51 = vpop.permute.xlu1 %433  ;;  %v3546_v52 = vpop.permute.xlu0 %428 }
 0x153   : > { %744 = vperm.xlu1 %2669, %v3393_v15   ;;  %771 = vperm.xlu0 %2670, %v3412_v20  }
 0x154   : > { %v3550_v53 = vpop.permute.xlu1 %443  ;;  %v3552_v54 = vpop.permute.xlu0 %438 }
 0x157   : > { %767 = vperm.xlu1 %2669, %v3401_v17   ;;  %779 = vperm.xlu0 %2670, %v3420_v22  }
 0x158   : > { %v3556_v55 = vpop.permute.xlu1 %453  ;;  %v3558_v56 = vpop.permute.xlu0 %448 }
 0x15b   : > { %775 = vperm.xlu1 %2669, %v3409_v19   ;;  %787 = vperm.xlu0 %2670, %v3428_v24  }
 0x15c   : > { %v3562_v57 = vpop.permute.xlu1 %463  ;;  %v3564_v58 = vpop.permute.xlu0 %458 }
 0x15f   : > { %783 = vperm.xlu1 %2669, %v3417_v21   ;;  %795 = vperm.xlu0 %2670, %v3436_v26  }
 0x160   : > { %v3568_v59 = vpop.permute.xlu1 %473  ;;  %v3570_v60 = vpop.permute.xlu0 %468 }
 0x161   : > { %4778 = vst [vmem:[#allocation24_spill] sm:$0xff] %v3568_v59  ;;  %4779 = vst [vmem:[#allocation25_spill] sm:$0xff] %v3570_v60 }
 0x163   : > { %791 = vperm.xlu1 %2669, %v3425_v23   ;;  %803 = vperm.xlu0 %2670, %v3444_v28  }
 0x164   : > { %v3574_v61 = vpop.permute.xlu1 %483  ;;  %v3576_v62 = vpop.permute.xlu0 %478 }
 0x165   : > { %4780 = vst [vmem:[#allocation26_spill] sm:$0xff] %v3574_v61  ;;  %4781 = vst [vmem:[#allocation27_spill] sm:$0xff] %v3576_v62 }
 0x167   : > { %799 = vperm.xlu1 %2669, %v3433_v25   ;;  %811 = vperm.xlu0 %2670, %v3452_v30  }
 0x168   : > { %v3580_v63 = vpop.permute.xlu1 %493  ;;  %v3582_v0 = vpop.permute.xlu0 %488 }
 0x169   : > { %4782 = vst [vmem:[#allocation28_spill] sm:$0xff] %v3580_v63  ;;  %4783 = vst [vmem:[#allocation29_spill] sm:$0xff] %v3582_v0 }
 0x16b   : > { %807 = vperm.xlu1 %2669, %v3441_v27   ;;  %819 = vperm.xlu0 %2670, %v3460_v32  }
 0x16c   : > { %v3586_v33 = vpop.permute.xlu1 %503  ;;  %v3588_v36 = vpop.permute.xlu0 %498 }
 0x16d   : > { %4784 = vst [vmem:[#allocation30_spill] sm:$0xff] %v3586_v33  ;;  %4785 = vst [vmem:[#allocation31_spill] sm:$0xff] %v3588_v36 }
 0x16f   : > { %815 = vperm.xlu1 %2669, %v3449_v29   ;;  %2671 = vset.pattern.permute.xlu0 %v3032_v50 }
 0x170   : > { %859 = vperm.xlu0 %2671, %v3340_v2  }
 0x171   : > { %v3592_v49 = vpop.permute.xlu1 %542  ;;  %v3594_v47 = vpop.permute.xlu0 %539 }
 0x173   : > { %823 = vperm.xlu1 %2669, %v3457_v31  }
 0x174   : > { %868 = vperm.xlu0 %2671, %v3345_v3  }
 0x175   : > { %v3598_v63 = vpop.permute.xlu1 %545  ;;  %v3600_v0 = vpop.permute.xlu0 %548 }
 0x177   : > { %2672 = vset.pattern.permute.xlu1 %v3032_v50 }
 0x178   : > { %862 = vperm.xlu1 %2672, %v3348_v4   ;;  %874 = vperm.xlu0 %2671, %v3353_v5  }
 0x179   : > { %v3604_v36 = vpop.permute.xlu1 %551  ;;  %v3606_v33 = vpop.permute.xlu0 %554 }
 0x17c   : > { %865 = vperm.xlu1 %2672, %v3337_v1   ;;  %880 = vperm.xlu0 %2671, %v3361_v7  }
 0x17d   : > { %v3610_v48 = vpop.permute.xlu1 %557  ;;  %v3612_v62 = vpop.permute.xlu0 %560 }
 0x17e   : > { %4786 = vst [vmem:[#allocation32_spill] sm:$0xff] %v3610_v48  ;;  %4787 = vst [vmem:[#allocation33_spill] sm:$0xff] %v3612_v62 }
 0x180   : > { %871 = vperm.xlu1 %2672, %v3356_v6   ;;  %886 = vperm.xlu0 %2671, %v3367_v9  }
 0x181   : > { %v3616_v50 = vpop.permute.xlu1 %563  ;;  %v3618_v61 = vpop.permute.xlu0 %566 }
 0x182   : > { %4788 = vst [vmem:[#allocation34_spill] sm:$0xff] %v3616_v50  ;;  %4789 = vst [vmem:[#allocation35_spill] sm:$0xff] %v3618_v61 }
 0x184   : > { %877 = vperm.xlu1 %2672, %v3364_v8   ;;  %892 = vperm.xlu0 %2671, %v3375_v11  }
 0x185   : > { %v3622_v46 = vpop.permute.xlu1 %569  ;;  %v3624_v45 = vpop.permute.xlu0 %572 }
 0x186   : > { %4790 = vst [vmem:[#allocation36_spill] sm:$0xff] %v3622_v46  ;;  %4791 = vst [vmem:[#allocation37_spill] sm:$0xff] %v3624_v45 }
 0x188   : > { %883 = vperm.xlu1 %2672, %v3370_v10   ;;  %898 = vperm.xlu0 %2671, %v3385_v13  }
 0x189   : > { %v3628_v59 = vpop.permute.xlu1 %575  ;;  %v3630_v43 = vpop.permute.xlu0 %578 }
 0x18a   : > { %4792 = vst [vmem:[#allocation38_spill] sm:$0xff] %v3628_v59  ;;  %4793 = vst [vmem:[#allocation39_spill] sm:$0xff] %v3630_v43 }
 0x18c   : > { %889 = vperm.xlu1 %2672, %v3378_v12   ;;  %904 = vperm.xlu0 %2671, %v3393_v15  }
 0x18d   : > { %v3634_v61 = vpop.permute.xlu1 %581  ;;  %v3636_v50 = vpop.permute.xlu0 %584 }
 0x18e   : > { %4794 = vst [vmem:[#allocation40_spill] sm:$0xff] %v3634_v61  ;;  %4795 = vst [vmem:[#allocation41_spill] sm:$0xff] %v3636_v50 }
 0x190   : > { %895 = vperm.xlu1 %2672, %v3388_v14   ;;  %927 = vperm.xlu0 %2671, %v3401_v17  }
 0x191   : > { %v3640_v46 = vpop.permute.xlu1 %603  ;;  %v3642_v45 = vpop.permute.xlu0 %607 }
 0x194   : > { %901 = vperm.xlu1 %2672, %v3396_v16   ;;  %935 = vperm.xlu0 %2671, %v3409_v19  }
 0x195   : > { %v3646_v43 = vpop.permute.xlu1 %611  ;;  %v3648_v59 = vpop.permute.xlu0 %615 }
 0x196   : > { %4796 = vst [vmem:[#allocation42_spill] sm:$0xff] %v3646_v43  ;;  %4797 = vst [vmem:[#allocation43_spill] sm:$0xff] %v3648_v59 }
 0x198   : > { %923 = vperm.xlu1 %2672, %v3404_v18   ;;  %943 = vperm.xlu0 %2671, %v3417_v21  }
 0x199   : > { %v3652_v61 = vpop.permute.xlu1 %619  ;;  %v3654_v50 = vpop.permute.xlu0 %623 }
 0x19a   : > { %4798 = vst [vmem:[#allocation44_spill] sm:$0xff] %v3652_v61  ;;  %4799 = vst [vmem:[#allocation45_spill] sm:$0xff] %v3654_v50 }
 0x19c   : > { %931 = vperm.xlu1 %2672, %v3412_v20   ;;  %951 = vperm.xlu0 %2671, %v3425_v23  }
 0x19d   : > { %v3658_v48 = vpop.permute.xlu1 %627  ;;  %v3660_v60 = vpop.permute.xlu0 %631 }
 0x19e   : > { %4800 = vst [vmem:[#allocation46_spill] sm:$0xff] %v3658_v48  ;;  %4801 = vst [vmem:[#allocation47_spill] sm:$0xff] %v3660_v60 }
 0x1a0   : > { %939 = vperm.xlu1 %2672, %v3420_v22   ;;  %959 = vperm.xlu0 %2671, %v3433_v25  }
 0x1a1   : > { %v3664_v59 = vpop.permute.xlu1 %635  ;;  %v3666_v43 = vpop.permute.xlu0 %639 }
 0x1a2   : > { %4802 = vst [vmem:[#allocation48_spill] sm:$0xff] %v3664_v59  ;;  %4803 = vst [vmem:[#allocation49_spill] sm:$0xff] %v3666_v43 }
 0x1a4   : > { %947 = vperm.xlu1 %2672, %v3428_v24   ;;  %967 = vperm.xlu0 %2671, %v3441_v27  }
 0x1a5   : > { %v3670_v50 = vpop.permute.xlu1 %643  ;;  %v3672_v61 = vpop.permute.xlu0 %647 }
 0x1a6   : > { %4804 = vst [vmem:[#allocation50_spill] sm:$0xff] %v3670_v50  ;;  %4805 = vst [vmem:[#allocation51_spill] sm:$0xff] %v3672_v61  ;;  %v4732_v50 = vmov 4  }
 0x1a8   : > { %955 = vperm.xlu1 %2672, %v3436_v26   ;;  %975 = vperm.xlu0 %2671, %v3449_v29  }
 0x1a9   : > { %v3676_v60 = vpop.permute.xlu1 %651  ;;  %v3678_v48 = vpop.permute.xlu0 %655 }
 0x1aa   : > { %4806 = vst [vmem:[#allocation52_spill] sm:$0xff] %v3676_v60  ;;  %4807 = vst [vmem:[#allocation53_spill] sm:$0xff] %v3678_v48 }
 0x1ac   : > { %963 = vperm.xlu1 %2672, %v3444_v28   ;;  %983 = vperm.xlu0 %2671, %v3457_v31  }
 0x1ad   : > { %v3682_v43 = vpop.permute.xlu1 %659  ;;  %v3684_v59 = vpop.permute.xlu0 %663 }
 0x1ae   : > { %4808 = vst [vmem:[#allocation54_spill] sm:$0xff] %v3682_v43  ;;  %4809 = vst [vmem:[#allocation55_spill] sm:$0xff] %v3684_v59 }
 0x1b0   : > { %971 = vperm.xlu1 %2672, %v3452_v30   ;;  %2674 = vset.pattern.permute.xlu0 %v4732_v50 }
 0x1b1   : > { %1022 = vperm.xlu0 %2674, %v3348_v4  }
 0x1b2   : > { %v3689_v61 = vpop.permute.xlu1 %699  ;;  %v3691_v60 = vpop.permute.xlu0 %702 }
 0x1b3   : > { %4810 = vst [vmem:[#allocation56_spill] sm:$0xff] %v3689_v61  ;;  %4811 = vst [vmem:[#allocation57_spill] sm:$0xff] %v3691_v60 }
 0x1b4   : > { %979 = vperm.xlu1 %2672, %v3460_v32  }
 0x1b5   : > { %1083 = vperm.xlu0 %2674, %v3404_v18  }
 0x1b6   : > { %v3695_v48 = vpop.permute.xlu1 %705  ;;  %v3697_v43 = vpop.permute.xlu0 %711 }
 0x1b7   : > { %4812 = vst [vmem:[#allocation58_spill] sm:$0xff] %v3695_v48  ;;  %4813 = vst [vmem:[#allocation59_spill] sm:$0xff] %v3697_v43  ;;  %v4735_v43 = vmov 5  }
 0x1b8   : > { %2673 = vset.pattern.permute.xlu1 %v4732_v50 }
 0x1b9   : > { %1019 = vperm.xlu1 %2673, %v3340_v2   ;;  %1091 = vperm.xlu0 %2674, %v3412_v20  }
 0x1ba   : > { %v3702_v59 = vpop.permute.xlu1 %708  ;;  %v3704_v62 = vpop.permute.xlu0 %717 }
 0x1bb   : > { %4814 = vst [vmem:[#allocation60_spill] sm:$0xff] %v3702_v59  ;;  %4815 = vst [vmem:[#allocation61_spill] sm:$0xff] %v3704_v62 }
 0x1bd   : > { %1025 = vperm.xlu1 %2673, %v3337_v1   ;;  %1034 = vperm.xlu0 %2674, %v3353_v5  }
 0x1be   : > { %v3708_v61 = vpop.permute.xlu1 %714  ;;  %v3710_v60 = vpop.permute.xlu0 %723 }
 0x1bf   : > { %4816 = vst [vmem:[#allocation62_spill] sm:$0xff] %v3708_v61  ;;  %4817 = vst [vmem:[#allocation63_spill] sm:$0xff] %v3710_v60 }
 0x1c1   : > { %1028 = vperm.xlu1 %2673, %v3345_v3   ;;  %1037 = vperm.xlu0 %2674, %v3364_v8  }
 0x1c2   : > { %v3714_v50 = vpop.permute.xlu1 %720  ;;  %v3716_v48 = vpop.permute.xlu0 %729 }
 0x1c3   : > { %4818 = vst [vmem:[#allocation64_spill] sm:$0xff] %v3714_v50  ;;  %4819 = vst [vmem:[#allocation65_spill] sm:$0xff] %v3716_v48 }
 0x1c5   : > { %1087 = vperm.xlu1 %2673, %v3401_v17   ;;  %1099 = vperm.xlu0 %2674, %v3420_v22  }
 0x1c6   : > { %v3720_v59 = vpop.permute.xlu1 %726  ;;  %v3722_v62 = vpop.permute.xlu0 %735 }
 0x1c7   : > { %4820 = vst [vmem:[#allocation66_spill] sm:$0xff] %v3720_v59  ;;  %4821 = vst [vmem:[#allocation67_spill] sm:$0xff] %v3722_v62 }
 0x1c9   : > { %1095 = vperm.xlu1 %2673, %v3409_v19   ;;  %1107 = vperm.xlu0 %2674, %v3428_v24  }
 0x1ca   : > { %v3726_v60 = vpop.permute.xlu1 %732  ;;  %v3728_v61 = vpop.permute.xlu0 %741 }
 0x1cb   : > { %4822 = vst [vmem:[#allocation68_spill] sm:$0xff] %v3726_v60  ;;  %4823 = vst [vmem:[#allocation69_spill] sm:$0xff] %v3728_v61 }
 0x1cd   : > { %2675 = vset.pattern.permute.xlu1 %v4735_v43  ;;  %1046 = vperm.xlu0 %2674, %v3367_v9  }
 0x1ce   : > { %1182 = vperm.xlu1 %2675, %v3348_v4   ;;  %v3733_v48 = vpop.permute.xlu1 %738  ;;  %v3735_v59 = vpop.permute.xlu0 %763 }
 0x1cf   : > { %4824 = vst [vmem:[#allocation70_spill] sm:$0xff] %v3733_v48  ;;  %4825 = vst [vmem:[#allocation71_spill] sm:$0xff] %v3735_v59 }
 0x1d1   : > { %1049 = vperm.xlu0 %2674, %v3378_v12  }
 0x1d2   : > { %1185 = vperm.xlu1 %2675, %v3337_v1   ;;  %v3739_v62 = vpop.permute.xlu1 %744  ;;  %v3741_v60 = vpop.permute.xlu0 %771 }
 0x1d3   : > { %4826 = vst [vmem:[#allocation72_spill] sm:$0xff] %v3739_v62  ;;  %4827 = vst [vmem:[#allocation73_spill] sm:$0xff] %v3741_v60  ;;  %v4738_v62 = vmov 6  }
 0x1d5   : > { %1115 = vperm.xlu0 %2674, %v3436_v26  }
 0x1d6   : > { %1243 = vperm.xlu1 %2675, %v3404_v18   ;;  %v3745_v43 = vpop.permute.xlu1 %767  ;;  %v3747_v61 = vpop.permute.xlu0 %779 }
 0x1d7   : > { %4828 = vst [vmem:[#allocation74_spill] sm:$0xff] %v3745_v43  ;;  %4829 = vst [vmem:[#allocation75_spill] sm:$0xff] %v3747_v61 }
 0x1d9   : > { %1123 = vperm.xlu0 %2674, %v3444_v28  }
 0x1da   : > { %1251 = vperm.xlu1 %2675, %v3412_v20   ;;  %v3751_v48 = vpop.permute.xlu1 %775  ;;  %v3753_v50 = vpop.permute.xlu0 %787 }
 0x1db   : > { %4830 = vst [vmem:[#allocation76_spill] sm:$0xff] %v3751_v48  ;;  %4831 = vst [vmem:[#allocation77_spill] sm:$0xff] %v3753_v50 }
 0x1dd   : > { %1058 = vperm.xlu0 %2674, %v3385_v13  }
 0x1de   : > { %2676 = vset.pattern.permute.xlu1 %v4738_v62  ;;  %v3757_v60 = vpop.permute.xlu1 %783  ;;  %v3759_v59 = vpop.permute.xlu0 %795 }
 0x1df   : > { %4832 = vst [vmem:[#allocation78_spill] sm:$0xff] %v3757_v60  ;;  %4833 = vst [vmem:[#allocation79_spill] sm:$0xff] %v3759_v59  ;;  %1339 = vperm.xlu1 %2676, %v3340_v2   ;;  %v4851_v60 = vmov 4  }
 0x1e1   : > { %1061 = vperm.xlu0 %2674, %v3396_v16   ;;  %v4840_v16 = vmov 5  }
 0x1e2   : > { %v3763_v61 = vpop.permute.xlu1 %791  ;;  %v3765_v43 = vpop.permute.xlu0 %803 }
 0x1e3   : > { %4834 = vst [vmem:[#allocation80_spill] sm:$0xff] %v3763_v61  ;;  %4835 = vst [vmem:[#allocation81_spill] sm:$0xff] %v3765_v43  ;;  %1345 = vperm.xlu1 %2676, %v3337_v1   ;;  %v4741_v61 = vmov 7  }
 0x1e5   : > { %1131 = vperm.xlu0 %2674, %v3452_v30  }
 0x1e6   : > { %v3769_v50 = vpop.permute.xlu1 %799  ;;  %v3771_v48 = vpop.permute.xlu0 %811 }
 0x1e7   : > { %4836 = vst [vmem:[#allocation82_spill] sm:$0xff] %v3769_v50  ;;  %4837 = vst [vmem:[#allocation83_spill] sm:$0xff] %v3771_v48  ;;  %1348 = vperm.xlu1 %2676, %v3345_v3  }
 0x1e9   : > { %1139 = vperm.xlu0 %2674, %v3460_v32  }
 0x1ea   : > { %v3775_v62 = vpop.permute.xlu1 %807  ;;  %v3777_v59 = vpop.permute.xlu0 %819 }
 0x1eb   : > { %4838 = vst [vmem:[#allocation84_spill] sm:$0xff] %v3775_v62  ;;  %4839 = vst [vmem:[#allocation85_spill] sm:$0xff] %v3777_v59  ;;  %1407 = vperm.xlu1 %2676, %v3401_v17  }
 0x1ed   : > { %2693 = vset.pattern.permute.xlu0 %v4840_v16 }
 0x1ee   : > { %v3781_v43 = vpop.permute.xlu1 %815  ;;  %1179 = vperm.xlu0 %2693, %v3340_v2  }
 0x1ef   : > { %4841 = vst [vmem:[#allocation86_spill] sm:$0xff] %v3781_v43  ;;  %1415 = vperm.xlu1 %2676, %v3409_v19   ;;  %v3785_v50 = vpop.permute.xlu0 %859 }
 0x1f0   : > { %4842 = vst [vmem:[#allocation87_spill] sm:$0xff] %v3785_v50 }
 0x1f2   : > { %v3787_v48 = vpop.permute.xlu1 %823  ;;  %1188 = vperm.xlu0 %2693, %v3345_v3  }
 0x1f3   : > { %4843 = vst [vmem:[#allocation88_spill] sm:$0xff] %v3787_v48  ;;  %2677 = vset.pattern.permute.xlu1 %v4741_v61  ;;  %v3791_v59 = vpop.permute.xlu0 %868 }
 0x1f4   : > { %4844 = vst [vmem:[#allocation89_spill] sm:$0xff] %v3791_v59  ;;  %1502 = vperm.xlu1 %2677, %v3348_v4  }
 0x1f6   : > { %1247 = vperm.xlu0 %2693, %v3401_v17  }
 0x1f7   : > { %v3795_v43 = vpop.permute.xlu1 %862  ;;  %v3797_v62 = vpop.permute.xlu0 %874 }
 0x1f8   : > { %4845 = vst [vmem:[#allocation90_spill] sm:$0xff] %v3795_v43  ;;  %4846 = vst [vmem:[#allocation91_spill] sm:$0xff] %v3797_v62  ;;  %1505 = vperm.xlu1 %2677, %v3337_v1  }
 0x1fa   : > { %1255 = vperm.xlu0 %2693, %v3409_v19  }
 0x1fb   : > { %v3801_v48 = vpop.permute.xlu1 %865  ;;  %v3803_v50 = vpop.permute.xlu0 %880 }
 0x1fc   : > { %4847 = vst [vmem:[#allocation92_spill] sm:$0xff] %v3801_v48  ;;  %4848 = vst [vmem:[#allocation93_spill] sm:$0xff] %v3803_v50  ;;  %1563 = vperm.xlu1 %2677, %v3404_v18   ;;  %v4854_v48 = vmov 7  }
 0x1fe   : > { %1191 = vperm.xlu0 %2693, %v3356_v6  }
 0x1ff   : > { %v3807_v61 = vpop.permute.xlu1 %871  ;;  %v3809_v59 = vpop.permute.xlu0 %886 }
 0x200   : > { %4849 = vst [vmem:[#allocation94_spill] sm:$0xff] %v3807_v61  ;;  %4850 = vst [vmem:[#allocation95_spill] sm:$0xff] %v3809_v59  ;;  %2678 = vset.pattern.permute.xlu1 %v4851_v60 }
 0x201   : > { %1031 = vperm.xlu1 %2678, %v3356_v6  }
 0x202   : > { %1200 = vperm.xlu0 %2693, %v3361_v7  }
 0x203   : > { %v3814_v1 = vpop.permute.xlu1 %877  ;;  %v3816_v43 = vpop.permute.xlu0 %892 }
 0x204   : > { %4852 = vst [vmem:[#allocation96_spill] sm:$0xff] %v3814_v1  ;;  %4853 = vst [vmem:[#allocation97_spill] sm:$0xff] %v3816_v43 }
 0x205   : > { %2679 = vset.pattern.permute.xlu1 %v4854_v48 }
 0x206   : > { %1571 = vperm.xlu1 %2679, %v3412_v20   ;;  %1263 = vperm.xlu0 %2693, %v3417_v21  }
 0x207   : > { %v3821_v50 = vpop.permute.xlu1 %883  ;;  %v3823_v61 = vpop.permute.xlu0 %898 }
 0x208   : > { %4855 = vst [vmem:[#allocation98_spill] sm:$0xff] %v3821_v50  ;;  %4856 = vst [vmem:[#allocation99_spill] sm:$0xff] %v3823_v61 }
 0x20a   : > { %1575 = vperm.xlu1 %2679, %v3409_v19   ;;  %1271 = vperm.xlu0 %2693, %v3425_v23  }
 0x20b   : > { %v3827_v59 = vpop.permute.xlu1 %889  ;;  %v3829_v62 = vpop.permute.xlu0 %904 }
 0x20c   : > { %4857 = vst [vmem:[#allocation100_spill] sm:$0xff] %v3827_v59  ;;  %4858 = vst [vmem:[#allocation101_spill] sm:$0xff] %v3829_v62 }
 0x20e   : > { %2680 = vset.pattern.permute.xlu1 %v4851_v60  ;;  %1203 = vperm.xlu0 %2693, %v3370_v10  }
 0x20f   : > { %1040 = vperm.xlu1 %2680, %v3361_v7   ;;  %v3834_v43 = vpop.permute.xlu1 %895  ;;  %v3836_v1 = vpop.permute.xlu0 %927 }
 0x210   : > { %4859 = vst [vmem:[#allocation102_spill] sm:$0xff] %v3834_v43  ;;  %4860 = vst [vmem:[#allocation103_spill] sm:$0xff] %v3836_v1  ;;  %v4875_v1 = vmov 6  }
 0x212   : > { %1212 = vperm.xlu0 %2693, %v3375_v11  }
 0x213   : > { %1103 = vperm.xlu1 %2680, %v3417_v21   ;;  %v3840_v19 = vpop.permute.xlu1 %901  ;;  %v3842_v61 = vpop.permute.xlu0 %935 }
 0x214   : > { %4861 = vst [vmem:[#allocation104_spill] sm:$0xff] %v3840_v19  ;;  %4862 = vst [vmem:[#allocation105_spill] sm:$0xff] %v3842_v61 }
 0x216   : > { %1279 = vperm.xlu0 %2693, %v3433_v25  }
 0x217   : > { %1111 = vperm.xlu1 %2680, %v3425_v23   ;;  %v3846_v62 = vpop.permute.xlu1 %923  ;;  %v3848_v59 = vpop.permute.xlu0 %943 }
 0x218   : > { %4863 = vst [vmem:[#allocation106_spill] sm:$0xff] %v3846_v62  ;;  %4864 = vst [vmem:[#allocation107_spill] sm:$0xff] %v3848_v59 }
 0x21a   : > { %1287 = vperm.xlu0 %2693, %v3441_v27  }
 0x21b   : > { %2681 = vset.pattern.permute.xlu1 %v4840_v16  ;;  %v3852_v43 = vpop.permute.xlu1 %931  ;;  %v3854_v50 = vpop.permute.xlu0 %951 }
 0x21c   : > { %4865 = vst [vmem:[#allocation108_spill] sm:$0xff] %v3852_v43  ;;  %4866 = vst [vmem:[#allocation109_spill] sm:$0xff] %v3854_v50  ;;  %1194 = vperm.xlu1 %2681, %v3353_v5  }
 0x21e   : > { %1215 = vperm.xlu0 %2693, %v3388_v14  }
 0x21f   : > { %v3858_v19 = vpop.permute.xlu1 %939  ;;  %v3860_v61 = vpop.permute.xlu0 %959 }
 0x220   : > { %4867 = vst [vmem:[#allocation110_spill] sm:$0xff] %v3858_v19  ;;  %4868 = vst [vmem:[#allocation111_spill] sm:$0xff] %v3860_v61  ;;  %1197 = vperm.xlu1 %2681, %v3364_v8  }
 0x222   : > { %1224 = vperm.xlu0 %2693, %v3393_v15  }
 0x223   : > { %v3864_v59 = vpop.permute.xlu1 %947  ;;  %v3866_v62 = vpop.permute.xlu0 %967 }
 0x224   : > { %4869 = vst [vmem:[#allocation112_spill] sm:$0xff] %v3864_v59  ;;  %4870 = vst [vmem:[#allocation113_spill] sm:$0xff] %v3866_v62  ;;  %1259 = vperm.xlu1 %2681, %v3420_v22  }
 0x226   : > { %1295 = vperm.xlu0 %2693, %v3449_v29  }
 0x227   : > { %v3870_v50 = vpop.permute.xlu1 %955  ;;  %v3872_v43 = vpop.permute.xlu0 %975 }
 0x228   : > { %4871 = vst [vmem:[#allocation114_spill] sm:$0xff] %v3870_v50  ;;  %4872 = vst [vmem:[#allocation115_spill] sm:$0xff] %v3872_v43  ;;  %1267 = vperm.xlu1 %2681, %v3428_v24  }
 0x22a   : > { %1303 = vperm.xlu0 %2693, %v3457_v31  }
 0x22b   : > { %v3876_v61 = vpop.permute.xlu1 %963  ;;  %v3878_v19 = vpop.permute.xlu0 %983 }
 0x22c   : > { %4873 = vst [vmem:[#allocation116_spill] sm:$0xff] %v3876_v61  ;;  %4874 = vst [vmem:[#allocation117_spill] sm:$0xff] %v3878_v19  ;;  %2682 = vset.pattern.permute.xlu1 %v4875_v1 }
 0x22d   : > { %1351 = vperm.xlu1 %2682, %v3356_v6  }
 0x22e   : > { %2695 = vset.pattern.permute.xlu0 %v4875_v1 }
 0x22f   : > { %v3883_v62 = vpop.permute.xlu1 %971  ;;  %1342 = vperm.xlu0 %2695, %v3348_v4  }
 0x230   : > { %4876 = vst [vmem:[#allocation118_spill] sm:$0xff] %v3883_v62  ;;  %v3886_v50 = vpop.permute.xlu0 %1022 }
 0x231   : > { %4877 = vst [vmem:[#allocation119_spill] sm:$0xff] %v3886_v50  ;;  %1357 = vperm.xlu1 %2682, %v3364_v8  }
 0x233   : > { %v3889_v43 = vpop.permute.xlu1 %979  ;;  %1403 = vperm.xlu0 %2695, %v3404_v18  }
 0x234   : > { %4878 = vst [vmem:[#allocation120_spill] sm:$0xff] %v3889_v43  ;;  %v3892_v61 = vpop.permute.xlu0 %1083 }
 0x235   : > { %4879 = vst [vmem:[#allocation121_spill] sm:$0xff] %v3892_v61  ;;  %1360 = vperm.xlu1 %2682, %v3361_v7  }
 0x237   : > { %1411 = vperm.xlu0 %2695, %v3412_v20  }
 0x238   : > { %v3896_v19 = vpop.permute.xlu1 %1019  ;;  %v3898_v59 = vpop.permute.xlu0 %1091 }
 0x239   : > { %4880 = vst [vmem:[#allocation122_spill] sm:$0xff] %v3898_v59  ;;  %1423 = vperm.xlu1 %2682, %v3417_v21  }
 0x23b   : > { %1354 = vperm.xlu0 %2695, %v3353_v5  }
 0x23c   : > { %v3902_v4 = vpop.permute.xlu1 %1025  ;;  %v3904_v62 = vpop.permute.xlu0 %1034 }
 0x23d   : > { %4881 = vst [vmem:[#allocation123_spill] sm:$0xff] %v3904_v62  ;;  %1431 = vperm.xlu1 %2682, %v3425_v23  }
 0x23f   : > { %1419 = vperm.xlu0 %2695, %v3420_v22  }
 0x240   : > { %v3908_v18 = vpop.permute.xlu1 %1028  ;;  %v3910_v43 = vpop.permute.xlu0 %1037 }
 0x241   : > { %4882 = vst [vmem:[#allocation124_spill] sm:$0xff] %v3908_v18  ;;  %4883 = vst [vmem:[#allocation125_spill] sm:$0xff] %v3910_v43  ;;  %2683 = vset.pattern.permute.xlu1 %v4854_v48 }
 0x242   : > { %1514 = vperm.xlu1 %2683, %v3353_v5   ;;  %v2699_v5 = vld [vmem:[#allocation7] sm:$0xff]  }
 0x243   : > { %1427 = vperm.xlu0 %2695, %v3428_v24   ;;  %2505 = vmatprep.subr.bf16.mxu0 %v2699_v5 }
 0x244   : > { %v3915_v59 = vpop.permute.xlu1 %1087  ;;  %v3917_v61 = vpop.permute.xlu0 %1099  ;;  %2506 = vmatpush3.bf16.msra.mxu0 %v2699_v5 }
 0x245   : > { %4884 = vst [vmem:[#allocation126_spill] sm:$0xff] %v3917_v61  ;;  %v2700_v61 = vld [vmem:[#allocation7 + $0x8] sm:$0xff]  }
 0x246   : > { %1517 = vperm.xlu1 %2683, %v3364_v8   ;;  %2507 = vmatprep.subr.bf16.mxu0 %v2700_v61 }
 0x247   : > { %1366 = vperm.xlu0 %2695, %v3367_v9  }
 0x248   : > { %v3921_v62 = vpop.permute.xlu1 %1095  ;;  %v3923_v50 = vpop.permute.xlu0 %1107  ;;  %2508 = vmatpush3.bf16.msra.mxu0 %v2700_v61  ;;  %v2703_v61 = vld [vmem:[#allocation7 + $0x20] sm:$0xff]  }
 0x249   : > { %4885 = vst [vmem:[#allocation127_spill] sm:$0xff] %v3921_v62  ;;  %4886 = vst [vmem:[#allocation128_spill] sm:$0xff] %v3923_v50 }
 0x24a   : > { %1579 = vperm.xlu1 %2683, %v3420_v22  }
 0x24b   : > { %1435 = vperm.xlu0 %2695, %v3436_v26  }
 0x24c   : > { %v3927_v43 = vpop.permute.xlu0 %1046 }
 0x24d   : > { %4887 = vst [vmem:[#allocation129_spill] sm:$0xff] %v3927_v43  ;;  %v3929_v18 = vpop.permute.xlu1 %1182 }
 0x24e   : > { %4888 = vst [vmem:[#allocation130_spill] sm:$0xff] %v3929_v18  ;;  %2684 = vset.pattern.permute.xlu1 %v4851_v60  ;;  %v2701_v18 = vld [vmem:[#allocation7 + $0x10] sm:$0xff]  }
 0x24f   : > { %1043 = vperm.xlu1 %2684, %v3370_v10   ;;  %1443 = vperm.xlu0 %2695, %v3444_v28  }
 0x250   : > { %v3934_v8 = vpop.permute.xlu0 %1049  ;;  %2509 = vmatprep.subr.bf16.mxu0 %v2701_v18 }
 0x251   : > { %4889 = vst [vmem:[#allocation131_spill] sm:$0xff] %v3934_v8  ;;  %v3936_v50 = vpop.permute.xlu1 %1185  ;;  %2510 = vmatpush3.bf16.msra.mxu0 %v2701_v18  ;;  %v2702_v8 = vld [vmem:[#allocation7 + $0x18] sm:$0xff]   ;;  %v2704_v18 = vld [vmem:[#allocation7 + $0x28] sm:$0xff]  }
 0x252   : > { %4890 = vst [vmem:[#allocation132_spill] sm:$0xff] %v3936_v50  ;;  %2511 = vmatprep.subr.bf16.mxu0 %v2702_v8 }
 0x253   : > { %2685 = vset.pattern.permute.xlu1 %v4854_v48  ;;  %1378 = vperm.xlu0 %2695, %v3385_v13  }
 0x254   : > { %1587 = vperm.xlu1 %2685, %v3428_v24   ;;  %v3941_v43 = vpop.permute.xlu0 %1115 }
 0x255   : > { %4891 = vst [vmem:[#allocation133_spill] sm:$0xff] %v3941_v43  ;;  %v3943_v62 = vpop.permute.xlu1 %1243  ;;  %2512 = vmatpush3.bf16.msra.mxu0 %v2702_v8 }
 0x256   : > { %2513 = vmatprep.subr.bf16.mxu0 %v2703_v61 }
 0x257   : > { %1451 = vperm.xlu0 %2695, %v3452_v30  }
 0x258   : > { %1591 = vperm.xlu1 %2685, %v3425_v23   ;;  %v3947_v5 = vpop.permute.xlu0 %1123 }
 0x259   : > { %4892 = vst [vmem:[#allocation134_spill] sm:$0xff] %v3947_v5  ;;  %v3949_v50 = vpop.permute.xlu1 %1251  ;;  %2514 = vmatpush3.bf16.msra.mxu0 %v2703_v61  ;;  %v2706_v61 = vld [vmem:[#allocation7 + $0x38] sm:$0xff]  }
 0x25a   : > { %2515 = vmatprep.subr.bf16.mxu0 %v2704_v18 }
 0x25b   : > { %1459 = vperm.xlu0 %2695, %v3460_v32  }
 0x25c   : > { %2686 = vset.pattern.permute.xlu1 %v4851_v60  ;;  %v3953_v13 = vpop.permute.xlu0 %1058 }
 0x25d   : > { %4893 = vst [vmem:[#allocation135_spill] sm:$0xff] %v3953_v13  ;;  %1052 = vperm.xlu1 %2686, %v3375_v11   ;;  %2516 = vmatpush3.bf16.msra.mxu0 %v2704_v18  ;;  %v2705_v13 = vld [vmem:[#allocation7 + $0x30] sm:$0xff]  }
 0x25e   : > { %v3956_v43 = vpop.permute.xlu1 %1339  ;;  %2517 = vmatprep.subr.bf16.mxu0 %v2705_v13 }
 0x25f   : > { %4894 = vst [vmem:[#allocation136_spill] sm:$0xff] %v3956_v43  ;;  %2697 = vset.pattern.permute.xlu0 %v4854_v48 }
 0x260   : > { %1499 = vperm.xlu0 %2697, %v3340_v2   ;;  %v3960_v23 = vpop.permute.xlu0 %1061 }
 0x261   : > { %4895 = vst [vmem:[#allocation137_spill] sm:$0xff] %v3960_v23  ;;  %1119 = vperm.xlu1 %2686, %v3433_v25   ;;  %2518 = vmatpush3.bf16.msra.mxu0 %v2705_v13  ;;  %v360_v13 = vlaneseq }
 0x262   : > { %v3963_v5 = vpop.permute.xlu1 %1345  ;;  %2519 = vmatprep.subr.bf16.mxu0 %v2706_v61 }
 0x264   : > { %1508 = vperm.xlu0 %2697, %v3345_v3   ;;  %v3966_v8 = vpop.permute.xlu0 %1131 }
 0x265   : > { %4896 = vst [vmem:[#allocation138_spill] sm:$0xff] %v3966_v8  ;;  %1127 = vperm.xlu1 %2686, %v3441_v27   ;;  %2520 = vmatpush3.bf16.msra.mxu0 %v2706_v61 }
 0x266   : > { %v3969_v43 = vpop.permute.xlu1 %1348 }
 0x268   : > { %1567 = vperm.xlu0 %2697, %v3401_v17   ;;  %v3972_v2 = vpop.permute.xlu0 %1139 }
 0x269   : > { %4897 = vst [vmem:[#allocation139_spill] sm:$0xff] %v3972_v2  ;;  %2687 = vset.pattern.permute.xlu1 %v4840_v16 }
 0x26a   : > { %1206 = vperm.xlu1 %2687, %v3367_v9   ;;  %v3976_v3 = vpop.permute.xlu1 %1407  ;;  %v3989_v9 = vand.u32 127, %v360_v13 }
 0x26b   : > { %4898 = vst [vmem:[#allocation140_spill] sm:$0xff] %v3976_v3 }
 0x26c   : > { %1511 = vperm.xlu0 %2697, %v3356_v6   ;;  %vm410_vm5 = vcmp.eq.s32.totalorder %v3989_v9, %v3498_v35  ;;  %vm411_vm6 = vcmp.eq.s32.totalorder %v3989_v9, %v3504_v38  ;;  %vm412_vm7 = vcmp.eq.s32.totalorder %v3989_v9, %v3496_v34  ;;  %vm413_vm8 = vcmp.eq.s32.totalorder %v3989_v9, %v3502_v37 }
 0x26d   : > { %v3979_v18 = vpop.permute.xlu0 %1179  ;;  %vm415_vm9 = vcmp.eq.s32.totalorder %v3989_v9, %v3508_v39  ;;  %vm414_vm10 = vcmp.eq.s32.totalorder %v3989_v9, %v3510_v40  ;;  %vm417_vm11 = vcmp.eq.s32.totalorder %v3989_v9, %v3514_v41  ;;  %vm416_vm12 = vcmp.eq.s32.totalorder %v3989_v9, %v3516_v42  ;;  %v2782_v41 = vld [vmem:[%s3315_s15 + $0x60] sm:$0xff] }
 0x26e   : > { %1209 = vperm.xlu1 %2687, %v3378_v12   ;;  %v3982_v23 = vpop.permute.xlu1 %1415  ;;  %vm418_vm13 = vcmp.eq.s32.totalorder %v3989_v9, %v3522_v44  ;;  %v506_v34 = vsel %vm410_vm5, %v3546_v52, 0.0  ;;  %vm586_vm14 = vcmp.eq.s32.totalorder %v3989_v9, %v3594_v47  ;;  %v509_v35 = vsel %vm413_vm8, %v3550_v53, 0.0 }
 0x26f   : > { %v508_v37 = vsel %vm412_vm7, %v3552_v54, 0.0  ;;  %v511_v38 = vsel %vm415_vm9, %v3556_v55, 0.0  ;;  %vm589_vm15 = vcmp.eq.s32.totalorder %v3989_v9, %v3600_v0  ;;  %v510_v39 = vsel %vm414_vm10, %v3558_v56, 0.0  ;;  %v4916_v54 = vld [vmem:[#allocation33_spill] sm:$0xff]  ;;  %v4917_v55 = vld [vmem:[#allocation42_spill] sm:$0xff] }
 0x270   : > { %1520 = vperm.xlu0 %2697, %v3361_v7   ;;  %v513_v40 = vsel %vm417_vm11, %v3562_v57, 0.0  ;;  %v666_v52 = vsel %vm586_vm14, %v3640_v46, 0.0  ;;  %vm593_vm5 = vcmp.eq.s32.totalorder %v3989_v9, %v4916_v54  ;;  %v4918_v57 = vld [vmem:[#allocation43_spill] sm:$0xff]  ;;  %v4920_v46 = vld [vmem:[#allocation32_spill] sm:$0xff] }
 0x271   : > { %v1189_v2 = vpop.permute.xlu0 %1188  ;;  %v669_v42 = vsel %vm589_vm15, %v4918_v57, 0.0  ;;  %v682_v0 = vadd.f32 %v666_v52, %v506_v34  ;;  %v4929_v34 = vld [vmem:[#allocation48_spill] sm:$0xff]  ;;  %v4930_v52 = vld [vmem:[#allocation59_spill] sm:$0xff] }
 0x272   : > { %1275 = vperm.xlu1 %2687, %v3436_v26   ;;  %vm1229_vm0 = vcmp.eq.s32.totalorder %v3989_v9, %v1189_v2  ;;  %vm750_vm9 = vcmp.eq.s32.totalorder %v3989_v9, %v4930_v52  ;;  %v4940_v52 = vld [vmem:[#allocation75_spill] sm:$0xff] }
 0x273   : > { %v3986_v8 = vpop.permute.xlu1 %1502 }
 0x274   : > { %4899 = vst [vmem:[#allocation141_spill] sm:$0xff] %v3986_v8  ;;  %1583 = vperm.xlu0 %2697, %v3417_v21  }
 0x275   : > { %v3991_v6 = vpop.permute.xlu0 %1247 }
 0x276   : > { %1283 = vperm.xlu1 %2687, %v3444_v28  }
 0x277   : > { %v3995_v61 = vpop.permute.xlu1 %1505 }
 0x278   : > { %4900 = vst [vmem:[#allocation142_spill] sm:$0xff] %v3995_v61  ;;  %1523 = vperm.xlu0 %2697, %v3370_v10  }
 0x279   : > { %v1256_v7 = vpop.permute.xlu0 %1255 }
 0x27a   : > { %v3998_v3 = vsel %vm1229_vm0, %v1256_v7, 0.0  ;;  %2688 = vset.pattern.permute.xlu1 %v4875_v1  ;;  %vm587_vm0 = vcmp.eq.s32.totalorder %v3989_v9, %v3592_v49 }
 0x27b   : > { %1363 = vperm.xlu1 %2688, %v3370_v10   ;;  %v4002_v21 = vpop.permute.xlu1 %1563  ;;  %v667_v53 = vsel %vm587_vm0, %v3642_v45, 0.0 }
 0x27c   : > { %4901 = vst [vmem:[#allocation143_spill] sm:$0xff] %v4002_v21  ;;  %1532 = vperm.xlu0 %2697, %v3375_v11  }
 0x27d   : > { %v4005_v13 = vpop.permute.xlu0 %1191 }
 0x27e   : > { %4902 = vst [vmem:[#allocation144_spill] sm:$0xff] %v4005_v13 }
 0x27f   : > { %1369 = vperm.xlu1 %2688, %v3378_v12  }
 0x280   : > { %v4008_v2 = vpop.permute.xlu1 %1031  ;;  %1599 = vperm.xlu0 %2697, %v3433_v25  }
 0x281   : > { %4903 = vst [vmem:[#allocation145_spill] sm:$0xff] %v4008_v2  ;;  %v1201_v61 = vpop.permute.xlu0 %1200 }
 0x282   : > { %vm1233_vm1 = vcmp.eq.s32.totalorder %v3989_v9, %v1201_v61  ;;  %v2779_v61 = vld [vmem:[%s3315_s15 + $0x48] sm:$0xff] }
 0x283   : > { %1372 = vperm.xlu1 %2688, %v3375_v11  }
 0x284   : > { %1535 = vperm.xlu0 %2697, %v3388_v14  }
 0x285   : > { %v4013_v7 = vpop.permute.xlu1 %1571  ;;  %v4015_v10 = vpop.permute.xlu0 %1263 }
 0x286   : > { %4904 = vst [vmem:[#allocation146_spill] sm:$0xff] %v4013_v7  ;;  %4905 = vst [vmem:[#allocation147_spill] sm:$0xff] %v4015_v10 }
 0x287   : > { %1439 = vperm.xlu1 %2688, %v3433_v25  }
 0x288   : > { %1544 = vperm.xlu0 %2697, %v3393_v15  }
 0x289   : > { %v4020_v13 = vpop.permute.xlu1 %1575  ;;  %v1272_v2 = vpop.permute.xlu0 %1271 }
 0x28a   : > { %4906 = vst [vmem:[#allocation148_spill] sm:$0xff] %v4020_v13  ;;  %v4022_v21 = vsel %vm1233_vm1, %v1272_v2, 0.0  ;;  %vm591_vm1 = vcmp.eq.s32.totalorder %v3989_v9, %v3606_v33 }
 0x28b   : > { %4907 = vst [vmem:[#allocation149_spill] sm:$0xff] %v4022_v21  ;;  %1447 = vperm.xlu1 %2688, %v3441_v27  }
 0x28c   : > { %1615 = vperm.xlu0 %2697, %v3449_v29  }
 0x28d   : > { %v4026_v11 = vpop.permute.xlu0 %1203 }
 0x28e   : > { %4908 = vst [vmem:[#allocation150_spill] sm:$0xff] %v4026_v11  ;;  %v4028_v7 = vpop.permute.xlu1 %1040 }
 0x28f   : > { %2689 = vset.pattern.permute.xlu1 %v4854_v48 }
 0x290   : > { %1526 = vperm.xlu1 %2689, %v2779_v61   ;;  %1623 = vperm.xlu0 %2697, %v3457_v31  }
 0x291   : > { %v1213_v25 = vpop.permute.xlu0 %1212 }
 0x292   : > { %v4033_v10 = vpop.permute.xlu1 %1103  ;;  %vm1237_vm2 = vcmp.eq.s32.totalorder %v3989_v9, %v1213_v25 }
 0x294   : > { %1529 = vperm.xlu1 %2689, %v3378_v12  }
 0x295   : > { %v4036_v2 = vpop.permute.xlu0 %1279 }
 0x296   : > { %4909 = vst [vmem:[#allocation151_spill] sm:$0xff] %v4036_v2  ;;  %v4038_v21 = vpop.permute.xlu1 %1111 }
 0x298   : > { %1595 = vperm.xlu1 %2689, %v3436_v26  }
 0x299   : > { %v1288_v11 = vpop.permute.xlu0 %1287 }
 0x29a   : > { %v4042_v8 = vsel %vm1237_vm2, %v1288_v11, 0.0  ;;  %vm588_vm2 = vcmp.eq.s32.totalorder %v3989_v9, %v3598_v63  ;;  %v4921_v63 = vld [vmem:[#allocation44_spill] sm:$0xff] }
 0x29b   : > { %4910 = vst [vmem:[#allocation152_spill] sm:$0xff] %v4042_v8  ;;  %v4044_v13 = vpop.permute.xlu1 %1194  ;;  %v668_v56 = vsel %vm588_vm2, %v4917_v55, 0.0  ;;  %v4924_v55 = vld [vmem:[#allocation46_spill] sm:$0xff] }
 0x29c   : > { %2690 = vset.pattern.permute.xlu1 %v4851_v60  ;;  %v684_v44 = vadd.f32 %v668_v56, %v508_v37  ;;  %v4931_v37 = vld [vmem:[#allocation56_spill] sm:$0xff]  ;;  %v4934_v56 = vld [vmem:[#allocation71_spill] sm:$0xff] }
 0x29d   : > { %1055 = vperm.xlu1 %2690, %v3388_v14   ;;  %v4048_v61 = vpop.permute.xlu0 %1215  ;;  %vm746_vm10 = vcmp.eq.s32.totalorder %v3989_v9, %v4931_v37  ;;  %v830_v37 = vsel %vm750_vm9, %v4940_v52, 0.0  ;;  %vm1068_vm9 = vcmp.eq.s32.totalorder %v3989_v9, %v3902_v4  ;;  %v4968_v4 = vld [vmem:[#allocation109_spill] sm:$0xff] }
 0x29e   : > { %4911 = vst [vmem:[#allocation153_spill] sm:$0xff] %v4048_v61 }
 0x29f   : > { %v4050_v12 = vpop.permute.xlu1 %1197 }
 0x2a1   : > { %2691 = vset.pattern.permute.xlu1 %v4854_v48  ;;  %v1225_v2 = vpop.permute.xlu0 %1224 }
 0x2a2   : > { %1603 = vperm.xlu1 %2691, %v3444_v28   ;;  %vm1241_vm3 = vcmp.eq.s32.totalorder %v3989_v9, %v1225_v2 }
 0x2a3   : > { %v4054_v25 = vpop.permute.xlu1 %1259 }
 0x2a5   : > { %v4056_v26 = vpop.permute.xlu0 %1295 }
 0x2a6   : > { %4912 = vst [vmem:[#allocation154_spill] sm:$0xff] %v4056_v26  ;;  %1607 = vperm.xlu1 %2691, %v3441_v27   ;;  %v1831_v26 = vsel %vm1827_vm4, %v3401_v17, 0.0  ;;  %v1840_v17 = vsel %vm1827_vm4, %v3420_v22, 0.0 }
 0x2a7   : > { %v4060_v11 = vpop.permute.xlu1 %1267 }
 0x2a9   : > { %v1304_v14 = vpop.permute.xlu0 %1303 }
 0x2aa   : > { %2692 = vset.pattern.permute.xlu1 %v4851_v60  ;;  %v4063_v61 = vsel %vm1241_vm3, %v1304_v14, 0.0  ;;  %v1834_v60 = vsel %vm1827_vm4, %v3412_v20, 0.0  ;;  %vm590_vm3 = vcmp.eq.s32.totalorder %v3989_v9, %v3604_v36 }
 0x2ab   : > { %4913 = vst [vmem:[#allocation155_spill] sm:$0xff] %v4063_v61  ;;  %1064 = vperm.xlu1 %2692, %v3393_v15   ;;  %v670_v36 = vsel %vm590_vm3, %v4921_v63, 0.0 }
 0x2ac   : > { %v4066_v28 = vpop.permute.xlu1 %1351 }
 0x2ae   : > { %v4070_v8 = vpop.permute.xlu0 %1342 }
 0x2af   : > { %1135 = vperm.xlu1 %2692, %v3449_v29   ;;  %1832 = vadd.xlane.f32.xlu0 %v1831_v26  ;;  %v4088_v29 = vld [vmem:[%s3315_s15 + $0x68] sm:$0xff] }
 0x2b0   : > { %v4073_v27 = vpop.permute.xlu1 %1357 }
 0x2b2   : > { %v4077_v2 = vpop.permute.xlu0 %1403 }
 0x2b3   : > { %1143 = vperm.xlu1 %2692, %v3457_v31   ;;  %1835 = vadd.xlane.f32.xlu0 %v1834_v60  ;;  %v1846_v31 = vsel %vm1827_vm4, %v3428_v24, 0.0  ;;  %v4098_v60 = vld [vmem:[%s3315_s15 + $0x70] sm:$0xff] }
 0x2b4   : > { %v4080_v15 = vpop.permute.xlu1 %1360 }
 0x2b6   : > { %v4084_v14 = vpop.permute.xlu0 %1411 }
 0x2b7   : > { %2694 = vset.pattern.permute.xlu1 %v4840_v16  ;;  %1841 = vadd.xlane.f32.xlu0 %v1840_v17 }
 0x2b8   : > { %1218 = vperm.xlu1 %2694, %v4088_v29   ;;  %v4091_v20 = vpop.permute.xlu1 %1423 }
 0x2ba   : > { %v4095_v26 = vpop.permute.xlu0 %1354 }
 0x2bb   : > { %1847 = vadd.xlane.f32.xlu0 %v1846_v31 }
 0x2bc   : > { %1221 = vperm.xlu1 %2694, %v4098_v60   ;;  %v4101_v22 = vpop.permute.xlu1 %1431 }
 0x2be   : > { %v4103_v16 = vpop.permute.xlu0 %1419 }
 0x2c0   : > { %1291 = vperm.xlu1 %2694, %v3452_v30  }
 0x2c1   : > { %v4106_v17 = vpop.permute.xlu1 %1514 }
 0x2c2   : > { %v4108_v61 = vpop.permute.xlu0 %1427 }
 0x2c4   : > { %1299 = vperm.xlu1 %2694, %v3460_v32   ;;  %v507_v32 = vsel %vm411_vm6, %v3544_v51, 0.0  ;;  %v512_v51 = vsel %vm416_vm12, %v3564_v58, 0.0  ;;  %v4919_v58 = vld [vmem:[#allocation25_spill] sm:$0xff]  ;;  %vm592_vm6 = vcmp.eq.s32.totalorder %v3989_v9, %v4920_v46 }
 0x2c5   : > { %v4119_v24 = vpop.permute.xlu1 %1517  ;;  %v514_v45 = vsel %vm418_vm13, %v4919_v58, 0.0  ;;  %v683_v54 = vadd.f32 %v667_v53, %v507_v32  ;;  %v672_v57 = vsel %vm592_vm6, %v4924_v55, 0.0  ;;  %v685_v58 = vadd.f32 %v669_v42, %v509_v35  ;;  %v4933_v35 = vld [vmem:[#allocation61_spill] sm:$0xff]  ;;  %v2783_v55 = vld [vmem:[%s3315_s15 + $0x78] sm:$0xff] }
 0x2c6   : > { %v4129_v30 = vpop.permute.xlu0 %1366  ;;  %v688_v53 = vadd.f32 %v672_v57, %v512_v51  ;;  %vm752_vm12 = vcmp.eq.s32.totalorder %v3989_v9, %v4933_v35  ;;  %v826_v42 = vsel %vm746_vm10, %v4934_v56, 0.0  ;;  %v4938_v51 = vld [vmem:[#allocation60_spill] sm:$0xff]  ;;  %v4939_v57 = vld [vmem:[#allocation62_spill] sm:$0xff] }
 0x2c7   : > { %4914 = vst [vmem:[#allocation156_spill] sm:$0xff] %v4129_v30  ;;  %v4925_v30 = vld [vmem:[#allocation47_spill] sm:$0xff]  ;;  %vm749_vm13 = vcmp.eq.s32.totalorder %v3989_v9, %v4938_v51  ;;  %vm751_vm14 = vcmp.eq.s32.totalorder %v3989_v9, %v4939_v57  ;;  %v4944_v35 = vld [vmem:[#allocation76_spill] sm:$0xff]  ;;  %v4947_v57 = vld [vmem:[#allocation78_spill] sm:$0xff] }
 0x2c8   : > { %2696 = vset.pattern.permute.xlu1 %v4875_v1  ;;  %v4922_v1 = vld [vmem:[#allocation45_spill] sm:$0xff]  ;;  %v673_v46 = vsel %vm593_vm5, %v4925_v30, 0.0  ;;  %v4932_v30 = vld [vmem:[#allocation58_spill] sm:$0xff] }
 0x2c9   : > { %1375 = vperm.xlu1 %2696, %v2782_v41   ;;  %v4150_v47 = vpop.permute.xlu1 %1579  ;;  %v671_v31 = vsel %vm591_vm1, %v4922_v1, 0.0  ;;  %v4923_v41 = vld [vmem:[#allocation34_spill] sm:$0xff]  ;;  %v686_v1 = vadd.f32 %v670_v36, %v510_v39  ;;  %vm748_vm11 = vcmp.eq.s32.totalorder %v3989_v9, %v4932_v30  ;;  %v4935_v39 = vld [vmem:[#allocation73_spill] sm:$0xff]  ;;  %v4943_v30 = vld [vmem:[#allocation64_spill] sm:$0xff] }
 0x2ca   : > { %v4160_v49 = vpop.permute.xlu0 %1435  ;;  %vm594_vm7 = vcmp.eq.s32.totalorder %v3989_v9, %v4923_v41  ;;  %v687_v41 = vadd.f32 %v671_v31, %v511_v38  ;;  %v828_v38 = vsel %vm748_vm11, %v4935_v39, 0.0  ;;  %v4936_v36 = vld [vmem:[#allocation74_spill] sm:$0xff]  ;;  %vm753_vm0 = vcmp.eq.s32.totalorder %v3989_v9, %v4943_v30 }
 0x2cb   : > { %4915 = vst [vmem:[#allocation157_spill] sm:$0xff] %v4160_v49  ;;  %v4926_v49 = vld [vmem:[#allocation57_spill] sm:$0xff]  ;;  %v674_v32 = vsel %vm594_vm7, %v4929_v34, 0.0  ;;  %v4224_v52 = vadd.f32 %v830_v37, %v686_v1 }
 0x2cc   : > { %vm747_vm8 = vcmp.eq.s32.totalorder %v3989_v9, %v4926_v49  ;;  %v689_v49 = vadd.f32 %v673_v46, %v513_v40  ;;  %v4206_v34 = vadd.f32 %v674_v32, %v514_v45  ;;  %v4942_v46 = vld [vmem:[#allocation63_spill] sm:$0xff]  ;;  %v829_v45 = vsel %vm749_vm13, %v4944_v35, 0.0  ;;  %v4945_v32 = vld [vmem:[#allocation77_spill] sm:$0xff] }
 0x2cd   : > { %1381 = vperm.xlu1 %2696, %v4098_v60   ;;  %v827_v31 = vsel %vm747_vm8, %v4936_v36, 0.0  ;;  %vm754_vm15 = vcmp.eq.s32.totalorder %v3989_v9, %v4942_v46  ;;  %v832_v56 = vsel %vm752_vm12, %v4945_v32, 0.0  ;;  %v842_v36 = vadd.f32 %v826_v42, %v682_v0  ;;  %v4233_v35 = vld [vmem:[%s3322_s16 + $0x68] sm:$0xff] }
 0x2ce   : > { %v4189_v63 = vpop.permute.xlu1 %1043  ;;  %v4191_v33 = vpop.permute.xlu0 %1443  ;;  %4937 = vst [vmem:[#allocation43_spill] sm:$0xff] %v4206_v34  ;;  %v843_v51 = vadd.f32 %v827_v31, %v683_v54  ;;  %v4949_v34 = vld [vmem:[#allocation89_spill] sm:$0xff]  ;;  %4951 = vst [vmem:[#allocation44_spill] sm:$0xff] %v4233_v35  ;;  %v845_v0 = vadd.f32 %v829_v45, %v685_v58  ;;  %v4952_v54 = vld [vmem:[#allocation80_spill] sm:$0xff]  ;;  %vm1066_vm8 = vcmp.eq.s32.totalorder %v3989_v9, %v3896_v19 }
 0x2cf   : > { %4927 = vst [vmem:[#allocation33_spill] sm:$0xff] %v4189_v63  ;;  %4928 = vst [vmem:[#allocation42_spill] sm:$0xff] %v4191_v33  ;;  %v831_v33 = vsel %vm751_vm14, %v4947_v57, 0.0  ;;  %vm909_vm2 = vcmp.eq.s32.totalorder %v3989_v9, %v4949_v34  ;;  %v4950_v63 = vld [vmem:[#allocation91_spill] sm:$0xff]  ;;  %v833_v1 = vsel %vm753_vm0, %v4952_v54, 0.0  ;;  %v4953_v42 = vld [vmem:[#allocation90_spill] sm:$0xff]  ;;  %vm1226_vm0 = vcmp.eq.s32.totalorder %v3989_v9, %v3979_v18 }
 0x2d0   : > { %vm911_vm3 = vcmp.eq.s32.totalorder %v3989_v9, %v4950_v63  ;;  %vm907_vm5 = vcmp.eq.s32.totalorder %v3989_v9, %v4953_v42  ;;  %v847_v31 = vadd.f32 %v831_v33, %v687_v41  ;;  %v4955_v34 = vld [vmem:[#allocation79_spill] sm:$0xff]  ;;  %v4957_v58 = vld [vmem:[#allocation92_spill] sm:$0xff]  ;;  %v4959_v32 = vld [vmem:[#allocation93_spill] sm:$0xff]  ;;  %v849_v42 = vadd.f32 %v833_v1, %v689_v49 }
 0x2d1   : > { %1384 = vperm.xlu1 %2696, %v2783_v55   ;;  %v844_v55 = vadd.f32 %v828_v38, %v684_v44  ;;  %v4236_v44 = vadd.f32 %v832_v56, %v688_v53  ;;  %v4250_v37 = vsel %vm754_vm15, %v4955_v34, 0.0  ;;  %vm908_vm6 = vcmp.eq.s32.totalorder %v3989_v9, %v4957_v58  ;;  %v4958_v53 = vld [vmem:[#allocation103_spill] sm:$0xff]  ;;  %v4960_v56 = vld [vmem:[#allocation105_spill] sm:$0xff]  ;;  %v4961_v54 = vld [vmem:[#allocation106_spill] sm:$0xff] }
 0x2d2   : > { %v4213_v40 = vpop.permute.xlu0 %1378  ;;  %4956 = vst [vmem:[#allocation34_spill] sm:$0xff] %v4250_v37  ;;  %v987_v45 = vsel %vm907_vm5, %v4958_v53, 0.0  ;;  %vm913_vm7 = vcmp.eq.s32.totalorder %v3989_v9, %v4959_v32  ;;  %v989_v57 = vsel %vm909_vm2, %v4960_v56, 0.0  ;;  %v4962_v41 = vld [vmem:[#allocation107_spill] sm:$0xff]  ;;  %v4963_v34 = vld [vmem:[#allocation108_spill] sm:$0xff]  ;;  %v4970_v37 = vld [vmem:[#allocation122_spill] sm:$0xff]  ;;  %vm1388_vm5 = vcmp.eq.s32.totalorder %v3989_v9, %v3963_v5 }
 0x2d3   : > { %4941 = vst [vmem:[#allocation25_spill] sm:$0xff] %v4213_v40  ;;  %v4221_v39 = vpop.permute.xlu1 %1587  ;;  %v4948_v40 = vld [vmem:[#allocation87_spill] sm:$0xff]  ;;  %v991_v46 = vsel %vm911_vm3, %v4962_v41, 0.0  ;;  %v988_v58 = vsel %vm908_vm6, %v4963_v34, 0.0  ;;  %v4966_v56 = vld [vmem:[#allocation96_spill] sm:$0xff]  ;;  %v1003_v63 = vadd.f32 %v987_v45, %v843_v51  ;;  %v1005_v19 = vadd.f32 %v989_v57, %v845_v0  ;;  %v4972_v0 = vld [vmem:[#allocation125_spill] sm:$0xff] }
 0x2d4   : > { %4946 = vst [vmem:[#allocation32_spill] sm:$0xff] %v4221_v39  ;;  %vm906_vm1 = vcmp.eq.s32.totalorder %v3989_v9, %v4948_v40  ;;  %v4274_v53 = vld [vmem:[%s3322_s16 + $0x78] sm:$0xff]  ;;  %v4965_v40 = vld [vmem:[#allocation94_spill] sm:$0xff]  ;;  %vm912_vm11 = vcmp.eq.s32.totalorder %v3989_v9, %v4966_v56  ;;  %v4285_v41 = vadd.f32 %v991_v46, %v847_v31  ;;  %v993_v34 = vsel %vm913_vm7, %v4968_v4, 0.0 }
 0x2d5   : > { %1455 = vperm.xlu1 %2696, %v4233_v35   ;;  %v986_v33 = vsel %vm906_vm1, %v4961_v54, 0.0  ;;  %4964 = vst [vmem:[#allocation46_spill] sm:$0xff] %v4274_v53  ;;  %vm910_vm10 = vcmp.eq.s32.totalorder %v3989_v9, %v4965_v40  ;;  %v4967_v49 = vld [vmem:[#allocation119_spill] sm:$0xff]  ;;  %v1148_v39 = vsel %vm1068_vm9, %v4970_v37, 0.0  ;;  %v4971_v51 = vld [vmem:[#allocation124_spill] sm:$0xff]  ;;  %vm1072_vm14 = vcmp.eq.s32.totalorder %v3989_v9, %v4972_v0  ;;  %v4975_v37 = vld [vmem:[#allocation110_spill] sm:$0xff] }
 0x2d6   : > { %v4244_v38 = vpop.permute.xlu0 %1451  ;;  %vm1067_vm12 = vcmp.eq.s32.totalorder %v3989_v9, %v4967_v49  ;;  %v1002_v54 = vadd.f32 %v986_v33, %v842_v36  ;;  %vm1069_vm13 = vcmp.eq.s32.totalorder %v3989_v9, %v4971_v51  ;;  %v4973_v31 = vld [vmem:[#allocation127_spill] sm:$0xff]  ;;  %v4974_v32 = vld [vmem:[#allocation132_spill] sm:$0xff]  ;;  %v4308_v33 = vsel %vm910_vm10, %v4975_v37, 0.0 }
 0x2d7   : > { %4954 = vst [vmem:[#allocation45_spill] sm:$0xff] %v4244_v38  ;;  %v4255_v30 = vpop.permute.xlu1 %1591  ;;  %v1004_v38 = vadd.f32 %v988_v58, %v844_v55  ;;  %v1147_v36 = vsel %vm1067_vm12, %v3915_v59, 0.0  ;;  %v1149_v57 = vsel %vm1069_vm13, %v4973_v31, 0.0  ;;  %vm1228_vm15 = vcmp.eq.s32.totalorder %v3989_v9, %v4974_v32  ;;  %v4976_v59 = vld [vmem:[#allocation112_spill] sm:$0xff]  ;;  %v4977_v4 = vld [vmem:[#allocation123_spill] sm:$0xff]  ;;  %v4979_v31 = vld [vmem:[#allocation130_spill] sm:$0xff] }
 0x2d8   : > { %v1009_v55 = vadd.f32 %v993_v34, %v849_v42  ;;  %v1308_v46 = vsel %vm1228_vm15, %v3949_v50, 0.0  ;;  %v992_v58 = vsel %vm912_vm11, %v4976_v59, 0.0  ;;  %v2786_v49 = vld [vmem:[%s3322_s16 + $0x40] sm:$0xff]  ;;  %vm1071_vm1 = vcmp.eq.s32.totalorder %v3989_v9, %v4977_v4  ;;  %v4984_v59 = vld [vmem:[#allocation143_spill] sm:$0xff] }
 0x2d9   : > { %1463 = vperm.xlu1 %2696, %v4274_v53   ;;  %v4969_v53 = vld [vmem:[#allocation121_spill] sm:$0xff]  ;;  %v1164_v42 = vadd.f32 %v1148_v39, %v1004_v38  ;;  %v1852_v40 = vsel %vm1827_vm4, %v2786_v49, 0.0  ;;  %v1163_v50 = vadd.f32 %v1147_v36, %v1003_v63  ;;  %v1165_v34 = vadd.f32 %v1149_v57, %v1005_v19  ;;  %v4978_v51 = vld [vmem:[#allocation128_spill] sm:$0xff]  ;;  %v2787_v19 = vld [vmem:[%s3322_s16 + $0x50] sm:$0xff] }
 0x2da   : > { %v4283_v1 = vpop.permute.xlu0 %1459  ;;  %v1146_v35 = vsel %vm1066_vm8, %v4969_v53, 0.0  ;;  %vm1227_vm2 = vcmp.eq.s32.totalorder %v3989_v9, %v4979_v31  ;;  %1853 = vadd.xlane.f32.xlu0 %v1852_v40  ;;  %v1306_v38 = vsel %vm1226_vm0, %v3943_v62, 0.0  ;;  %vm1387_vm3 = vcmp.eq.s32.totalorder %v3989_v9, %v4070_v8  ;;  %v4980_v18 = vld [vmem:[#allocation136_spill] sm:$0xff]  ;;  %v4983_v57 = vld [vmem:[#allocation141_spill] sm:$0xff] }
 0x2db   : > { %v1324_v39 = vadd.f32 %v1308_v46, %v1164_v42  ;;  %vm1389_vm6 = vcmp.eq.s32.totalorder %v3989_v9, %v3969_v43  ;;  %v1307_v56 = vsel %vm1227_vm2, %v3991_v6, 0.0  ;;  %v1325_v63 = vadd.f32 %v3998_v3, %v1165_v34  ;;  %v4981_v6 = vld [vmem:[#allocation140_spill] sm:$0xff]  ;;  %v4985_v42 = vld [vmem:[#allocation142_spill] sm:$0xff] }
 0x2dc   : > { %v4295_v45 = vpop.permute.xlu1 %1052  ;;  %v1469_v62 = vsel %vm1389_vm6, %v3982_v23, 0.0  ;;  %vm1386_vm7 = vcmp.eq.s32.totalorder %v3989_v9, %v4980_v18  ;;  %v1468_v8 = vsel %vm1388_vm5, %v4084_v14, 0.0  ;;  %v1467_v0 = vsel %vm1387_vm3, %v4981_v6, 0.0  ;;  %v4982_v36 = vld [vmem:[#allocation148_spill] sm:$0xff] }
 0x2dd   : > { %2698 = vset.pattern.permute.xlu1 %v4854_v48  ;;  %v1162_v48 = vadd.f32 %v1146_v35, %v1002_v54  ;;  %v1858_v54 = vsel %vm1827_vm4, %v2787_v19, 0.0  ;;  %v1466_v3 = vsel %vm1386_vm7, %v4077_v2, 0.0  ;;  %v1323_v23 = vadd.f32 %v1307_v56, %v1163_v50  ;;  %v4987_v50 = vld [vmem:[#allocation146_spill] sm:$0xff] }
 0x2de   : > { %1538 = vperm.xlu1 %2698, %v4088_v29   ;;  %v1152_v29 = vsel %vm1072_vm14, %v4978_v51, 0.0  ;;  %1859 = vadd.xlane.f32.xlu0 %v1858_v54  ;;  %vm1073_vm10 = vcmp.eq.s32.totalorder %v3989_v9, %v4028_v7  ;;  %vm1547_vm11 = vcmp.eq.s32.totalorder %v3989_v9, %v4983_v57  ;;  %v1485_v32 = vadd.f32 %v1469_v62, %v1325_v63  ;;  %v4988_v54 = vld [vmem:[#allocation144_spill] sm:$0xff]  ;;  %v4989_v62 = vld [vmem:[#allocation126_spill] sm:$0xff] }
 0x2df   : > { %v1500_v53 = vpop.permute.xlu0 %1499  ;;  %v1322_v5 = vadd.f32 %v1306_v38, %v1162_v48  ;;  %v1153_v37 = vsel %vm1073_vm10, %v4038_v21, 0.0  ;;  %v1484_v46 = vadd.f32 %v1468_v8, %v1324_v39  ;;  %v2788_v48 = vld [vmem:[%s3322_s16 + $0x60] sm:$0xff]  ;;  %vm1548_vm12 = vcmp.eq.s32.totalorder %v3989_v9, %v4985_v42 }
 0x2e0   : > { %v4328_v35 = vpop.permute.xlu1 %1119  ;;  %vm1546_vm8 = vcmp.eq.s32.totalorder %v3989_v9, %v1500_v53  ;;  %v4986_v53 = vld [vmem:[#allocation145_spill] sm:$0xff]  ;;  %v1483_v7 = vadd.f32 %v1467_v0, %v1323_v23  ;;  %v1628_v34 = vsel %vm1548_vm12, %v4987_v50, 0.0  ;;  %vm1231_vm14 = vcmp.eq.s32.totalorder %v3989_v9, %v4044_v13  ;;  %v4996_v50 = vld [vmem:[#allocation43_spill] sm:$0xff] }
 0x2e1   : > { %v1626_v2 = vsel %vm1546_vm8, %v4984_v59, 0.0  ;;  %vm1070_vm13 = vcmp.eq.s32.totalorder %v3989_v9, %v4986_v53  ;;  %v1482_v49 = vadd.f32 %v1466_v3, %v1322_v5  ;;  %v1151_v31 = vsel %vm1071_vm1, %v4033_v10, 0.0  ;;  %v4990_v5 = vld [vmem:[#allocation98_spill] sm:$0xff]  ;;  %v4992_v13 = vld [vmem:[#allocation149_spill] sm:$0xff] }
 0x2e2   : > { %1541 = vperm.xlu1 %2698, %v4098_v60   ;;  %v1169_v39 = vadd.f32 %v1153_v37, %v1009_v55  ;;  %v1008_v19 = vadd.f32 %v992_v58, %v4236_v44  ;;  %vm1230_vm15 = vcmp.eq.s32.totalorder %v3989_v9, %v4988_v54  ;;  %v1150_v18 = vsel %vm1070_vm13, %v4989_v62, 0.0  ;;  %v4991_v55 = vld [vmem:[#allocation147_spill] sm:$0xff]  ;;  %v2707_v57 = vld [vmem:[#allocation8] sm:$0xff]   ;;  %v4999_v54 = vld [vmem:[#allocation150_spill] sm:$0xff] }
 0x2e3   : > { %v1509_v43 = vpop.permute.xlu0 %1508  ;;  %v1642_v63 = vadd.f32 %v1626_v2, %v1482_v49  ;;  %v1644_v8 = vadd.f32 %v1628_v34, %v1484_v46  ;;  %vm914_vm0 = vcmp.eq.s32.totalorder %v3989_v9, %v4990_v5  ;;  %v1006_v10 = vadd.f32 %v4308_v33, %v4224_v52  ;;  %2537 = vmatprep.subr.bf16.mxu1 %v2707_v57  ;;  %v2709_v53 = vld [vmem:[#allocation8 + $0x10] sm:$0xff]  }
 0x2e4   : > { %vm1549_vm9 = vcmp.eq.s32.totalorder %v3989_v9, %v1509_v43  ;;  %v4353_v60 = vpop.permute.xlu1 %1127  ;;  %v2789_v43 = vld [vmem:[%s3322_s16 + $0x70] sm:$0xff]  ;;  %v1311_v4 = vsel %vm1231_vm14, %v4991_v55, 0.0  ;;  %v1168_v6 = vadd.f32 %v1152_v29, %v1008_v19  ;;  %v1167_v0 = vadd.f32 %v1151_v31, %v4285_v41  ;;  %2538 = vmatpush3.bf16.msra.mxu1 %v2707_v57  ;;  %v5000_v55 = vld [vmem:[#allocation157_spill] sm:$0xff] }
 0x2e5   : > { %v1629_v14 = vsel %vm1549_vm9, %v4982_v36, 0.0  ;;  %vm1391_vm1 = vcmp.eq.s32.totalorder %v3989_v9, %v4095_v26  ;;  %v1166_v23 = vadd.f32 %v1150_v18, %v1006_v10  ;;  %vm1232_vm2 = vcmp.eq.s32.totalorder %v3989_v9, %v4050_v12  ;;  %v4997_v34 = vld [vmem:[#allocation34_spill] sm:$0xff] }
 0x2e6   : > { %1611 = vperm.xlu1 %2698, %v2788_v48   ;;  %v1645_v21 = vadd.f32 %v1629_v14, %v1485_v32  ;;  %v1310_v52 = vsel %vm1230_vm15, %v4054_v25, 0.0  ;;  %v1329_v33 = vadd.f32 %v4992_v13, %v1169_v39  ;;  %v1327_v29 = vadd.f32 %v1311_v4, %v1167_v0  ;;  %v2708_v32 = vld [vmem:[#allocation8 + $0x8] sm:$0xff]  }
 0x2e7   : > { %v1568_v40 = vpop.permute.xlu0 %1567  ;;  %v1312_v41 = vsel %vm1232_vm2, %v4060_v11, 0.0  ;;  %vm1393_vm3 = vcmp.eq.s32.totalorder %v3989_v9, %v4080_v15  ;;  %vm1390_vm5 = vcmp.eq.s32.totalorder %v3989_v9, %v4066_v28  ;;  %v1471_v12 = vsel %vm1391_vm1, %v4091_v20, 0.0  ;;  %2539 = vmatprep.subr.bf16.mxu1 %v2708_v32  ;;  %v4998_v39 = vld [vmem:[#allocation133_spill] sm:$0xff] }
 0x2e8   : > { %v1627_v51 = vsel %vm1547_vm11, %v1568_v40, 0.0  ;;  %v1659_v3 = vpack.c.bf16 %v1645_v21, %v1644_v8  ;;  %v1473_v26 = vsel %vm1393_vm3, %v4101_v22, 0.0  ;;  %v1864_v14 = vsel %vm1827_vm4, %v2788_v48, 0.0  ;;  %2540 = vmatpush3.bf16.msra.mxu1 %v2708_v32  ;;  %v5007_v32 = vld [vmem:[#allocation82_spill] sm:$0xff] }
 0x2e9   : > { %v1643_v38 = vadd.f32 %v1627_v51, %v1483_v7  ;;  %v4374_v56 = vpop.permute.xlu1 %1206  ;;  %v1326_v37 = vadd.f32 %v1310_v52, %v1166_v23  ;;  %v1470_v11 = vsel %vm1390_vm5, %v4103_v16, 0.0  ;;  %vm1392_vm7 = vcmp.eq.s32.totalorder %v3989_v9, %v4073_v27  ;;  %1865 = vadd.xlane.f32.xlu0 %v1864_v14  ;;  %v4995_v7 = vld [vmem:[#allocation114_spill] sm:$0xff]  ;;  %2541 = vmatprep.subr.bf16.mxu1 %v2709_v53  ;;  %v5002_v52 = vld [vmem:[#allocation49_spill] sm:$0xff]  ;;  %v5006_v14 = vld [vmem:[#allocation24_spill] sm:$0xff] }
 0x2ea   : > { %1619 = vperm.xlu1 %2698, %v2789_v43   ;;  %v1328_v28 = vadd.f32 %v1312_v41, %v1168_v6  ;;  %v1472_v15 = vsel %vm1392_vm7, %v4108_v61, 0.0  ;;  %v1870_v46 = vsel %vm1827_vm4, %v2789_v43, 0.0  ;;  %v1487_v59 = vadd.f32 %v1471_v12, %v1327_v29  ;;  %v4993_v61 = vld [vmem:[#allocation33_spill] sm:$0xff]  ;;  %v5004_v41 = vld [vmem:[#allocation66_spill] sm:$0xff]  ;;  %v5005_v12 = vld [vmem:[#allocation95_spill] sm:$0xff] }
 0x2eb   : > { %v1512_v44 = vpop.permute.xlu0 %1511  ;;  %v1658_v58 = vpack.c.bf16 %v1643_v38, %v1642_v63  ;;  %v1489_v2 = vadd.f32 %v1473_v26, %v1329_v33  ;;  %vm1552_vm9 = vcmp.eq.s32.totalorder %v3989_v9, %v4119_v24  ;;  %v1486_v16 = vadd.f32 %v1470_v11, %v1326_v37  ;;  %v5003_v29 = vld [vmem:[#allocation17_spill] sm:$0xff] }
 0x2ec   : > { %vm1550_vm6 = vcmp.eq.s32.totalorder %v3989_v9, %v1512_v44  ;;  %vm1551_vm10 = vcmp.eq.s32.totalorder %v3989_v9, %v4106_v17  ;;  %vm1074_vm11 = vcmp.eq.s32.totalorder %v3989_v9, %v4993_v61  ;;  %v994_v24 = vsel %vm914_vm0, %v4995_v7, 0.0  ;;  %2542 = vmatpush3.bf16.msra.mxu1 %v2709_v53  ;;  %v2790_v26 = vld [vmem:[%s3322_s16] sm:$0xff]  ;;  %v5013_v7 = vld [vmem:[#allocation18_spill] sm:$0xff] }
 0x2ed   : > { %v4399_v36 = vpop.permute.xlu1 %1209  ;;  %2521 = vmatprep.mubr.bf16.mxu0 %v1658_v58  ;;  %v1630_v27 = vsel %vm1550_vm6, %v4150_v47, 0.0  ;;  %v1488_v49 = vadd.f32 %v1472_v15, %v1328_v28  ;;  %1871 = vadd.xlane.f32.xlu0 %v1870_v46  ;;  %v850_v17 = vadd.f32 %v4997_v34, %v4996_v50  ;;  %v1154_v38 = vsel %vm1074_vm11, %v4998_v39, 0.0  ;;  %v5008_v15 = vld [vmem:[#allocation111_spill] sm:$0xff]  ;;  %v5009_v46 = vld [vmem:[#allocation129_spill] sm:$0xff]  ;;  %v5015_v50 = vld [vmem:[#allocation26_spill] sm:$0xff] }
 0x2ee   : > { %2522 = vmatmul.mubr.bf16.vlgmr.msra.gmra.mrb[0].mxu0 %v1659_v3  ;;  %v1646_v21 = vadd.f32 %v1630_v27, %v1486_v16  ;;  %vm1234_vm12 = vcmp.eq.s32.totalorder %v3989_v9, %v4999_v54  ;;  %v5001_v3 = vld [vmem:[#allocation35_spill] sm:$0xff]  ;;  %vm419_vm15 = vcmp.eq.s32.totalorder %v3989_v9, %v5003_v29  ;;  %vm755_vm0 = vcmp.eq.s32.totalorder %v3989_v9, %v5004_v41  ;;  %v5019_v54 = vld [vmem:[#allocation68_spill] sm:$0xff]  ;;  %v5024_v41 = vld [vmem:[#allocation113_spill] sm:$0xff] }
 0x2ef   : > { %v1521_v25 = vpop.permute.xlu0 %1520  ;;  %v1010_v19 = vadd.f32 %v994_v24, %v850_v17  ;;  %vm595_vm14 = vcmp.eq.s32.totalorder %v3989_v9, %v5001_v3  ;;  %vm915_vm1 = vcmp.eq.s32.totalorder %v3989_v9, %v5005_v12  ;;  %v515_v57 = vsel %vm419_vm15, %v5006_v14, 0.0  ;;  %v5023_v3 = vld [vmem:[#allocation27_spill] sm:$0xff]  ;;  %v5025_v14 = vld [vmem:[#allocation81_spill] sm:$0xff] }
 0x2f0   : > { %vm1553_vm8 = vcmp.eq.s32.totalorder %v3989_v9, %v1521_v25  ;;  %v675_v13 = vsel %vm595_vm14, %v5002_v52, 0.0  ;;  %v1828_v25 = vsel %vm1827_vm4, %v2790_v26, 0.0  ;;  %v835_v37 = vsel %vm755_vm0, %v5007_v32, 0.0 }
 0x2f1   : > { %v1633_v20 = vsel %vm1553_vm8, %v4255_v30, 0.0  ;;  %v1276_v22 = vpop.permute.xlu1 %1275  ;;  %v4994_v30 = vld [vmem:[#allocation32_spill] sm:$0xff]  ;;  %v1170_v43 = vadd.f32 %v1154_v38, %v1010_v19  ;;  %v691_v11 = vadd.f32 %v675_v13, %v515_v57  ;;  %vm1075_vm2 = vcmp.eq.s32.totalorder %v3989_v9, %v5009_v46 }
 0x2f2   : > { %v1632_v48 = vsel %vm1552_vm9, %v4994_v30, 0.0  ;;  %v1649_v47 = vadd.f32 %v1633_v20, %v1489_v2  ;;  %v1314_v18 = vsel %vm1234_vm12, %v1276_v22, 0.0  ;;  %v995_v20 = vsel %vm915_vm1, %v5008_v15, 0.0  ;;  %v2791_v2 = vld [vmem:[%s3322_s16 + $0x18] sm:$0xff] }
 0x2f3   : > { %v1584_v42 = vpop.permute.xlu0 %1583  ;;  %v1648_v63 = vadd.f32 %v1632_v48, %v1488_v49  ;;  %v1330_v10 = vadd.f32 %v1314_v18, %v1170_v43  ;;  %v851_v22 = vadd.f32 %v835_v37, %v691_v11  ;;  %vm1235_vm3 = vcmp.eq.s32.totalorder %v3989_v9, %v4374_v56  ;;  %v5010_v30 = vld [vmem:[#allocation156_spill] sm:$0xff]  ;;  %v5011_v48 = vld [vmem:[#allocation37_spill] sm:$0xff]  ;;  %v5027_v11 = vld [vmem:[#allocation131_spill] sm:$0xff] }
 0x2f4   : > { %v1631_v40 = vsel %vm1551_vm10, %v1584_v42, 0.0  ;;  %v1837_v27 = vsel %vm1827_vm4, %v2791_v2, 0.0  ;;  %v1155_v16 = vsel %vm1075_vm2, %v4328_v35, 0.0  ;;  %vm1395_vm5 = vcmp.eq.s32.totalorder %v3989_v9, %v5010_v30  ;;  %v5012_v42 = vld [vmem:[#allocation151_spill] sm:$0xff]  ;;  %v2792_v35 = vld [vmem:[%s3322_s16 + $0x28] sm:$0xff]  ;;  %v5022_v43 = vld [vmem:[#allocation84_spill] sm:$0xff] }
 0x2f5   : > { %v1647_v51 = vadd.f32 %v1631_v40, %v1487_v59  ;;  %v4433_v31 = vpop.permute.xlu1 %1283  ;;  %v1661_v8 = vpack.c.bf16 %v1649_v47, %v1648_v63  ;;  %v1011_v61 = vadd.f32 %v995_v20, %v851_v22  ;;  %vm597_vm6 = vcmp.eq.s32.totalorder %v3989_v9, %v5011_v48  ;;  %v5014_v40 = vld [vmem:[#allocation19_spill] sm:$0xff]  ;;  %v5018_v63 = vld [vmem:[#allocation50_spill] sm:$0xff]  ;;  %v5026_v37 = vld [vmem:[#allocation100_spill] sm:$0xff] }
 0x2f6   : > { %v1315_v53 = vsel %vm1235_vm3, %v5012_v42, 0.0  ;;  %vm421_vm7 = vcmp.eq.s32.totalorder %v3989_v9, %v5013_v7  ;;  %v1843_v47 = vsel %vm1827_vm4, %v2792_v35, 0.0  ;;  %vm420_vm9 = vcmp.eq.s32.totalorder %v3989_v9, %v5014_v40  ;;  %v2794_v22 = vld [vmem:[%s3322_s16 + $0x48] sm:$0xff]  ;;  %v2710_v48 = vld [vmem:[#allocation8 + $0x18] sm:$0xff]  }
 0x2f7   : > { %v1660_v62 = vpack.c.bf16 %v1647_v51, %v1646_v21  ;;  %v1524_v23 = vpop.permute.xlu0 %1523  ;;  %v1171_v56 = vadd.f32 %v1155_v16, %v1011_v61  ;;  %v517_v34 = vsel %vm421_vm7, %v5015_v50, 0.0  ;;  %v5016_v21 = vld [vmem:[#allocation36_spill] sm:$0xff]  ;;  %v5017_v51 = vld [vmem:[#allocation51_spill] sm:$0xff]  ;;  %vm757_vm12 = vcmp.eq.s32.totalorder %v3989_v9, %v5019_v54  ;;  %v5029_v61 = vld [vmem:[#allocation134_spill] sm:$0xff]  ;;  %2543 = vmatprep.subr.bf16.mxu1 %v2710_v48 }
 0x2f8   : > { %vm596_vm10 = vcmp.eq.s32.totalorder %v3989_v9, %v5016_v21  ;;  %v677_v39 = vsel %vm597_vm6, %v5017_v51, 0.0  ;;  %vm1554_vm11 = vcmp.eq.s32.totalorder %v3989_v9, %v1524_v23  ;;  %v516_v23 = vsel %vm420_vm9, %v5023_v3, 0.0  ;;  %2544 = vmatpush3.bf16.msra.mxu1 %v2710_v48  ;;  %v5030_v35 = vld [vmem:[#allocation42_spill] sm:$0xff]  ;;  %v5031_v40 = vld [vmem:[#allocation152_spill] sm:$0xff]  ;;  %v5038_v3 = vld [vmem:[#allocation29_spill] sm:$0xff] }
 0x2f9   : > { %2525 = vmatprep.mubr.bf16.mxu0 %v1660_v62  ;;  %v1331_v38 = vadd.f32 %v1315_v53, %v1171_v56  ;;  %v676_v19 = vsel %vm596_vm10, %v5018_v63, 0.0  ;;  %v5020_v62 = vld [vmem:[#allocation97_spill] sm:$0xff]  ;;  %v693_v52 = vadd.f32 %v677_v39, %v517_v34  ;;  %vm916_vm15 = vcmp.eq.s32.totalorder %v3989_v9, %v5026_v37  ;;  %v5033_v54 = vld [vmem:[#allocation46_spill] sm:$0xff] }
 0x2fa   : > { %v1364_v5 = vpop.permute.xlu1 %1363  ;;  %2526 = vmatmul.mubr.bf16.gmra.mrb[4].mxu0 %v1661_v8  ;;  %v5021_v8 = vld [vmem:[#allocation65_spill] sm:$0xff]  ;;  %v692_v29 = vadd.f32 %v676_v19, %v516_v23  ;;  %vm1077_vm0 = vcmp.eq.s32.totalorder %v3989_v9, %v4295_v45  ;;  %vm1076_vm1 = vcmp.eq.s32.totalorder %v3989_v9, %v5027_v11  ;;  %vm1236_vm2 = vcmp.eq.s32.totalorder %v3989_v9, %v4399_v36 }
 0x2fb   : > { %vm1394_vm13 = vcmp.eq.s32.totalorder %v3989_v9, %v1364_v5  ;;  %v4459_v28 = vpop.permute.xlu0 %1532  ;;  %vm756_vm14 = vcmp.eq.s32.totalorder %v3989_v9, %v5021_v8  ;;  %v837_v5 = vsel %vm757_vm12, %v5022_v43, 0.0  ;;  %v1157_v15 = vsel %vm1077_vm0, %v4353_v60, 0.0  ;;  %v2795_v60 = vld [vmem:[%s3322_s16 + $0x58] sm:$0xff]  ;;  %v2712_v34 = vld [vmem:[#allocation8 + $0x28] sm:$0xff]  }
 0x2fc   : > { %v1474_v4 = vsel %vm1394_vm13, %v5000_v55, 0.0  ;;  %vm917_vm13 = vcmp.eq.s32.totalorder %v3989_v9, %v5020_v62  ;;  %v836_v57 = vsel %vm756_vm14, %v5025_v14, 0.0  ;;  %v853_v32 = vadd.f32 %v837_v5, %v693_v52  ;;  %v5034_v43 = vld [vmem:[#allocation21_spill] sm:$0xff]  ;;  %v5035_v5 = vld [vmem:[#allocation38_spill] sm:$0xff]  ;;  %v5039_v52 = vld [vmem:[#allocation83_spill] sm:$0xff] }
 0x2fd   : > { %v1490_v44 = vadd.f32 %v1474_v4, %v1330_v10  ;;  %v2793_v4 = vld [vmem:[%s3322_s16 + $0x38] sm:$0xff]  ;;  %v997_v12 = vsel %vm917_vm13, %v5024_v41, 0.0  ;;  %v852_v16 = vadd.f32 %v836_v57, %v692_v29  ;;  %v1156_v30 = vsel %vm1076_vm1, %v5029_v61, 0.0  ;;  %v5040_v41 = vld [vmem:[#allocation102_spill] sm:$0xff]  ;;  %v5043_v11 = vld [vmem:[#allocation153_spill] sm:$0xff] }
 0x2fe   : > { %v4440_v58 = vpop.permute.xlu1 %1369  ;;  %v1013_v46 = vadd.f32 %v997_v12, %v853_v32  ;;  %v1861_v53 = vsel %vm1827_vm4, %v2795_v60, 0.0  ;;  %v1316_v7 = vsel %vm1236_vm2, %v4433_v31, 0.0  ;;  %vm1557_vm6 = vcmp.eq.s32.totalorder %v3989_v9, %v4459_v28  ;;  %v5032_v31 = vld [vmem:[#allocation44_spill] sm:$0xff]  ;;  %v5041_v12 = vld [vmem:[#allocation118_spill] sm:$0xff] }
 0x2ff   : > { %v1600_v24 = vpop.permute.xlu0 %1599  ;;  %vm1396_vm3 = vcmp.eq.s32.totalorder %v3989_v9, %v4440_v58  ;;  %v2711_v58 = vld [vmem:[#allocation8 + $0x20] sm:$0xff]   ;;  %v1873_v28 = vsel %vm1827_vm4, %v5033_v54, 0.0  ;;  %vm598_vm9 = vcmp.eq.s32.totalorder %v3989_v9, %v5035_v5  ;;  %v5042_v57 = vld [vmem:[#allocation138_spill] sm:$0xff]  ;;  %vm1238_vm12 = vcmp.eq.s32.totalorder %v3989_v9, %v5043_v11 }
 0x300   : > { %v1173_v45 = vadd.f32 %v1157_v15, %v1013_v46  ;;  %2545 = vmatprep.subr.bf16.mxu1 %v2711_v58  ;;  %v5046_v60 = vld [vmem:[#allocation20_spill] sm:$0xff]  ;;  %v5062_v5 = vld [vmem:[#allocation54_spill] sm:$0xff] }
 0x301   : > { %2546 = vmatpush3.bf16.msra.mxu1 %v2711_v58 }
 0x302   : > { %v4442_v6 = vpop.permute.xlu1 %1372  ;;  %v1333_v50 = vadd.f32 %v5031_v40, %v1173_v45  ;;  %2547 = vmatprep.subr.bf16.mxu1 %v2712_v34  ;;  %v5045_v45 = vld [vmem:[#allocation41_spill] sm:$0xff]  ;;  %v5051_v40 = vld [vmem:[#allocation55_spill] sm:$0xff] }
 0x303   : > { %vm601_vm14 = vcmp.eq.s32.totalorder %v3989_v9, %v5045_v45 }
 0x305   : > { %2548 = vmatpush3.bf16.msra.mxu1 %v2712_v34  ;;  %v5053_v34 = vld [vmem:[#allocation69_spill] sm:$0xff] }
 0x306   : > { %v1440_v0 = vpop.permute.xlu1 %1439  ;;  %vm760_vm2 = vcmp.eq.s32.totalorder %v3989_v9, %v5053_v34 }
 0x307   : > { %v1475_v17 = vsel %vm1395_vm5, %v1440_v0, 0.0  ;;  %v1849_v0 = vsel %vm1827_vm4, %v2793_v4, 0.0  ;;  %vm1397_vm5 = vcmp.eq.s32.totalorder %v3989_v9, %v4442_v6  ;;  %v1867_v6 = vsel %vm1827_vm4, %v5032_v31, 0.0  ;;  %v5055_v31 = vld [vmem:[#allocation72_spill] sm:$0xff] }
 0x308   : > { %v1491_v10 = vadd.f32 %v1475_v17, %v1331_v38 }
 0x30a   : > { %v4447_v33 = vpop.permute.xlu1 %1447 }
 0x30b   : > { %v1477_v36 = vsel %vm1397_vm5, %v4447_v33, 0.0  ;;  %vm761_vm5 = vcmp.eq.s32.totalorder %v3989_v9, %v5055_v31  ;;  %v5074_v31 = vld [vmem:[#allocation155_spill] sm:$0xff] }
 0x30c   : > { %v1493_v39 = vadd.f32 %v1477_v36, %v1333_v50  ;;  %v681_v50 = vsel %vm601_vm14, %v5051_v40, 0.0  ;;  %v5052_v36 = vld [vmem:[#allocation30_spill] sm:$0xff] }
 0x30e   : > { %1829 = vadd.xlane.f32.xlu1 %v1828_v25 }
 0x30f   : > { %v1527_v59 = vpop.permute.xlu1 %1526 }
 0x310   : > { %vm1555_vm8 = vcmp.eq.s32.totalorder %v3989_v9, %v1527_v59  ;;  %v5028_v59 = vld [vmem:[#allocation116_spill] sm:$0xff] }
 0x311   : > { %v1635_v18 = vsel %vm1555_vm8, %v1600_v24, 0.0  ;;  %v996_v2 = vsel %vm916_vm15, %v5028_v59, 0.0  ;;  %vm422_vm8 = vcmp.eq.s32.totalorder %v3989_v9, %v5034_v43  ;;  %vm423_vm15 = vcmp.eq.s32.totalorder %v3989_v9, %v5046_v60  ;;  %v5071_v60 = vld [vmem:[#allocation154_spill] sm:$0xff] }
 0x312   : > { %1838 = vadd.xlane.f32.xlu1 %v1837_v27  ;;  %v1651_v26 = vadd.f32 %v1635_v18, %v1491_v10  ;;  %v1012_v42 = vadd.f32 %v996_v2, %v852_v16  ;;  %v5036_v10 = vld [vmem:[#allocation67_spill] sm:$0xff]  ;;  %v518_v23 = vsel %vm422_vm8, %v5038_v3, 0.0 }
 0x313   : > { %v4477_v49 = vpop.permute.xlu1 %1529  ;;  %vm758_vm10 = vcmp.eq.s32.totalorder %v3989_v9, %v5036_v10  ;;  %v2714_v2 = vld [vmem:[#allocation8 + $0x38] sm:$0xff]  }
 0x314   : > { %v1172_v56 = vadd.f32 %v1156_v30, %v1012_v42  ;;  %vm1556_vm7 = vcmp.eq.s32.totalorder %v3989_v9, %v4477_v49  ;;  %v5044_v30 = vld [vmem:[#allocation39_spill] sm:$0xff]  ;;  %v4573_v42 = vpop.permute.xlu0 %1535 }
 0x315   : > { %vm599_vm13 = vcmp.eq.s32.totalorder %v3989_v9, %v5044_v30  ;;  %v5070_v30 = vld [vmem:[#allocation139_spill] sm:$0xff] }
 0x316   : > { %1844 = vadd.xlane.f32.xlu1 %v1843_v47  ;;  %v1476_v47 = vsel %vm1396_vm3, %v5030_v35, 0.0  ;;  %v1332_v17 = vadd.f32 %v1316_v7, %v1172_v56  ;;  %v5048_v7 = vld [vmem:[#allocation23_spill] sm:$0xff]  ;;  %v5049_v56 = vld [vmem:[#allocation28_spill] sm:$0xff]  ;;  %v5050_v35 = vld [vmem:[#allocation53_spill] sm:$0xff] }
 0x317   : > { %v1596_v55 = vpop.permute.xlu1 %1595  ;;  %vm424_vm1 = vcmp.eq.s32.totalorder %v3989_v9, %v5048_v7 }
 0x318   : > { %v1634_v13 = vsel %vm1554_vm11, %v1596_v55, 0.0  ;;  %v1492_v51 = vadd.f32 %v1476_v47, %v1332_v17  ;;  %v5037_v55 = vld [vmem:[#allocation52_spill] sm:$0xff]  ;;  %v679_v47 = vsel %vm599_vm13, %v5050_v35, 0.0  ;;  %v5054_v17 = vld [vmem:[#allocation70_spill] sm:$0xff]  ;;  %v1545_v3 = vpop.permute.xlu0 %1544  ;;  %v5073_v35 = vld [vmem:[#allocation45_spill] sm:$0xff] }
 0x319   : > { %v1650_v25 = vadd.f32 %v1634_v13, %v1490_v44  ;;  %v1855_v44 = vsel %vm1827_vm4, %v2794_v22, 0.0  ;;  %v678_v4 = vsel %vm598_vm9, %v5037_v55, 0.0  ;;  %v838_v13 = vsel %vm758_vm10, %v5039_v52, 0.0  ;;  %v5063_v55 = vld [vmem:[#allocation85_spill] sm:$0xff] }
 0x31a   : > { %1850 = vadd.xlane.f32.xlu1 %v1849_v0  ;;  %v694_v29 = vadd.f32 %v678_v4, %v518_v23  ;;  %vm918_vm4 = vcmp.eq.s32.totalorder %v3989_v9, %v5040_v41  ;;  %vm759_vm3 = vcmp.eq.s32.totalorder %v3989_v9, %v5054_v17  ;;  %v840_v4 = vsel %vm760_vm2, %v5063_v55, 0.0  ;;  %v5065_v41 = vld [vmem:[#allocation117_spill] sm:$0xff] }
 0x31b   : > { %v1662_v20 = vpack.c.bf16 %v1651_v26, %v1650_v25  ;;  %v998_v26 = vsel %vm918_vm4, %v5041_v12, 0.0 }
 0x31c   : > { %v1056_v27 = vpop.permute.xlu1 %1055  ;;  %v854_v25 = vadd.f32 %v838_v13, %v694_v29  ;;  %v5064_v13 = vld [vmem:[#allocation115_spill] sm:$0xff] }
 0x31d   : > { %2529 = vmatprep.mubr.bf16.mxu0 %v1662_v20  ;;  %vm1078_vm11 = vcmp.eq.s32.totalorder %v3989_v9, %v1056_v27 }
 0x31e   : > { %1856 = vadd.xlane.f32.xlu1 %v1855_v44  ;;  %v1158_v32 = vsel %vm1078_vm11, %v5042_v57, 0.0  ;;  %v1014_v37 = vadd.f32 %v998_v26, %v854_v25  ;;  %v2713_v44 = vld [vmem:[#allocation8 + $0x30] sm:$0xff]   ;;  %v5066_v26 = vld [vmem:[#allocation137_spill] sm:$0xff] }
 0x31f   : > { %2549 = vmatprep.subr.bf16.mxu1 %v2713_v44  ;;  %vm1080_vm9 = vcmp.eq.s32.totalorder %v3989_v9, %v5066_v26  ;;  %v5067_v25 = vld [vmem:[#allocation135_spill] sm:$0xff] }
 0x320   : > { %v1174_v15 = vadd.f32 %v1158_v32, %v1014_v37  ;;  %2550 = vmatpush3.bf16.msra.mxu1 %v2713_v44  ;;  %vm1079_vm4 = vcmp.eq.s32.totalorder %v3989_v9, %v5067_v25  ;;  %v5068_v37 = vld [vmem:[#allocation104_spill] sm:$0xff]  ;;  %v1160_v45 = vsel %vm1080_vm9, %v5070_v30, 0.0 }
 0x321   : > { %v1604_v24 = vpop.permute.xlu1 %1603  ;;  %2551 = vmatprep.subr.bf16.mxu1 %v2714_v2  ;;  %v5069_v44 = vld [vmem:[#allocation120_spill] sm:$0xff] }
 0x322   : > { %1862 = vadd.xlane.f32.xlu1 %v1861_v53  ;;  %v1636_v21 = vsel %vm1556_vm7, %v1604_v24, 0.0  ;;  %v5047_v53 = vld [vmem:[#allocation22_spill] sm:$0xff]  ;;  %v519_v24 = vsel %vm423_vm15, %v5049_v56, 0.0 }
 0x323   : > { %v1652_v63 = vadd.f32 %v1636_v21, %v1492_v51  ;;  %vm425_vm0 = vcmp.eq.s32.totalorder %v3989_v9, %v5047_v53  ;;  %v5056_v21 = vld [vmem:[#allocation86_spill] sm:$0xff]  ;;  %v695_v54 = vadd.f32 %v679_v47, %v519_v24  ;;  %v5072_v53 = vld [vmem:[#allocation25_spill] sm:$0xff]  ;;  %v1616_v24 = vpop.permute.xlu0 %1615 }
 0x324   : > { %2552 = vmatpush3.bf16.msra.mxu1 %v2714_v2  ;;  %v521_v58 = vsel %vm425_vm0, %v5052_v36, 0.0  ;;  %v839_v51 = vsel %vm759_vm3, %v5056_v21, 0.0  ;;  %vm1399_vm14 = vcmp.eq.s32.totalorder %v3989_v9, %v5072_v53  ;;  %vm1558_vm3 = vcmp.eq.s32.totalorder %v3989_v9, %v4573_v42 }
 0x325   : > { %v1608_v38 = vpop.permute.xlu1 %1607  ;;  %v855_v23 = vadd.f32 %v839_v51, %v695_v54 }
 0x326   : > { %v1637_v33 = vsel %vm1557_vm6, %v1608_v38, 0.0  ;;  %1868 = vadd.xlane.f32.xlu1 %v1867_v6 }
 0x327   : > { %v1653_v19 = vadd.f32 %v1637_v33, %v1493_v39  ;;  %v5057_v39 = vld [vmem:[#allocation88_spill] sm:$0xff]  ;;  %v5058_v33 = vld [vmem:[#allocation99_spill] sm:$0xff] }
 0x328   : > { %v841_v38 = vsel %vm761_vm5, %v5057_v39, 0.0  ;;  %vm919_vm6 = vcmp.eq.s32.totalorder %v3989_v9, %v5058_v33  ;;  %vm1561_vm5 = vcmp.eq.s32.totalorder %v3989_v9, %v1545_v3 }
 0x329   : > { %v1663_v62 = vpack.c.bf16 %v1653_v19, %v1652_v63  ;;  %v5059_v63 = vld [vmem:[#allocation101_spill] sm:$0xff]  ;;  %v5060_v19 = vld [vmem:[#allocation40_spill] sm:$0xff]  ;;  %v999_v29 = vsel %vm919_vm6, %v5064_v13, 0.0 }
 0x32a   : > { %v4535_v49 = vpop.permute.xlu1 %1064  ;;  %1874 = vadd.xlane.f32.xlu1 %v1873_v28  ;;  %vm921_vm7 = vcmp.eq.s32.totalorder %v3989_v9, %v5059_v63  ;;  %vm600_vm8 = vcmp.eq.s32.totalorder %v3989_v9, %v5060_v19  ;;  %v697_v28 = vadd.f32 %v681_v50, %v521_v58 }
 0x32b   : > { %2530 = vmatmul.mubr.bf16.gmra.mrb[8].mxu0 %v1663_v62  ;;  %v5061_v62 = vld [vmem:[#allocation31_spill] sm:$0xff]  ;;  %v680_v10 = vsel %vm600_vm8, %v5062_v5, 0.0  ;;  %v1001_v12 = vsel %vm921_vm7, %v5065_v41, 0.0  ;;  %vm1081_vm10 = vcmp.eq.s32.totalorder %v3989_v9, %v4535_v49 }
 0x32c   : > { %v520_v43 = vsel %vm424_vm1, %v5061_v62, 0.0  ;;  %v857_v52 = vadd.f32 %v841_v38, %v697_v28 }
 0x32d   : > { %v696_v32 = vadd.f32 %v680_v10, %v520_v43 }
 0x32e   : > { %v4537_v18 = vpop.permute.xlu1 %1135 }
 0x32f   : > { %v1159_v11 = vsel %vm1079_vm4, %v4537_v18, 0.0  ;;  %v856_v49 = vadd.f32 %v840_v4, %v696_v32 }
 0x332   : > { %v4539_v8 = vpop.permute.xlu1 %1143 }
 0x337   : > { %v4548_v0 = vpop.permute.xlu1 %1218 }
 0x338   : > { %vm1239_vm11 = vcmp.eq.s32.totalorder %v3989_v9, %v4548_v0 }
 0x339   : > { %v1319_v0 = vsel %vm1239_vm11, %v5071_v60, 0.0 }
 0x33b   : > { %v4556_v14 = vpop.permute.xlu1 %1221 }
 0x33c   : > { %vm1240_vm0 = vcmp.eq.s32.totalorder %v3989_v9, %v4556_v14 }
 0x33f   : > { %v1292_v20 = vpop.permute.xlu1 %1291 }
 0x340   : > { %v1318_v22 = vsel %vm1238_vm12, %v1292_v20, 0.0  ;;  %vm920_vm12 = vcmp.eq.s32.totalorder %v3989_v9, %v5068_v37  ;;  %v1015_v20 = vadd.f32 %v999_v29, %v855_v23 }
 0x341   : > { %v4561_v46 = vadd.f32 %v1318_v22, %v1174_v15  ;;  %v1161_v15 = vsel %vm1081_vm10, %v4539_v8, 0.0  ;;  %v1017_v22 = vadd.f32 %v1001_v12, %v857_v52  ;;  %v1000_v2 = vsel %vm920_vm12, %v5069_v44, 0.0 }
 0x342   : > { %v1175_v7 = vadd.f32 %v1159_v11, %v1015_v20  ;;  %v1016_v8 = vadd.f32 %v1000_v2, %v856_v49 }
 0x343   : > { %v4563_v59 = vpop.permute.xlu1 %1299  ;;  %v1177_v56 = vadd.f32 %v1161_v15, %v1017_v22 }
 0x344   : > { %v1335_v50 = vadd.f32 %v1319_v0, %v1175_v7  ;;  %v1320_v36 = vsel %vm1240_vm0, %v4563_v59, 0.0 }
 0x345   : > { %v1337_v21 = vadd.f32 %v5074_v31, %v1177_v56 }
 0x348   : > { %v1376_v27 = vpop.permute.xlu1 %1375 }
 0x349   : > { %vm1398_vm13 = vcmp.eq.s32.totalorder %v3989_v9, %v1376_v27  ;;  %v1176_v27 = vadd.f32 %v1160_v45, %v1016_v8 }
 0x34a   : > { %v1478_v47 = vsel %vm1398_vm13, %v5073_v35, 0.0 }
 0x34b   : > { %v1336_v39 = vadd.f32 %v1320_v36, %v1176_v27 }
 0x34c   : > { %v4565_v16 = vpop.permute.xlu1 %1381 }
 0x34d   : > { %vm1400_vm1 = vcmp.eq.s32.totalorder %v3989_v9, %v4565_v16 }
 0x34e   : > { %v1480_v16 = vsel %vm1400_vm1, %v4283_v1, 0.0 }
 0x34f   : > { %v1496_v33 = vadd.f32 %v1480_v16, %v1336_v39 }
 0x350   : > { %v4567_v61 = vpop.permute.xlu1 %1384 }
 0x351   : > { %vm1401_vm2 = vcmp.eq.s32.totalorder %v3989_v9, %v4567_v61  ;;  %v1624_v61 = vpop.permute.xlu0 %1623 }
 0x354   : > { %v1456_v48 = vpop.permute.xlu1 %1455 }
 0x355   : > { %v1479_v40 = vsel %vm1399_vm14, %v1456_v48, 0.0  ;;  %v1494_v48 = vadd.f32 %v1478_v47, %v4561_v46  ;;  %v1641_v46 = vsel %vm1561_vm5, %v1624_v61, 0.0  ;;  %v1833_v43 = vpop.xlane.xlu0 %1832 }
 0x356   : > { %v1495_v17 = vadd.f32 %v1479_v40, %v1335_v50  ;;  %v1877_v55 = vmax.f32 %v1833_v43, 1.0 }
 0x358   : > { %v1464_v6 = vpop.permute.xlu1 %1463  ;;  %2715 = vrcp.f32 %v1877_v55 }
 0x359   : > { %v1481_v58 = vsel %vm1401_vm2, %v1464_v6, 0.0  ;;  %v1836_v5 = vpop.xlane.xlu0 %1835 }
 0x35a   : > { %v1497_v38 = vadd.f32 %v1481_v58, %v1337_v21  ;;  %v1878_v4 = vmax.f32 %v1836_v5, 1.0 }
 0x35c   : > { %v1657_v54 = vadd.f32 %v1641_v46, %v1497_v38  ;;  %2717 = vrcp.f32 %v1878_v4 }
 0x35d   : > { %v1539_v57 = vpop.permute.xlu1 %1538  ;;  %v1842_v52 = vpop.xlane.xlu0 %1841 }
 0x35e   : > { %vm1559_vm15 = vcmp.eq.s32.totalorder %v3989_v9, %v1539_v57  ;;  %v1880_v41 = vmax.f32 %v1842_v52, 1.0 }
 0x35f   : > { %v1639_v34 = vsel %vm1559_vm15, %v1616_v24, 0.0 }
 0x360   : > { %v1655_v59 = vadd.f32 %v1639_v34, %v1495_v17 }
 0x361   : > { %v1542_v18 = vpop.permute.xlu1 %1541  ;;  %v1848_v13 = vpop.xlane.xlu0 %1847 }
 0x362   : > { %vm1560_vm6 = vcmp.eq.s32.totalorder %v3989_v9, %v1542_v18  ;;  %v1882_v12 = vmax.f32 %v1848_v13, 1.0  ;;  %v2716_v26 = vpop.eup %2715 }
 0x365   : > { %v1612_v14 = vpop.permute.xlu1 %1611 }
 0x366   : > { %v1638_v51 = vsel %vm1558_vm3, %v1612_v14, 0.0  ;;  %v2718_v57 = vpop.eup %2717 }
 0x367   : > { %v1654_v6 = vadd.f32 %v1638_v51, %v1494_v48  ;;  %v1854_v48 = vpop.xlane.xlu0 %1853 }
 0x368   : > { %v1884_v14 = vmax.f32 %v1854_v48, 1.0 }
 0x369   : > { %v1664_v42 = vpack.c.bf16 %v1655_v59, %v1654_v6  ;;  %v1620_v63 = vpop.permute.xlu1 %1619 }
 0x36a   : > { %v1640_v19 = vsel %vm1560_vm6, %v1620_v63, 0.0 }
 0x36b   : > { %v1656_v28 = vadd.f32 %v1640_v19, %v1496_v33  ;;  %2533 = vmatprep.mubr.bf16.mxu0 %v1664_v42  ;;  %v1860_v31 = vpop.xlane.xlu0 %1859 }
 0x36c   : > { %v1886_v16 = vmax.f32 %v1860_v31, 1.0 }
 0x36d   : > { %v1665_v62 = vpack.c.bf16 %v1657_v54, %v1656_v28 }
 0x36f   : > { %2534 = vmatmul.mubr.bf16.gmra.mrb[12].mxu0 %v1665_v62 }
 0x376   : > { %v1866_v5 = vpop.xlane.xlu0 %1865 }
 0x377   : > { %v1888_v52 = vmax.f32 %v1866_v5, 1.0 }
 0x37a   : > { %v1872_v55 = vpop.xlane.xlu0 %1871 }
 0x39b   : > { %v1830_v1 = vpop.xlane.xlu1 %1829 }
 0x39c   : > { %v1876_v23 = vmax.f32 %v1830_v1, 1.0 }
 0x39f   : > { %v1839_v10 = vpop.xlane.xlu1 %1838 }
 0x3a0   : > { %v1879_v3 = vmax.f32 %v1839_v10, 1.0 }
 0x3a2   : > { %2719 = vrcp.f32 %v1879_v3  ;;  %v1890_v3 = vmax.f32 %v1872_v55, 1.0 }
 0x3a3   : > { %v1845_v9 = vpop.xlane.xlu1 %1844  ;;  %2721 = vrcp.f32 %v1876_v23 }
 0x3a4   : > { %v1881_v32 = vmax.f32 %v1845_v9, 1.0  ;;  %2723 = vrcp.f32 %v1880_v41 }
 0x3a5   : > { %2725 = vrcp.f32 %v1882_v12 }
 0x3a7   : > { %v1851_v29 = vpop.xlane.xlu1 %1850 }
 0x3a8   : > { %v1883_v25 = vmax.f32 %v1851_v29, 1.0 }
 0x3aa   : > { %2727 = vrcp.f32 %v1883_v25 }
 0x3ab   : > { %2729 = vrcp.f32 %v1881_v32  ;;  %v1857_v17 = vpop.xlane.xlu1 %1856 }
 0x3ac   : > { %v2720_v37 = vpop.eup %2719  ;;  %v1885_v61 = vmax.f32 %v1857_v17, 1.0  ;;  %2731 = vrcp.f32 %v1884_v14 }
 0x3ad   : > { %v2722_v15 = vpop.eup %2721  ;;  %2733 = vrcp.f32 %v1886_v16 }
 0x3ae   : > { %v2724_v53 = vpop.eup %2723 }
 0x3af   : > { %v2726_v7 = vpop.eup %2725  ;;  %v1863_v21 = vpop.xlane.xlu1 %1862 }
 0x3b0   : > { %v1887_v51 = vmax.f32 %v1863_v21, 1.0 }
 0x3b2   : > { %2735 = vrcp.f32 %v1887_v51 }
 0x3b3   : > { %2737 = vrcp.f32 %v1885_v61  ;;  %v1869_v10 = vpop.xlane.xlu1 %1868 }
 0x3b4   : > { %v2728_v56 = vpop.eup %2727  ;;  %v1889_v9 = vmax.f32 %v1869_v10, 1.0  ;;  %2739 = vrcp.f32 %v1890_v3 }
 0x3b5   : > { %v2730_v18 = vpop.eup %2729 }
 0x3b6   : > { %v2732_v39 = vpop.eup %2731 }
 0x3b7   : > { %v2734_v38 = vpop.eup %2733  ;;  %v1875_v4 = vpop.xlane.xlu1 %1874 }
 0x3b8   : > { %v1891_v23 = vmax.f32 %v1875_v4, 1.0 }
 0x3ba   : > { %2741 = vrcp.f32 %v1891_v23 }
 0x3bb   : > { %2743 = vrcp.f32 %v1888_v52 }
 0x3bc   : > { %v2736_v59 = vpop.eup %2735  ;;  %2745 = vrcp.f32 %v1889_v9 }
 0x3bd   : > { %v2738_v33 = vpop.eup %2737 }
 0x3be   : > { %v2740_v13 = vpop.eup %2739 }
 0x3c1   : > { %v2523_v11 = vpop.f32.mrb[0].mxu0 }
 0x3c2   : > { %v1764_v20 = vpop.f32.mrb[1].mxu0  ;;  %v1926_v44 = vmul.f32 %v2718_v57, %v2523_v11 }
 0x3c3   : > { %v2524_v22 = vpop.f32.mrb[2].mxu0  ;;  %v1924_v30 = vmul.f32 %v2722_v15, %v1764_v20 }
 0x3c4   : > { %v1927_v2 = vmul.f32 %v2720_v37, %v2524_v22  ;;  %v1767_v49 = vpop.f32.mrb[3].mxu0  ;;  %v2742_v29 = vpop.eup %2741 }
 0x3c5   : > { %v1925_v45 = vmul.f32 %v2716_v26, %v1767_v49  ;;  %v2744_v12 = vpop.eup %2743 }
 0x3c6   : > { %v1941_v60 = vpack.c.bf16 %v1927_v2, %v1926_v44  ;;  %v2746_v57 = vpop.eup %2745  ;;  %v4641_v2 = vld [vmem:[#allocation10] ss:$0 sm:$0xff] }
 0x3c7   : > { %v1940_v0 = vpack.c.bf16 %v1925_v45, %v1924_v30 }
 0x3c9   : > { %2553 = vmatprep.mubr.bf16.mxu1 %v1940_v0 }
 0x3ca   : > { %2554 = vmatmul.mubr.bf16.vlgmr.msra.gmra.mrb[0].mxu1 %v1941_v60 }
 0x3cd   : > { %v2527_v24 = vpop.f32.mrb[4].mxu0 }
 0x3ce   : > { %v1780_v8 = vpop.f32.mrb[5].mxu0  ;;  %v1930_v47 = vmul.f32 %v2726_v7, %v2527_v24 }
 0x3cf   : > { %v2528_v35 = vpop.f32.mrb[6].mxu0  ;;  %v1928_v27 = vmul.f32 %v2724_v53, %v1780_v8 }
 0x3d0   : > { %v1931_v40 = vmul.f32 %v2728_v56, %v2528_v35  ;;  %v1783_v50 = vpop.f32.mrb[7].mxu0 }
 0x3d1   : > { %v1929_v36 = vmul.f32 %v2730_v18, %v1783_v50 }
 0x3d2   : > { %v1943_v58 = vpack.c.bf16 %v1931_v40, %v1930_v47 }
 0x3d3   : > { %v1942_v34 = vpack.c.bf16 %v1929_v36, %v1928_v27 }
 0x3d5   : > { %2557 = vmatprep.mubr.bf16.mxu1 %v1942_v34 }
 0x3d6   : > { %2558 = vmatmul.mubr.bf16.gmra.mrb[4].mxu1 %v1943_v58 }
 0x3fe   : > { %v2531_v6 = vpop.f32.mrb[8].mxu0 }
 0x3ff   : > { %v1796_v42 = vpop.f32.mrb[9].mxu0  ;;  %v1934_v46 = vmul.f32 %v2734_v38, %v2531_v6 }
 0x400   : > { %v2532_v63 = vpop.f32.mrb[10].mxu0  ;;  %v1932_v28 = vmul.f32 %v2732_v39, %v1796_v42 }
 0x401   : > { %v1935_v19 = vmul.f32 %v2736_v59, %v2532_v63  ;;  %v1799_v54 = vpop.f32.mrb[11].mxu0 }
 0x402   : > { %v1933_v62 = vmul.f32 %v2738_v33, %v1799_v54 }
 0x403   : > { %v1945_v43 = vpack.c.bf16 %v1935_v19, %v1934_v46 }
 0x404   : > { %v1944_v1 = vpack.c.bf16 %v1933_v62, %v1932_v28 }
 0x406   : > { %2561 = vmatprep.mubr.bf16.mxu1 %v1944_v1 }
 0x407   : > { %2562 = vmatmul.mubr.bf16.gmra.mrb[8].mxu1 %v1945_v43 }
 0x442   : > { %v2535_v41 = vpop.f32.mrb[12].mxu0 }
 0x443   : > { %v1812_v26 = vpop.f32.mrb[13].mxu0  ;;  %v1938_v32 = vmul.f32 %v2740_v13, %v2535_v41 }
 0x444   : > { %v2536_v25 = vpop.f32.mrb[14].mxu0  ;;  %v1936_v15 = vmul.f32 %v2744_v12, %v1812_v26 }
 0x445   : > { %v1939_v37 = vmul.f32 %v2742_v29, %v2536_v25  ;;  %v1815_v11 = vpop.f32.mrb[15].mxu0 }
 0x446   : > { %v1937_v20 = vmul.f32 %v2746_v57, %v1815_v11 }
 0x447   : > { %v1947_v22 = vpack.c.bf16 %v1939_v37, %v1938_v32 }
 0x448   : > { %v1946_v44 = vpack.c.bf16 %v1937_v20, %v1936_v15 }
 0x44a   : > { %2565 = vmatprep.mubr.bf16.mxu1 %v1946_v44 }
 0x44b   : > { %2566 = vmatmul.mubr.bf16.gmra.mrb[12].mxu1 %v1947_v22 }
 0x49d   : > { %v2555_v49 = vpop.f32.mrb[0].mxu1 }
 0x49e   : > { %v2062_v30 = vadd.f32 %v2555_v49, %v4641_v2  ;;  %v2053_v45 = vpop.f32.mrb[1].mxu1 }
 0x49f   : > { %v2054_v60 = vadd.f32 %v4641_v2, %v2053_v45  ;;  %v2556_v0 = vpop.f32.mrb[2].mxu1 }
 0x4a0   : > { %2747 = vtanh.f32 %v2062_v30  ;;  %v2065_v53 = vadd.f32 %v2556_v0, %v4641_v2  ;;  %v2056_v7 = vpop.f32.mrb[3].mxu1 }
 0x4a1   : > { %2749 = vtanh.f32 %v2054_v60  ;;  %v2057_v56 = vadd.f32 %v4641_v2, %v2056_v7 }
 0x4a2   : > { %2751 = vtanh.f32 %v2065_v53 }
 0x4a3   : > { %2753 = vtanh.f32 %v2057_v56 }
 0x4a9   : > { %v2559_v24 = vpop.f32.mrb[4].mxu1 }
 0x4aa   : > { %v2748_v18 = vpop.eup %2747  ;;  %v2078_v8 = vadd.f32 %v2559_v24, %v4641_v2  ;;  %v2069_v35 = vpop.f32.mrb[5].mxu1 }
 0x4ab   : > { %v2750_v47 = vpop.eup %2749  ;;  %v2070_v40 = vadd.f32 %v4641_v2, %v2069_v35  ;;  %v2560_v50 = vpop.f32.mrb[6].mxu1 }
 0x4ac   : > { %v2752_v27 = vpop.eup %2751  ;;  %2755 = vtanh.f32 %v2078_v8  ;;  %v2081_v36 = vadd.f32 %v2560_v50, %v4641_v2  ;;  %v2072_v58 = vpop.f32.mrb[7].mxu1 }
 0x4ad   : > { %v2754_v34 = vpop.eup %2753  ;;  %v2434_v48 = vpack.c.bf16 %v2752_v27, %v2748_v18  ;;  %2757 = vtanh.f32 %v2070_v40  ;;  %v2073_v17 = vadd.f32 %v4641_v2, %v2072_v58 }
 0x4ae   : > { %v2429_v31 = vpack.c.bf16 %v2754_v34, %v2750_v47  ;;  %2759 = vtanh.f32 %v2081_v36 }
 0x4af   : > { %2466 = vst [vmem:[%s4652_s23 + $0x8] sm:$0xff] %v2434_v48   ;;  %2761 = vtanh.f32 %v2073_v17 }
 0x4b0   : > { %2430 = vst [vmem:[%s4652_s23] sm:$0xff] %v2429_v31  }
 0x4b6   : > { %v2756_v21 = vpop.eup %2755 }
 0x4b7   : > { %v2758_v14 = vpop.eup %2757 }
 0x4b8   : > { %v2760_v16 = vpop.eup %2759 }
 0x4b9   : > { %v2762_v51 = vpop.eup %2761  ;;  %v2444_v61 = vpack.c.bf16 %v2760_v16, %v2756_v21 }
 0x4ba   : > { %v2439_v39 = vpack.c.bf16 %v2762_v51, %v2758_v14 }
 0x4bb   : > { %2468 = vst [vmem:[%s4652_s23 + $0x18] sm:$0xff] %v2444_v61  }
 0x4bc   : > { %2467 = vst [vmem:[%s4652_s23 + $0x10] sm:$0xff] %v2439_v39  }
 0x4da   : > { %v2563_v38 = vpop.f32.mrb[8].mxu1 }
 0x4db   : > { %v2094_v59 = vadd.f32 %v2563_v38, %v4641_v2  ;;  %v2085_v6 = vpop.f32.mrb[9].mxu1 }
 0x4dc   : > { %v2086_v33 = vadd.f32 %v4641_v2, %v2085_v6  ;;  %v2564_v42 = vpop.f32.mrb[10].mxu1 }
 0x4dd   : > { %2763 = vtanh.f32 %v2094_v59  ;;  %v2097_v63 = vadd.f32 %v2564_v42, %v4641_v2  ;;  %v2088_v46 = vpop.f32.mrb[11].mxu1 }
 0x4de   : > { %2765 = vtanh.f32 %v2086_v33  ;;  %v2089_v19 = vadd.f32 %v4641_v2, %v2088_v46 }
 0x4df   : > { %2767 = vtanh.f32 %v2097_v63 }
 0x4e0   : > { %2769 = vtanh.f32 %v2089_v19 }
 0x4e7   : > { %v2764_v54 = vpop.eup %2763 }
 0x4e8   : > { %v2766_v28 = vpop.eup %2765 }
 0x4e9   : > { %v2768_v62 = vpop.eup %2767 }
 0x4ea   : > { %v2770_v43 = vpop.eup %2769  ;;  %v2454_v1 = vpack.c.bf16 %v2768_v62, %v2764_v54 }
 0x4eb   : > { %v2449_v5 = vpack.c.bf16 %v2770_v43, %v2766_v28 }
 0x4ec   : > { %2470 = vst [vmem:[%s4652_s23 + $0x28] sm:$0xff] %v2454_v1  }
 0x4ed   : > { %2469 = vst [vmem:[%s4652_s23 + $0x20] sm:$0xff] %v2449_v5  }
 0x51e   : > { %v2567_v10 = vpop.f32.mrb[12].mxu1 }
 0x51f   : > { %v2110_v55 = vadd.f32 %v2567_v10, %v4641_v2  ;;  %v2101_v4 = vpop.f32.mrb[13].mxu1 }
 0x520   : > { %v2102_v3 = vadd.f32 %v4641_v2, %v2101_v4  ;;  %v2568_v23 = vpop.f32.mrb[14].mxu1 }
 0x521   : > { %2771 = vtanh.f32 %v2110_v55  ;;  %v2113_v52 = vadd.f32 %v2568_v23, %v4641_v2  ;;  %v2104_v9 = vpop.f32.mrb[15].mxu1 }
 0x522   : > { %2773 = vtanh.f32 %v2102_v3  ;;  %v2105_v13 = vadd.f32 %v4641_v2, %v2104_v9 }
 0x523   : > { %2775 = vtanh.f32 %v2113_v52 }
 0x524   : > { %2777 = vtanh.f32 %v2105_v13 }
 0x52b   : > { %v2772_v29 = vpop.eup %2771 }
 0x52c   : > { %v2774_v41 = vpop.eup %2773 }
 0x52d   : > { %v2776_v12 = vpop.eup %2775 }
 0x52e   : > { %v2778_v26 = vpop.eup %2777  ;;  %v2464_v25 = vpack.c.bf16 %v2776_v12, %v2772_v29 }
 0x52f   : > { %v2459_v57 = vpack.c.bf16 %v2778_v26, %v2774_v41 }
 0x530   : > { %2472 = vst [vmem:[%s4652_s23 + $0x38] sm:$0xff] %v2464_v25  }
 0x531   : > { %2471 = vst [vmem:[%s4652_s23 + $0x30] sm:$0xff] %v2459_v57  }
 0x532   : > { %2953 = shalt.err (!%p2950_p3)
}
 0x533   : > { %s2954_s12 = scalar_lea.hbm %s4673_s10, 1024  ;;  %s2958_s0 = scalar_lea.hbm %s4726_s5, 2048 }
 0x534   : > { %p2955_p9 = scmp.ne.s32.totalorder %s4673_s10, %s2954_s12  ;;  %p2959_p7 = scmp.lt.u32.totalorder %s4673_s10, %s4726_s5 }
 0x535   : > { %p2960_p12 = scmp.lt.u32.totalorder %s2958_s0, %s2954_s12  ;;  %p2962_p1 = scmp.lt.u32.totalorder %s2954_s12, %s4673_s10 }
 0x536   : > { %p2956_p13 = pnand %p2955_p9, %p3215_p5 }
 0x537   : > { %p2961_p2 = por %p2960_p12, %p2959_p7 }
 0x538   : > { %p2957_p11 = pneg %p2956_p13 }
 0x539   : > { %p2963_p4 = por %p2962_p1, %p2961_p2 }
 0x53b   : > { %p2964_p0 = pnand %p2963_p4, %p2957_p11 }
 0x53d   : > { %2967 = shalt.err (!%p2964_p0)
}
 0x53e   : > { %s3038_s24 = smov 64   ;;  %s3039_s23 = smov 4  }
 0x53f   : > { %2585 = dma.vmem_to_hbm [thread:$0]  (%p3215_p5), %s4675_s7, 1024, %s4673_s10, %s2213_s8, %s3038_s24, %s3038_s24, %s3039_s23  }
 0x540 PF: > { %s2241_s28 = sand.u32 1, %s3006_s18   ;;  %p5075_p8 = scmp.ne.s32.totalorder %s4756_s25, 0 }
 0x541   : > { %p5076_p6 = scmp.ge.s32.totalorder %s3018_s21, 2  ;;  %s2242_s27 = scalar_lea.sflag [#allocation4], %s2241_s28 }
 0x543   : > { %p2605_p10 = pnand %p5076_p6, %p5075_p8 }
 0x545   : > { %3001 = dma.done.wait (!%p2605_p10), %s2242_s27, 1024  }
 0x546   : > { %3003 = vsyncadd (!%p2605_p10), %s2242_s27, 4294966272  ;;  %p22_p3 = scmp.ge.s32.totalorder %s3201_s14, 4   ;;  %s5077_s18 = smov %s3010_s19 }
 0x547   : > { %s5078_s19 = smov %s3014_s20  ;;  %s5079_s20 = smov %s3211_s17 }
 0x548   : > { %s5080_s21 = smov %s3201_s14  ;;  %24 = sbr.rel (!%p22_p3) target bundleno = 11 (0xb), region = 110 }
 0x54f   :  { %2247 = vsyncpa [#allocation3], 1 }
 0x550   :  { %2249 = vsyncpa [#allocation3 + $0x1], 1 }
 0x551   :  { %2250 = vsyncpa [#allocation6], 1 }
 0x552   :  { %2252 = vsyncpa [#allocation6 + $0x1], 1 }
 0x553   :  { %2253 = vsyncpa [#allocation9], 1 }
 0x554   :  { %2254 = vsyncpa [#allocation4], 1 }
 0x555   :  { %2256 = vsyncpa [#allocation4 + $0x1], 1 }

</bundles_post_ra>
